<compile_context>
chip_gen: v7x
topology: tpu7x:2x2x1
jax: 0.10.0
libtpu: 0.0.40
codegen_flags: <defaults>
</compile_context>

<pallas_src>
import numpy as np
import jax
import jax.numpy as jnp
from jax.experimental import pallas as pl
from jax.experimental.pallas import tpu as pltpu

BN_EPS = 1e-5
C1_PAD = 128      # conv1 Cout padded 32 -> 128 (lane-dense layer-1 activation)
K1_PAD = 64       # conv1 im2col K padded 50 -> 64 (aligned contraction dim)


# ------------------------------ Pallas kernel -------------------------------

def fused_forward_kernel(
    p1_ref, w1_ref, b1_ref, s1_ref, t1_ref,          # layer 1 (host im2col'd)
    g2_ref, w2_ref, b2_ref, s2_ref, t2_ref,          # layer 2
    g3_ref, w3_ref, b3_ref, s3_ref, t3_ref,          # layer 3
    g4_ref, w4_ref, b4_ref, s4_ref, t4_ref,          # layer 4
    pool_ref, wfc_ref, bfc_ref,                      # adaptive-avg-pool + fc
    out_ref,
):
    f32 = jnp.float32
    bf16 = jnp.bfloat16

    def epilogue(acc, b_ref, s_ref, t_ref):
        # Module order is Conv -> ReLU -> BatchNorm (inference-mode affine).
        y = jnp.maximum(acc + b_ref[...], 0.0)
        return y * s_ref[...] + t_ref[...]

    # ---- layer 1: single matmul on the (zero-padded) im2col patches --------
    acc = jnp.dot(p1_ref[...], w1_ref[...], preferred_element_type=f32)
    a = epilogue(acc, b1_ref, s1_ref, t1_ref).astype(bf16)        # [M1, 128]

    def conv_layer(a_prev, g_ref, w_ref, b_ref, s_ref, t_ref):
        # Per tap t=(ki,kj): rows = G_t @ A_prev  (0/1 gather matrix performs
        # the strided/padded im2col row selection on the MXU), then accumulate
        # rows @ W_t into a float32 accumulator.
        n_taps = g_ref.shape[0]
        acc = None
        for t in range(n_taps):
            rows = jnp.dot(g_ref[t], a_prev, preferred_element_type=f32)
            part = jnp.dot(rows.astype(bf16), w_ref[t],
                           preferred_element_type=f32)
            acc = part if acc is None else acc + part
        return epilogue(acc, b_ref, s_ref, t_ref)

    a = conv_layer(a, g2_ref, w2_ref, b2_ref, s2_ref, t2_ref).astype(bf16)
    a = conv_layer(a, g3_ref, w3_ref, b3_ref, s3_ref, t3_ref).astype(bf16)
    a = conv_layer(a, g4_ref, w4_ref, b4_ref, s4_ref, t4_ref)     # f32 [M4,512]

    # ---- AdaptiveAvgPool2d(1) + Linear(512, 8), fused -----------------------
    pooled = jnp.dot(pool_ref[...], a, preferred_element_type=f32)   # [N, 512]
    out_ref[...] = (
        jnp.dot(pooled, wfc_ref[...], preferred_element_type=f32) + bfc_ref[...]
    )


def _vmem():
    return pl.BlockSpec(memory_space=pltpu.MemorySpace.VMEM)


def fused_forward_call(inputs, batch):
    return pl.pallas_call(
        fused_forward_kernel,
        out_shape=jax.ShapeDtypeStruct((batch, 8), jnp.float32),
        in_specs=[_vmem() for _ in inputs],
        out_specs=_vmem(),
    )(*inputs)


# ------------------------------- host helpers --------------------------------

def conv_out_size(h, k, stride, pad):
    return (h + 2 * pad - k) // stride + 1


def im2col(x_nhwc, k, stride, pad):
    """Patches for the raw input only; returns ([N*OH*OW, k*k*C], (OH, OW))."""
    N, H, W, C = x_nhwc.shape
    xp = jnp.pad(x_nhwc, ((0, 0), (pad, pad), (pad, pad), (0, 0)))
    OH = conv_out_size(H, k, stride, pad)
    OW = conv_out_size(W, k, stride, pad)
    cols = []
    for i in range(k):
        for j in range(k):
            cols.append(xp[:, i:i + stride * OH:stride, j:j + stride * OW:stride, :])
    cols = jnp.concatenate(cols, axis=-1)            # [N, OH, OW, k*k*C]
    return cols.reshape(N * OH * OW, k * k * C), (OH, OW)


def gather_mats(n, ih, iw, oh, ow, k, stride, pad):
    """0/1 row-selection matrices, one [n*oh*ow, n*ih*iw] per (ki,kj) tap.
    All-zero rows encode out-of-range (spatial padding) taps."""
    g = np.zeros((k * k, n * oh * ow, n * ih * iw), np.float32)
    for b in range(n):
        for r in range(oh):
            for c in range(ow):
                m = (b * oh + r) * ow + c
                for ki in range(k):
                    for kj in range(k):
                        src_r = r * stride + ki - pad
                        src_c = c * stride + kj - pad
                        if 0 <= src_r < ih and 0 <= src_c < iw:
                            g[ki * k + kj, m, (b * ih + src_r) * iw + src_c] = 1.0
    return g


def pool_mat(n, s):
    """AdaptiveAvgPool2d(1) as an [N, N*S] averaging matrix."""
    p = np.zeros((n, n * s), np.float32)
    for b in range(n):
        p[b, b * s:(b + 1) * s] = 1.0 / s
    return p


def init_params(key):
    """Deterministic synthetic parameters matching the module's shapes."""
    layer_defs = [(2, 32, 5, 2, 2), (32, 128, 3, 2, 1),
                  (128, 256, 3, 2, 1), (256, 512, 3, 2, 1)]
    conv_params = []
    for (cin, cout, k, stride, pad) in layer_defs:
        key, kw, kb, kg, kbe, km, kv = jax.random.split(key, 7)
        fan_in = k * k * cin
        conv_params.append(dict(
            w=jax.random.normal(kw, (k, k, cin, cout), jnp.float32)
              / jnp.sqrt(float(fan_in)),
            b=0.01 * jax.random.normal(kb, (cout,), jnp.float32),
            gamma=1.0 + 0.1 * jax.random.normal(kg, (cout,), jnp.float32),
            beta=0.1 * jax.random.normal(kbe, (cout,), jnp.float32),
            mean=0.1 * jax.random.normal(km, (cout,), jnp.float32),
            var=1.0 + 0.1 * jnp.abs(jax.random.normal(kv, (cout,), jnp.float32)),
            k=k, stride=stride, pad=pad,
        ))
    key, kfw, kfb = jax.random.split(key, 3)
    fc_w = jax.random.normal(kfw, (512, 8), jnp.float32) / jnp.sqrt(512.0)
    fc_b = 0.01 * jax.random.normal(kfb, (8,), jnp.float32)
    return conv_params, (fc_w, fc_b)


def forward(x_nchw, conv_params, fc_params):
    bf16 = jnp.bfloat16
    N, _, _, _ = x_nchw.shape
    x = jnp.transpose(x_nchw, (0, 2, 3, 1)).astype(jnp.float32)   # NCHW -> NHWC

    # TODO(synk): BatchNorm2d is implemented in inference mode (running stats);
    # PyTorch's default training-mode batch statistics are not reproduced here.
    def bn_scale_shift(p, pad_to=None):
        scale = p["gamma"] / jnp.sqrt(p["var"] + BN_EPS)
        shift = p["beta"] - p["mean"] * scale
        bias = p["b"]
        if pad_to is not None:
            ext = pad_to - scale.shape[0]
            scale = jnp.pad(scale, (0, ext))
            shift = jnp.pad(shift, (0, ext))
            bias = jnp.pad(bias, (0, ext))
        return bias[None, :], scale[None, :], shift[None, :]

    # ---------------- layer 1 (host-side im2col of the raw input only) -------
    p0 = conv_params[0]
    patches, (oh, ow) = im2col(x, p0["k"], p0["stride"], p0["pad"])  # [M1, 50]
    k1 = patches.shape[1]
    patches = jnp.pad(patches, ((0, 0), (0, K1_PAD - k1))).astype(bf16)
    w1 = p0["w"].reshape(k1, -1)                                     # [50, 32]
    w1 = jnp.pad(w1, ((0, K1_PAD - k1), (0, C1_PAD - w1.shape[1]))).astype(bf16)
    b1, s1, t1 = bn_scale_shift(p0, pad_to=C1_PAD)

    inputs = [patches, w1, b1, s1, t1]

    # ---------------- layers 2-4 (in-kernel gather-matmul im2col) ------------
    spatial = (oh, ow)
    prev_c_pad = C1_PAD - p0["w"].shape[-1]   # zero channels appended to act1
    for li in range(1, 4):
        p = conv_params[li]
        ih, iw = spatial
        oh = conv_out_size(ih, p["k"], p["stride"], p["pad"])
        ow = conv_out_size(iw, p["k"], p["stride"], p["pad"])
        g = jnp.asarray(
            gather_mats(N, ih, iw, oh, ow, p["k"], p["stride"], p["pad"]), bf16)
        w = p["w"]
        if prev_c_pad:
            w = jnp.pad(w, ((0, 0), (0, 0), (0, prev_c_pad), (0, 0)))
        w = w.reshape(p["k"] * p["k"], w.shape[2], w.shape[3]).astype(bf16)
        b, s, t = bn_scale_shift(p)
        inputs += [g, w, b, s, t]
        spatial = (oh, ow)
        prev_c_pad = 0          # Cin of later layers (128/256) is already aligned

    # ---------------- pool + fc ----------------------------------------------
    fc_w, fc_b = fc_params
    inputs += [jnp.asarray(pool_mat(N, spatial[0] * spatial[1]), jnp.float32),
               fc_w.astype(jnp.float32),
               fc_b[None, :].astype(jnp.float32)]

    # TODO(synk): for batch >= ~128 add a batch-parallel grid
    # (dimension_semantics=("parallel",)) so v7x's second TensorCore gets work,
    # keeping weight BlockSpecs single-buffered via constant index_maps.
    return fused_forward_call(inputs, N)


# ----------------------------------- main -------------------------------------

if __name__ == "__main__":
    key = jax.random.PRNGKey(0)
    key, kparams, kx = jax.random.split(key, 3)
    conv_params, fc_params = init_params(kparams)

    # Input: batch=2, in_channels=2 (required by conv1), spatial 16x16 (NCHW).
    x = jax.random.normal(kx, (2, 2, 16, 16), jnp.float32)

    fwd = jax.jit(lambda xx: forward(xx, conv_params, fc_params))
    logits = fwd(x)
    jax.block_until_ready(logits)
    assert logits.shape == (2, 8) and logits.dtype == jnp.float32
    assert bool(jnp.all(jnp.isfinite(logits)))
    print("KERNEL_OK")
</pallas_src>

<mosaic_0001>
module attributes {stable_mosaic.version = 11 : i64} {
  func.func @fused_forward_kernel(%arg0: memref<128x64xbf16, #tpu.memory_space<vmem>>, %arg1: memref<64x128xbf16, #tpu.memory_space<vmem>>, %arg2: memref<1x128xf32, #tpu.memory_space<vmem>>, %arg3: memref<1x128xf32, #tpu.memory_space<vmem>>, %arg4: memref<1x128xf32, #tpu.memory_space<vmem>>, %arg5: memref<9x32x128xbf16, #tpu.memory_space<vmem>>, %arg6: memref<9x128x128xbf16, #tpu.memory_space<vmem>>, %arg7: memref<1x128xf32, #tpu.memory_space<vmem>>, %arg8: memref<1x128xf32, #tpu.memory_space<vmem>>, %arg9: memref<1x128xf32, #tpu.memory_space<vmem>>, %arg10: memref<9x8x32xbf16, #tpu.memory_space<vmem>>, %arg11: memref<9x128x256xbf16, #tpu.memory_space<vmem>>, %arg12: memref<1x256xf32, #tpu.memory_space<vmem>>, %arg13: memref<1x256xf32, #tpu.memory_space<vmem>>, %arg14: memref<1x256xf32, #tpu.memory_space<vmem>>, %arg15: memref<9x2x8xbf16, #tpu.memory_space<vmem>>, %arg16: memref<9x256x512xbf16, #tpu.memory_space<vmem>>, %arg17: memref<1x512xf32, #tpu.memory_space<vmem>>, %arg18: memref<1x512xf32, #tpu.memory_space<vmem>>, %arg19: memref<1x512xf32, #tpu.memory_space<vmem>>, %arg20: memref<2x2xf32, #tpu.memory_space<vmem>>, %arg21: memref<512x8xf32, #tpu.memory_space<vmem>>, %arg22: memref<1x8xf32, #tpu.memory_space<vmem>>, %arg23: memref<2x8xf32, #tpu.memory_space<vmem>>) attributes {dimension_semantics = [], scalar_prefetch = 0 : i64, scratch_operands = 0 : i64, tpu.core_type = #tpu.core_type<tc>} {
    %c0 = arith.constant 0 : index
    %c0_0 = arith.constant 0 : index
    %0 = vector.load %arg0[%c0, %c0_0] : memref<128x64xbf16, #tpu.memory_space<vmem>>, vector<128x64xbf16>
    %c0_1 = arith.constant 0 : index
    %c0_2 = arith.constant 0 : index
    %1 = vector.load %arg1[%c0_1, %c0_2] : memref<64x128xbf16, #tpu.memory_space<vmem>>, vector<64x128xbf16>
    %cst = arith.constant dense<0.000000e+00> : vector<128x128xf32>
    %2 = tpu.matmul %0, %1, %cst {dimension_numbers = #tpu.dot_dimension_numbers<[1], [0], [0], [1], [0, 0, 1, 1], [], []>} : vector<128x64xbf16>, vector<64x128xbf16>, vector<128x128xf32> -> vector<128x128xf32>
    %c0_3 = arith.constant 0 : index
    %c0_4 = arith.constant 0 : index
    %3 = vector.load %arg2[%c0_3, %c0_4] : memref<1x128xf32, #tpu.memory_space<vmem>>, vector<1x128xf32>
    %4 = vector.broadcast %3 : vector<1x128xf32> to vector<128x128xf32>
    %5 = arith.addf %2, %4 : vector<128x128xf32>
    %cst_5 = arith.constant 0.000000e+00 : f32
    %6 = vector.broadcast %cst_5 : f32 to vector<128x128xf32>
    %7 = arith.maximumf %5, %6 : vector<128x128xf32>
    %c0_6 = arith.constant 0 : index
    %c0_7 = arith.constant 0 : index
    %8 = vector.load %arg3[%c0_6, %c0_7] : memref<1x128xf32, #tpu.memory_space<vmem>>, vector<1x128xf32>
    %9 = vector.broadcast %8 : vector<1x128xf32> to vector<128x128xf32>
    %10 = arith.mulf %7, %9 : vector<128x128xf32>
    %c0_8 = arith.constant 0 : index
    %c0_9 = arith.constant 0 : index
    %11 = vector.load %arg4[%c0_8, %c0_9] : memref<1x128xf32, #tpu.memory_space<vmem>>, vector<1x128xf32>
    %12 = vector.broadcast %11 : vector<1x128xf32> to vector<128x128xf32>
    %13 = arith.addf %10, %12 : vector<128x128xf32>
    %14 = arith.truncf %13 : vector<128x128xf32> to vector<128x128xbf16>
    %c0_10 = arith.constant 0 : index
    %c0_11 = arith.constant 0 : index
    %c0_12 = arith.constant 0 : index
    %15 = vector.load %arg5[%c0_10, %c0_11, %c0_12] : memref<9x32x128xbf16, #tpu.memory_space<vmem>>, vector<1x32x128xbf16>
    %16 = vector.shape_cast %15 : vector<1x32x128xbf16> to vector<32x128xbf16>
    %cst_13 = arith.constant dense<0.000000e+00> : vector<32x128xf32>
    %17 = tpu.matmul %16, %14, %cst_13 {dimension_numbers = #tpu.dot_dimension_numbers<[1], [0], [0], [1], [0, 0, 1, 1], [], []>} : vector<32x128xbf16>, vector<128x128xbf16>, vector<32x128xf32> -> vector<32x128xf32>
    %18 = arith.truncf %17 : vector<32x128xf32> to vector<32x128xbf16>
    %c0_14 = arith.constant 0 : index
    %c0_15 = arith.constant 0 : index
    %c0_16 = arith.constant 0 : index
    %19 = vector.load %arg6[%c0_14, %c0_15, %c0_16] : memref<9x128x128xbf16, #tpu.memory_space<vmem>>, vector<1x128x128xbf16>
    %20 = vector.shape_cast %19 : vector<1x128x128xbf16> to vector<128x128xbf16>
    %cst_17 = arith.constant dense<0.000000e+00> : vector<32x128xf32>
    %21 = tpu.matmul %18, %20, %cst_17 {dimension_numbers = #tpu.dot_dimension_numbers<[1], [0], [0], [1], [0, 0, 1, 1], [], []>} : vector<32x128xbf16>, vector<128x128xbf16>, vector<32x128xf32> -> vector<32x128xf32>
    %c1 = arith.constant 1 : index
    %c0_18 = arith.constant 0 : index
    %c0_19 = arith.constant 0 : index
    %22 = vector.load %arg5[%c1, %c0_18, %c0_19] : memref<9x32x128xbf16, #tpu.memory_space<vmem>>, vector<1x32x128xbf16>
    %23 = vector.shape_cast %22 : vector<1x32x128xbf16> to vector<32x128xbf16>
    %cst_20 = arith.constant dense<0.000000e+00> : vector<32x128xf32>
    %24 = tpu.matmul %23, %14, %cst_20 {dimension_numbers = #tpu.dot_dimension_numbers<[1], [0], [0], [1], [0, 0, 1, 1], [], []>} : vector<32x128xbf16>, vector<128x128xbf16>, vector<32x128xf32> -> vector<32x128xf32>
    %25 = arith.truncf %24 : vector<32x128xf32> to vector<32x128xbf16>
    %c1_21 = arith.constant 1 : index
    %c0_22 = arith.constant 0 : index
    %c0_23 = arith.constant 0 : index
    %26 = vector.load %arg6[%c1_21, %c0_22, %c0_23] : memref<9x128x128xbf16, #tpu.memory_space<vmem>>, vector<1x128x128xbf16>
    %27 = vector.shape_cast %26 : vector<1x128x128xbf16> to vector<128x128xbf16>
    %cst_24 = arith.constant dense<0.000000e+00> : vector<32x128xf32>
    %28 = tpu.matmul %25, %27, %cst_24 {dimension_numbers = #tpu.dot_dimension_numbers<[1], [0], [0], [1], [0, 0, 1, 1], [], []>} : vector<32x128xbf16>, vector<128x128xbf16>, vector<32x128xf32> -> vector<32x128xf32>
    %29 = arith.addf %21, %28 : vector<32x128xf32>
    %c2 = arith.constant 2 : index
    %c0_25 = arith.constant 0 : index
    %c0_26 = arith.constant 0 : index
    %30 = vector.load %arg5[%c2, %c0_25, %c0_26] : memref<9x32x128xbf16, #tpu.memory_space<vmem>>, vector<1x32x128xbf16>
    %31 = vector.shape_cast %30 : vector<1x32x128xbf16> to vector<32x128xbf16>
    %cst_27 = arith.constant dense<0.000000e+00> : vector<32x128xf32>
    %32 = tpu.matmul %31, %14, %cst_27 {dimension_numbers = #tpu.dot_dimension_numbers<[1], [0], [0], [1], [0, 0, 1, 1], [], []>} : vector<32x128xbf16>, vector<128x128xbf16>, vector<32x128xf32> -> vector<32x128xf32>
    %33 = arith.truncf %32 : vector<32x128xf32> to vector<32x128xbf16>
    %c2_28 = arith.constant 2 : index
    %c0_29 = arith.constant 0 : index
    %c0_30 = arith.constant 0 : index
    %34 = vector.load %arg6[%c2_28, %c0_29, %c0_30] : memref<9x128x128xbf16, #tpu.memory_space<vmem>>, vector<1x128x128xbf16>
    %35 = vector.shape_cast %34 : vector<1x128x128xbf16> to vector<128x128xbf16>
    %cst_31 = arith.constant dense<0.000000e+00> : vector<32x128xf32>
    %36 = tpu.matmul %33, %35, %cst_31 {dimension_numbers = #tpu.dot_dimension_numbers<[1], [0], [0], [1], [0, 0, 1, 1], [], []>} : vector<32x128xbf16>, vector<128x128xbf16>, vector<32x128xf32> -> vector<32x128xf32>
    %37 = arith.addf %29, %36 : vector<32x128xf32>
    %c3 = arith.constant 3 : index
    %c0_32 = arith.constant 0 : index
    %c0_33 = arith.constant 0 : index
    %38 = vector.load %arg5[%c3, %c0_32, %c0_33] : memref<9x32x128xbf16, #tpu.memory_space<vmem>>, vector<1x32x128xbf16>
    %39 = vector.shape_cast %38 : vector<1x32x128xbf16> to vector<32x128xbf16>
    %cst_34 = arith.constant dense<0.000000e+00> : vector<32x128xf32>
    %40 = tpu.matmul %39, %14, %cst_34 {dimension_numbers = #tpu.dot_dimension_numbers<[1], [0], [0], [1], [0, 0, 1, 1], [], []>} : vector<32x128xbf16>, vector<128x128xbf16>, vector<32x128xf32> -> vector<32x128xf32>
    %41 = arith.truncf %40 : vector<32x128xf32> to vector<32x128xbf16>
    %c3_35 = arith.constant 3 : index
    %c0_36 = arith.constant 0 : index
    %c0_37 = arith.constant 0 : index
    %42 = vector.load %arg6[%c3_35, %c0_36, %c0_37] : memref<9x128x128xbf16, #tpu.memory_space<vmem>>, vector<1x128x128xbf16>
    %43 = vector.shape_cast %42 : vector<1x128x128xbf16> to vector<128x128xbf16>
    %cst_38 = arith.constant dense<0.000000e+00> : vector<32x128xf32>
    %44 = tpu.matmul %41, %43, %cst_38 {dimension_numbers = #tpu.dot_dimension_numbers<[1], [0], [0], [1], [0, 0, 1, 1], [], []>} : vector<32x128xbf16>, vector<128x128xbf16>, vector<32x128xf32> -> vector<32x128xf32>
    %45 = arith.addf %37, %44 : vector<32x128xf32>
    %c4 = arith.constant 4 : index
    %c0_39 = arith.constant 0 : index
    %c0_40 = arith.constant 0 : index
    %46 = vector.load %arg5[%c4, %c0_39, %c0_40] : memref<9x32x128xbf16, #tpu.memory_space<vmem>>, vector<1x32x128xbf16>
    %47 = vector.shape_cast %46 : vector<1x32x128xbf16> to vector<32x128xbf16>
    %cst_41 = arith.constant dense<0.000000e+00> : vector<32x128xf32>
    %48 = tpu.matmul %47, %14, %cst_41 {dimension_numbers = #tpu.dot_dimension_numbers<[1], [0], [0], [1], [0, 0, 1, 1], [], []>} : vector<32x128xbf16>, vector<128x128xbf16>, vector<32x128xf32> -> vector<32x128xf32>
    %49 = arith.truncf %48 : vector<32x128xf32> to vector<32x128xbf16>
    %c4_42 = arith.constant 4 : index
    %c0_43 = arith.constant 0 : index
    %c0_44 = arith.constant 0 : index
    %50 = vector.load %arg6[%c4_42, %c0_43, %c0_44] : memref<9x128x128xbf16, #tpu.memory_space<vmem>>, vector<1x128x128xbf16>
    %51 = vector.shape_cast %50 : vector<1x128x128xbf16> to vector<128x128xbf16>
    %cst_45 = arith.constant dense<0.000000e+00> : vector<32x128xf32>
    %52 = tpu.matmul %49, %51, %cst_45 {dimension_numbers = #tpu.dot_dimension_numbers<[1], [0], [0], [1], [0, 0, 1, 1], [], []>} : vector<32x128xbf16>, vector<128x128xbf16>, vector<32x128xf32> -> vector<32x128xf32>
    %53 = arith.addf %45, %52 : vector<32x128xf32>
    %c5 = arith.constant 5 : index
    %c0_46 = arith.constant 0 : index
    %c0_47 = arith.constant 0 : index
    %54 = vector.load %arg5[%c5, %c0_46, %c0_47] : memref<9x32x128xbf16, #tpu.memory_space<vmem>>, vector<1x32x128xbf16>
    %55 = vector.shape_cast %54 : vector<1x32x128xbf16> to vector<32x128xbf16>
    %cst_48 = arith.constant dense<0.000000e+00> : vector<32x128xf32>
    %56 = tpu.matmul %55, %14, %cst_48 {dimension_numbers = #tpu.dot_dimension_numbers<[1], [0], [0], [1], [0, 0, 1, 1], [], []>} : vector<32x128xbf16>, vector<128x128xbf16>, vector<32x128xf32> -> vector<32x128xf32>
    %57 = arith.truncf %56 : vector<32x128xf32> to vector<32x128xbf16>
    %c5_49 = arith.constant 5 : index
    %c0_50 = arith.constant 0 : index
    %c0_51 = arith.constant 0 : index
    %58 = vector.load %arg6[%c5_49, %c0_50, %c0_51] : memref<9x128x128xbf16, #tpu.memory_space<vmem>>, vector<1x128x128xbf16>
    %59 = vector.shape_cast %58 : vector<1x128x128xbf16> to vector<128x128xbf16>
    %cst_52 = arith.constant dense<0.000000e+00> : vector<32x128xf32>
    %60 = tpu.matmul %57, %59, %cst_52 {dimension_numbers = #tpu.dot_dimension_numbers<[1], [0], [0], [1], [0, 0, 1, 1], [], []>} : vector<32x128xbf16>, vector<128x128xbf16>, vector<32x128xf32> -> vector<32x128xf32>
    %61 = arith.addf %53, %60 : vector<32x128xf32>
    %c6 = arith.constant 6 : index
    %c0_53 = arith.constant 0 : index
    %c0_54 = arith.constant 0 : index
    %62 = vector.load %arg5[%c6, %c0_53, %c0_54] : memref<9x32x128xbf16, #tpu.memory_space<vmem>>, vector<1x32x128xbf16>
    %63 = vector.shape_cast %62 : vector<1x32x128xbf16> to vector<32x128xbf16>
    %cst_55 = arith.constant dense<0.000000e+00> : vector<32x128xf32>
    %64 = tpu.matmul %63, %14, %cst_55 {dimension_numbers = #tpu.dot_dimension_numbers<[1], [0], [0], [1], [0, 0, 1, 1], [], []>} : vector<32x128xbf16>, vector<128x128xbf16>, vector<32x128xf32> -> vector<32x128xf32>
    %65 = arith.truncf %64 : vector<32x128xf32> to vector<32x128xbf16>
    %c6_56 = arith.constant 6 : index
    %c0_57 = arith.constant 0 : index
    %c0_58 = arith.constant 0 : index
    %66 = vector.load %arg6[%c6_56, %c0_57, %c0_58] : memref<9x128x128xbf16, #tpu.memory_space<vmem>>, vector<1x128x128xbf16>
    %67 = vector.shape_cast %66 : vector<1x128x128xbf16> to vector<128x128xbf16>
    %cst_59 = arith.constant dense<0.000000e+00> : vector<32x128xf32>
    %68 = tpu.matmul %65, %67, %cst_59 {dimension_numbers = #tpu.dot_dimension_numbers<[1], [0], [0], [1], [0, 0, 1, 1], [], []>} : vector<32x128xbf16>, vector<128x128xbf16>, vector<32x128xf32> -> vector<32x128xf32>
    %69 = arith.addf %61, %68 : vector<32x128xf32>
    %c7 = arith.constant 7 : index
    %c0_60 = arith.constant 0 : index
    %c0_61 = arith.constant 0 : index
    %70 = vector.load %arg5[%c7, %c0_60, %c0_61] : memref<9x32x128xbf16, #tpu.memory_space<vmem>>, vector<1x32x128xbf16>
    %71 = vector.shape_cast %70 : vector<1x32x128xbf16> to vector<32x128xbf16>
    %cst_62 = arith.constant dense<0.000000e+00> : vector<32x128xf32>
    %72 = tpu.matmul %71, %14, %cst_62 {dimension_numbers = #tpu.dot_dimension_numbers<[1], [0], [0], [1], [0, 0, 1, 1], [], []>} : vector<32x128xbf16>, vector<128x128xbf16>, vector<32x128xf32> -> vector<32x128xf32>
    %73 = arith.truncf %72 : vector<32x128xf32> to vector<32x128xbf16>
    %c7_63 = arith.constant 7 : index
    %c0_64 = arith.constant 0 : index
    %c0_65 = arith.constant 0 : index
    %74 = vector.load %arg6[%c7_63, %c0_64, %c0_65] : memref<9x128x128xbf16, #tpu.memory_space<vmem>>, vector<1x128x128xbf16>
    %75 = vector.shape_cast %74 : vector<1x128x128xbf16> to vector<128x128xbf16>
    %cst_66 = arith.constant dense<0.000000e+00> : vector<32x128xf32>
    %76 = tpu.matmul %73, %75, %cst_66 {dimension_numbers = #tpu.dot_dimension_numbers<[1], [0], [0], [1], [0, 0, 1, 1], [], []>} : vector<32x128xbf16>, vector<128x128xbf16>, vector<32x128xf32> -> vector<32x128xf32>
    %77 = arith.addf %69, %76 : vector<32x128xf32>
    %c8 = arith.constant 8 : index
    %c0_67 = arith.constant 0 : index
    %c0_68 = arith.constant 0 : index
    %78 = vector.load %arg5[%c8, %c0_67, %c0_68] : memref<9x32x128xbf16, #tpu.memory_space<vmem>>, vector<1x32x128xbf16>
    %79 = vector.shape_cast %78 : vector<1x32x128xbf16> to vector<32x128xbf16>
    %cst_69 = arith.constant dense<0.000000e+00> : vector<32x128xf32>
    %80 = tpu.matmul %79, %14, %cst_69 {dimension_numbers = #tpu.dot_dimension_numbers<[1], [0], [0], [1], [0, 0, 1, 1], [], []>} : vector<32x128xbf16>, vector<128x128xbf16>, vector<32x128xf32> -> vector<32x128xf32>
    %81 = arith.truncf %80 : vector<32x128xf32> to vector<32x128xbf16>
    %c8_70 = arith.constant 8 : index
    %c0_71 = arith.constant 0 : index
    %c0_72 = arith.constant 0 : index
    %82 = vector.load %arg6[%c8_70, %c0_71, %c0_72] : memref<9x128x128xbf16, #tpu.memory_space<vmem>>, vector<1x128x128xbf16>
    %83 = vector.shape_cast %82 : vector<1x128x128xbf16> to vector<128x128xbf16>
    %cst_73 = arith.constant dense<0.000000e+00> : vector<32x128xf32>
    %84 = tpu.matmul %81, %83, %cst_73 {dimension_numbers = #tpu.dot_dimension_numbers<[1], [0], [0], [1], [0, 0, 1, 1], [], []>} : vector<32x128xbf16>, vector<128x128xbf16>, vector<32x128xf32> -> vector<32x128xf32>
    %85 = arith.addf %77, %84 : vector<32x128xf32>
    %c0_74 = arith.constant 0 : index
    %c0_75 = arith.constant 0 : index
    %86 = vector.load %arg7[%c0_74, %c0_75] : memref<1x128xf32, #tpu.memory_space<vmem>>, vector<1x128xf32>
    %87 = vector.broadcast %86 : vector<1x128xf32> to vector<32x128xf32>
    %88 = arith.addf %85, %87 : vector<32x128xf32>
    %cst_76 = arith.constant 0.000000e+00 : f32
    %89 = vector.broadcast %cst_76 : f32 to vector<32x128xf32>
    %90 = arith.maximumf %88, %89 : vector<32x128xf32>
    %c0_77 = arith.constant 0 : index
    %c0_78 = arith.constant 0 : index
    %91 = vector.load %arg8[%c0_77, %c0_78] : memref<1x128xf32, #tpu.memory_space<vmem>>, vector<1x128xf32>
    %92 = vector.broadcast %91 : vector<1x128xf32> to vector<32x128xf32>
    %93 = arith.mulf %90, %92 : vector<32x128xf32>
    %c0_79 = arith.constant 0 : index
    %c0_80 = arith.constant 0 : index
    %94 = vector.load %arg9[%c0_79, %c0_80] : memref<1x128xf32, #tpu.memory_space<vmem>>, vector<1x128xf32>
    %95 = vector.broadcast %94 : vector<1x128xf32> to vector<32x128xf32>
    %96 = arith.addf %93, %95 : vector<32x128xf32>
    %97 = arith.truncf %96 : vector<32x128xf32> to vector<32x128xbf16>
    %c0_81 = arith.constant 0 : index
    %c0_82 = arith.constant 0 : index
    %c0_83 = arith.constant 0 : index
    %98 = vector.load %arg10[%c0_81, %c0_82, %c0_83] : memref<9x8x32xbf16, #tpu.memory_space<vmem>>, vector<1x8x32xbf16>
    %99 = vector.shape_cast %98 : vector<1x8x32xbf16> to vector<8x32xbf16>
    %cst_84 = arith.constant dense<0.000000e+00> : vector<8x128xf32>
    %100 = tpu.matmul %99, %97, %cst_84 {dimension_numbers = #tpu.dot_dimension_numbers<[1], [0], [0], [1], [0, 0, 1, 1], [], []>} : vector<8x32xbf16>, vector<32x128xbf16>, vector<8x128xf32> -> vector<8x128xf32>
    %101 = arith.truncf %100 : vector<8x128xf32> to vector<8x128xbf16>
    %c0_85 = arith.constant 0 : index
    %c0_86 = arith.constant 0 : index
    %c0_87 = arith.constant 0 : index
    %102 = vector.load %arg11[%c0_85, %c0_86, %c0_87] : memref<9x128x256xbf16, #tpu.memory_space<vmem>>, vector<1x128x256xbf16>
    %103 = vector.shape_cast %102 : vector<1x128x256xbf16> to vector<128x256xbf16>
    %cst_88 = arith.constant dense<0.000000e+00> : vector<8x256xf32>
    %104 = tpu.matmul %101, %103, %cst_88 {dimension_numbers = #tpu.dot_dimension_numbers<[1], [0], [0], [1], [0, 0, 1, 1], [], []>} : vector<8x128xbf16>, vector<128x256xbf16>, vector<8x256xf32> -> vector<8x256xf32>
    %c1_89 = arith.constant 1 : index
    %c0_90 = arith.constant 0 : index
    %c0_91 = arith.constant 0 : index
    %105 = vector.load %arg10[%c1_89, %c0_90, %c0_91] : memref<9x8x32xbf16, #tpu.memory_space<vmem>>, vector<1x8x32xbf16>
    %106 = vector.shape_cast %105 : vector<1x8x32xbf16> to vector<8x32xbf16>
    %cst_92 = arith.constant dense<0.000000e+00> : vector<8x128xf32>
    %107 = tpu.matmul %106, %97, %cst_92 {dimension_numbers = #tpu.dot_dimension_numbers<[1], [0], [0], [1], [0, 0, 1, 1], [], []>} : vector<8x32xbf16>, vector<32x128xbf16>, vector<8x128xf32> -> vector<8x128xf32>
    %108 = arith.truncf %107 : vector<8x128xf32> to vector<8x128xbf16>
    %c1_93 = arith.constant 1 : index
    %c0_94 = arith.constant 0 : index
    %c0_95 = arith.constant 0 : index
    %109 = vector.load %arg11[%c1_93, %c0_94, %c0_95] : memref<9x128x256xbf16, #tpu.memory_space<vmem>>, vector<1x128x256xbf16>
    %110 = vector.shape_cast %109 : vector<1x128x256xbf16> to vector<128x256xbf16>
    %cst_96 = arith.constant dense<0.000000e+00> : vector<8x256xf32>
    %111 = tpu.matmul %108, %110, %cst_96 {dimension_numbers = #tpu.dot_dimension_numbers<[1], [0], [0], [1], [0, 0, 1, 1], [], []>} : vector<8x128xbf16>, vector<128x256xbf16>, vector<8x256xf32> -> vector<8x256xf32>
    %112 = arith.addf %104, %111 : vector<8x256xf32>
    %c2_97 = arith.constant 2 : index
    %c0_98 = arith.constant 0 : index
    %c0_99 = arith.constant 0 : index
    %113 = vector.load %arg10[%c2_97, %c0_98, %c0_99] : memref<9x8x32xbf16, #tpu.memory_space<vmem>>, vector<1x8x32xbf16>
    %114 = vector.shape_cast %113 : vector<1x8x32xbf16> to vector<8x32xbf16>
    %cst_100 = arith.constant dense<0.000000e+00> : vector<8x128xf32>
    %115 = tpu.matmul %114, %97, %cst_100 {dimension_numbers = #tpu.dot_dimension_numbers<[1], [0], [0], [1], [0, 0, 1, 1], [], []>} : vector<8x32xbf16>, vector<32x128xbf16>, vector<8x128xf32> -> vector<8x128xf32>
    %116 = arith.truncf %115 : vector<8x128xf32> to vector<8x128xbf16>
    %c2_101 = arith.constant 2 : index
    %c0_102 = arith.constant 0 : index
    %c0_103 = arith.constant 0 : index
    %117 = vector.load %arg11[%c2_101, %c0_102, %c0_103] : memref<9x128x256xbf16, #tpu.memory_space<vmem>>, vector<1x128x256xbf16>
    %118 = vector.shape_cast %117 : vector<1x128x256xbf16> to vector<128x256xbf16>
    %cst_104 = arith.constant dense<0.000000e+00> : vector<8x256xf32>
    %119 = tpu.matmul %116, %118, %cst_104 {dimension_numbers = #tpu.dot_dimension_numbers<[1], [0], [0], [1], [0, 0, 1, 1], [], []>} : vector<8x128xbf16>, vector<128x256xbf16>, vector<8x256xf32> -> vector<8x256xf32>
    %120 = arith.addf %112, %119 : vector<8x256xf32>
    %c3_105 = arith.constant 3 : index
    %c0_106 = arith.constant 0 : index
    %c0_107 = arith.constant 0 : index
    %121 = vector.load %arg10[%c3_105, %c0_106, %c0_107] : memref<9x8x32xbf16, #tpu.memory_space<vmem>>, vector<1x8x32xbf16>
    %122 = vector.shape_cast %121 : vector<1x8x32xbf16> to vector<8x32xbf16>
    %cst_108 = arith.constant dense<0.000000e+00> : vector<8x128xf32>
    %123 = tpu.matmul %122, %97, %cst_108 {dimension_numbers = #tpu.dot_dimension_numbers<[1], [0], [0], [1], [0, 0, 1, 1], [], []>} : vector<8x32xbf16>, vector<32x128xbf16>, vector<8x128xf32> -> vector<8x128xf32>
    %124 = arith.truncf %123 : vector<8x128xf32> to vector<8x128xbf16>
    %c3_109 = arith.constant 3 : index
    %c0_110 = arith.constant 0 : index
    %c0_111 = arith.constant 0 : index
    %125 = vector.load %arg11[%c3_109, %c0_110, %c0_111] : memref<9x128x256xbf16, #tpu.memory_space<vmem>>, vector<1x128x256xbf16>
    %126 = vector.shape_cast %125 : vector<1x128x256xbf16> to vector<128x256xbf16>
    %cst_112 = arith.constant dense<0.000000e+00> : vector<8x256xf32>
    %127 = tpu.matmul %124, %126, %cst_112 {dimension_numbers = #tpu.dot_dimension_numbers<[1], [0], [0], [1], [0, 0, 1, 1], [], []>} : vector<8x128xbf16>, vector<128x256xbf16>, vector<8x256xf32> -> vector<8x256xf32>
    %128 = arith.addf %120, %127 : vector<8x256xf32>
    %c4_113 = arith.constant 4 : index
    %c0_114 = arith.constant 0 : index
    %c0_115 = arith.constant 0 : index
    %129 = vector.load %arg10[%c4_113, %c0_114, %c0_115] : memref<9x8x32xbf16, #tpu.memory_space<vmem>>, vector<1x8x32xbf16>
    %130 = vector.shape_cast %129 : vector<1x8x32xbf16> to vector<8x32xbf16>
    %cst_116 = arith.constant dense<0.000000e+00> : vector<8x128xf32>
    %131 = tpu.matmul %130, %97, %cst_116 {dimension_numbers = #tpu.dot_dimension_numbers<[1], [0], [0], [1], [0, 0, 1, 1], [], []>} : vector<8x32xbf16>, vector<32x128xbf16>, vector<8x128xf32> -> vector<8x128xf32>
    %132 = arith.truncf %131 : vector<8x128xf32> to vector<8x128xbf16>
    %c4_117 = arith.constant 4 : index
    %c0_118 = arith.constant 0 : index
    %c0_119 = arith.constant 0 : index
    %133 = vector.load %arg11[%c4_117, %c0_118, %c0_119] : memref<9x128x256xbf16, #tpu.memory_space<vmem>>, vector<1x128x256xbf16>
    %134 = vector.shape_cast %133 : vector<1x128x256xbf16> to vector<128x256xbf16>
    %cst_120 = arith.constant dense<0.000000e+00> : vector<8x256xf32>
    %135 = tpu.matmul %132, %134, %cst_120 {dimension_numbers = #tpu.dot_dimension_numbers<[1], [0], [0], [1], [0, 0, 1, 1], [], []>} : vector<8x128xbf16>, vector<128x256xbf16>, vector<8x256xf32> -> vector<8x256xf32>
    %136 = arith.addf %128, %135 : vector<8x256xf32>
    %c5_121 = arith.constant 5 : index
    %c0_122 = arith.constant 0 : index
    %c0_123 = arith.constant 0 : index
    %137 = vector.load %arg10[%c5_121, %c0_122, %c0_123] : memref<9x8x32xbf16, #tpu.memory_space<vmem>>, vector<1x8x32xbf16>
    %138 = vector.shape_cast %137 : vector<1x8x32xbf16> to vector<8x32xbf16>
    %cst_124 = arith.constant dense<0.000000e+00> : vector<8x128xf32>
    %139 = tpu.matmul %138, %97, %cst_124 {dimension_numbers = #tpu.dot_dimension_numbers<[1], [0], [0], [1], [0, 0, 1, 1], [], []>} : vector<8x32xbf16>, vector<32x128xbf16>, vector<8x128xf32> -> vector<8x128xf32>
    %140 = arith.truncf %139 : vector<8x128xf32> to vector<8x128xbf16>
    %c5_125 = arith.constant 5 : index
    %c0_126 = arith.constant 0 : index
    %c0_127 = arith.constant 0 : index
    %141 = vector.load %arg11[%c5_125, %c0_126, %c0_127] : memref<9x128x256xbf16, #tpu.memory_space<vmem>>, vector<1x128x256xbf16>
    %142 = vector.shape_cast %141 : vector<1x128x256xbf16> to vector<128x256xbf16>
    %cst_128 = arith.constant dense<0.000000e+00> : vector<8x256xf32>
    %143 = tpu.matmul %140, %142, %cst_128 {dimension_numbers = #tpu.dot_dimension_numbers<[1], [0], [0], [1], [0, 0, 1, 1], [], []>} : vector<8x128xbf16>, vector<128x256xbf16>, vector<8x256xf32> -> vector<8x256xf32>
    %144 = arith.addf %136, %143 : vector<8x256xf32>
    %c6_129 = arith.constant 6 : index
    %c0_130 = arith.constant 0 : index
    %c0_131 = arith.constant 0 : index
    %145 = vector.load %arg10[%c6_129, %c0_130, %c0_131] : memref<9x8x32xbf16, #tpu.memory_space<vmem>>, vector<1x8x32xbf16>
    %146 = vector.shape_cast %145 : vector<1x8x32xbf16> to vector<8x32xbf16>
    %cst_132 = arith.constant dense<0.000000e+00> : vector<8x128xf32>
    %147 = tpu.matmul %146, %97, %cst_132 {dimension_numbers = #tpu.dot_dimension_numbers<[1], [0], [0], [1], [0, 0, 1, 1], [], []>} : vector<8x32xbf16>, vector<32x128xbf16>, vector<8x128xf32> -> vector<8x128xf32>
    %148 = arith.truncf %147 : vector<8x128xf32> to vector<8x128xbf16>
    %c6_133 = arith.constant 6 : index
    %c0_134 = arith.constant 0 : index
    %c0_135 = arith.constant 0 : index
    %149 = vector.load %arg11[%c6_133, %c0_134, %c0_135] : memref<9x128x256xbf16, #tpu.memory_space<vmem>>, vector<1x128x256xbf16>
    %150 = vector.shape_cast %149 : vector<1x128x256xbf16> to vector<128x256xbf16>
    %cst_136 = arith.constant dense<0.000000e+00> : vector<8x256xf32>
    %151 = tpu.matmul %148, %150, %cst_136 {dimension_numbers = #tpu.dot_dimension_numbers<[1], [0], [0], [1], [0, 0, 1, 1], [], []>} : vector<8x128xbf16>, vector<128x256xbf16>, vector<8x256xf32> -> vector<8x256xf32>
    %152 = arith.addf %144, %151 : vector<8x256xf32>
    %c7_137 = arith.constant 7 : index
    %c0_138 = arith.constant 0 : index
    %c0_139 = arith.constant 0 : index
    %153 = vector.load %arg10[%c7_137, %c0_138, %c0_139] : memref<9x8x32xbf16, #tpu.memory_space<vmem>>, vector<1x8x32xbf16>
    %154 = vector.shape_cast %153 : vector<1x8x32xbf16> to vector<8x32xbf16>
    %cst_140 = arith.constant dense<0.000000e+00> : vector<8x128xf32>
    %155 = tpu.matmul %154, %97, %cst_140 {dimension_numbers = #tpu.dot_dimension_numbers<[1], [0], [0], [1], [0, 0, 1, 1], [], []>} : vector<8x32xbf16>, vector<32x128xbf16>, vector<8x128xf32> -> vector<8x128xf32>
    %156 = arith.truncf %155 : vector<8x128xf32> to vector<8x128xbf16>
    %c7_141 = arith.constant 7 : index
    %c0_142 = arith.constant 0 : index
    %c0_143 = arith.constant 0 : index
    %157 = vector.load %arg11[%c7_141, %c0_142, %c0_143] : memref<9x128x256xbf16, #tpu.memory_space<vmem>>, vector<1x128x256xbf16>
    %158 = vector.shape_cast %157 : vector<1x128x256xbf16> to vector<128x256xbf16>
    %cst_144 = arith.constant dense<0.000000e+00> : vector<8x256xf32>
    %159 = tpu.matmul %156, %158, %cst_144 {dimension_numbers = #tpu.dot_dimension_numbers<[1], [0], [0], [1], [0, 0, 1, 1], [], []>} : vector<8x128xbf16>, vector<128x256xbf16>, vector<8x256xf32> -> vector<8x256xf32>
    %160 = arith.addf %152, %159 : vector<8x256xf32>
    %c8_145 = arith.constant 8 : index
    %c0_146 = arith.constant 0 : index
    %c0_147 = arith.constant 0 : index
    %161 = vector.load %arg10[%c8_145, %c0_146, %c0_147] : memref<9x8x32xbf16, #tpu.memory_space<vmem>>, vector<1x8x32xbf16>
    %162 = vector.shape_cast %161 : vector<1x8x32xbf16> to vector<8x32xbf16>
    %cst_148 = arith.constant dense<0.000000e+00> : vector<8x128xf32>
    %163 = tpu.matmul %162, %97, %cst_148 {dimension_numbers = #tpu.dot_dimension_numbers<[1], [0], [0], [1], [0, 0, 1, 1], [], []>} : vector<8x32xbf16>, vector<32x128xbf16>, vector<8x128xf32> -> vector<8x128xf32>
    %164 = arith.truncf %163 : vector<8x128xf32> to vector<8x128xbf16>
    %c8_149 = arith.constant 8 : index
    %c0_150 = arith.constant 0 : index
    %c0_151 = arith.constant 0 : index
    %165 = vector.load %arg11[%c8_149, %c0_150, %c0_151] : memref<9x128x256xbf16, #tpu.memory_space<vmem>>, vector<1x128x256xbf16>
    %166 = vector.shape_cast %165 : vector<1x128x256xbf16> to vector<128x256xbf16>
    %cst_152 = arith.constant dense<0.000000e+00> : vector<8x256xf32>
    %167 = tpu.matmul %164, %166, %cst_152 {dimension_numbers = #tpu.dot_dimension_numbers<[1], [0], [0], [1], [0, 0, 1, 1], [], []>} : vector<8x128xbf16>, vector<128x256xbf16>, vector<8x256xf32> -> vector<8x256xf32>
    %168 = arith.addf %160, %167 : vector<8x256xf32>
    %c0_153 = arith.constant 0 : index
    %c0_154 = arith.constant 0 : index
    %169 = vector.load %arg12[%c0_153, %c0_154] : memref<1x256xf32, #tpu.memory_space<vmem>>, vector<1x256xf32>
    %170 = vector.broadcast %169 : vector<1x256xf32> to vector<8x256xf32>
    %171 = arith.addf %168, %170 : vector<8x256xf32>
    %cst_155 = arith.constant 0.000000e+00 : f32
    %172 = vector.broadcast %cst_155 : f32 to vector<8x256xf32>
    %173 = arith.maximumf %171, %172 : vector<8x256xf32>
    %c0_156 = arith.constant 0 : index
    %c0_157 = arith.constant 0 : index
    %174 = vector.load %arg13[%c0_156, %c0_157] : memref<1x256xf32, #tpu.memory_space<vmem>>, vector<1x256xf32>
    %175 = vector.broadcast %174 : vector<1x256xf32> to vector<8x256xf32>
    %176 = arith.mulf %173, %175 : vector<8x256xf32>
    %c0_158 = arith.constant 0 : index
    %c0_159 = arith.constant 0 : index
    %177 = vector.load %arg14[%c0_158, %c0_159] : memref<1x256xf32, #tpu.memory_space<vmem>>, vector<1x256xf32>
    %178 = vector.broadcast %177 : vector<1x256xf32> to vector<8x256xf32>
    %179 = arith.addf %176, %178 : vector<8x256xf32>
    %180 = arith.truncf %179 : vector<8x256xf32> to vector<8x256xbf16>
    %c0_160 = arith.constant 0 : index
    %c0_161 = arith.constant 0 : index
    %c0_162 = arith.constant 0 : index
    %181 = vector.load %arg15[%c0_160, %c0_161, %c0_162] : memref<9x2x8xbf16, #tpu.memory_space<vmem>>, vector<1x2x8xbf16>
    %182 = vector.shape_cast %181 : vector<1x2x8xbf16> to vector<2x8xbf16>
    %cst_163 = arith.constant dense<0.000000e+00> : vector<2x256xf32>
    %183 = tpu.matmul %182, %180, %cst_163 {dimension_numbers = #tpu.dot_dimension_numbers<[1], [0], [0], [1], [0, 0, 1, 1], [], []>} : vector<2x8xbf16>, vector<8x256xbf16>, vector<2x256xf32> -> vector<2x256xf32>
    %184 = arith.truncf %183 : vector<2x256xf32> to vector<2x256xbf16>
    %c0_164 = arith.constant 0 : index
    %c0_165 = arith.constant 0 : index
    %c0_166 = arith.constant 0 : index
    %185 = vector.load %arg16[%c0_164, %c0_165, %c0_166] : memref<9x256x512xbf16, #tpu.memory_space<vmem>>, vector<1x256x512xbf16>
    %186 = vector.shape_cast %185 : vector<1x256x512xbf16> to vector<256x512xbf16>
    %cst_167 = arith.constant dense<0.000000e+00> : vector<2x512xf32>
    %187 = tpu.matmul %184, %186, %cst_167 {dimension_numbers = #tpu.dot_dimension_numbers<[1], [0], [0], [1], [0, 0, 1, 1], [], []>} : vector<2x256xbf16>, vector<256x512xbf16>, vector<2x512xf32> -> vector<2x512xf32>
    %c1_168 = arith.constant 1 : index
    %c0_169 = arith.constant 0 : index
    %c0_170 = arith.constant 0 : index
    %188 = vector.load %arg15[%c1_168, %c0_169, %c0_170] : memref<9x2x8xbf16, #tpu.memory_space<vmem>>, vector<1x2x8xbf16>
    %189 = vector.shape_cast %188 : vector<1x2x8xbf16> to vector<2x8xbf16>
    %cst_171 = arith.constant dense<0.000000e+00> : vector<2x256xf32>
    %190 = tpu.matmul %189, %180, %cst_171 {dimension_numbers = #tpu.dot_dimension_numbers<[1], [0], [0], [1], [0, 0, 1, 1], [], []>} : vector<2x8xbf16>, vector<8x256xbf16>, vector<2x256xf32> -> vector<2x256xf32>
    %191 = arith.truncf %190 : vector<2x256xf32> to vector<2x256xbf16>
    %c1_172 = arith.constant 1 : index
    %c0_173 = arith.constant 0 : index
    %c0_174 = arith.constant 0 : index
    %192 = vector.load %arg16[%c1_172, %c0_173, %c0_174] : memref<9x256x512xbf16, #tpu.memory_space<vmem>>, vector<1x256x512xbf16>
    %193 = vector.shape_cast %192 : vector<1x256x512xbf16> to vector<256x512xbf16>
    %cst_175 = arith.constant dense<0.000000e+00> : vector<2x512xf32>
    %194 = tpu.matmul %191, %193, %cst_175 {dimension_numbers = #tpu.dot_dimension_numbers<[1], [0], [0], [1], [0, 0, 1, 1], [], []>} : vector<2x256xbf16>, vector<256x512xbf16>, vector<2x512xf32> -> vector<2x512xf32>
    %195 = arith.addf %187, %194 : vector<2x512xf32>
    %c2_176 = arith.constant 2 : index
    %c0_177 = arith.constant 0 : index
    %c0_178 = arith.constant 0 : index
    %196 = vector.load %arg15[%c2_176, %c0_177, %c0_178] : memref<9x2x8xbf16, #tpu.memory_space<vmem>>, vector<1x2x8xbf16>
    %197 = vector.shape_cast %196 : vector<1x2x8xbf16> to vector<2x8xbf16>
    %cst_179 = arith.constant dense<0.000000e+00> : vector<2x256xf32>
    %198 = tpu.matmul %197, %180, %cst_179 {dimension_numbers = #tpu.dot_dimension_numbers<[1], [0], [0], [1], [0, 0, 1, 1], [], []>} : vector<2x8xbf16>, vector<8x256xbf16>, vector<2x256xf32> -> vector<2x256xf32>
    %199 = arith.truncf %198 : vector<2x256xf32> to vector<2x256xbf16>
    %c2_180 = arith.constant 2 : index
    %c0_181 = arith.constant 0 : index
    %c0_182 = arith.constant 0 : index
    %200 = vector.load %arg16[%c2_180, %c0_181, %c0_182] : memref<9x256x512xbf16, #tpu.memory_space<vmem>>, vector<1x256x512xbf16>
    %201 = vector.shape_cast %200 : vector<1x256x512xbf16> to vector<256x512xbf16>
    %cst_183 = arith.constant dense<0.000000e+00> : vector<2x512xf32>
    %202 = tpu.matmul %199, %201, %cst_183 {dimension_numbers = #tpu.dot_dimension_numbers<[1], [0], [0], [1], [0, 0, 1, 1], [], []>} : vector<2x256xbf16>, vector<256x512xbf16>, vector<2x512xf32> -> vector<2x512xf32>
    %203 = arith.addf %195, %202 : vector<2x512xf32>
    %c3_184 = arith.constant 3 : index
    %c0_185 = arith.constant 0 : index
    %c0_186 = arith.constant 0 : index
    %204 = vector.load %arg15[%c3_184, %c0_185, %c0_186] : memref<9x2x8xbf16, #tpu.memory_space<vmem>>, vector<1x2x8xbf16>
    %205 = vector.shape_cast %204 : vector<1x2x8xbf16> to vector<2x8xbf16>
    %cst_187 = arith.constant dense<0.000000e+00> : vector<2x256xf32>
    %206 = tpu.matmul %205, %180, %cst_187 {dimension_numbers = #tpu.dot_dimension_numbers<[1], [0], [0], [1], [0, 0, 1, 1], [], []>} : vector<2x8xbf16>, vector<8x256xbf16>, vector<2x256xf32> -> vector<2x256xf32>
    %207 = arith.truncf %206 : vector<2x256xf32> to vector<2x256xbf16>
    %c3_188 = arith.constant 3 : index
    %c0_189 = arith.constant 0 : index
    %c0_190 = arith.constant 0 : index
    %208 = vector.load %arg16[%c3_188, %c0_189, %c0_190] : memref<9x256x512xbf16, #tpu.memory_space<vmem>>, vector<1x256x512xbf16>
    %209 = vector.shape_cast %208 : vector<1x256x512xbf16> to vector<256x512xbf16>
    %cst_191 = arith.constant dense<0.000000e+00> : vector<2x512xf32>
    %210 = tpu.matmul %207, %209, %cst_191 {dimension_numbers = #tpu.dot_dimension_numbers<[1], [0], [0], [1], [0, 0, 1, 1], [], []>} : vector<2x256xbf16>, vector<256x512xbf16>, vector<2x512xf32> -> vector<2x512xf32>
    %211 = arith.addf %203, %210 : vector<2x512xf32>
    %c4_192 = arith.constant 4 : index
    %c0_193 = arith.constant 0 : index
    %c0_194 = arith.constant 0 : index
    %212 = vector.load %arg15[%c4_192, %c0_193, %c0_194] : memref<9x2x8xbf16, #tpu.memory_space<vmem>>, vector<1x2x8xbf16>
    %213 = vector.shape_cast %212 : vector<1x2x8xbf16> to vector<2x8xbf16>
    %cst_195 = arith.constant dense<0.000000e+00> : vector<2x256xf32>
    %214 = tpu.matmul %213, %180, %cst_195 {dimension_numbers = #tpu.dot_dimension_numbers<[1], [0], [0], [1], [0, 0, 1, 1], [], []>} : vector<2x8xbf16>, vector<8x256xbf16>, vector<2x256xf32> -> vector<2x256xf32>
    %215 = arith.truncf %214 : vector<2x256xf32> to vector<2x256xbf16>
    %c4_196 = arith.constant 4 : index
    %c0_197 = arith.constant 0 : index
    %c0_198 = arith.constant 0 : index
    %216 = vector.load %arg16[%c4_196, %c0_197, %c0_198] : memref<9x256x512xbf16, #tpu.memory_space<vmem>>, vector<1x256x512xbf16>
    %217 = vector.shape_cast %216 : vector<1x256x512xbf16> to vector<256x512xbf16>
    %cst_199 = arith.constant dense<0.000000e+00> : vector<2x512xf32>
    %218 = tpu.matmul %215, %217, %cst_199 {dimension_numbers = #tpu.dot_dimension_numbers<[1], [0], [0], [1], [0, 0, 1, 1], [], []>} : vector<2x256xbf16>, vector<256x512xbf16>, vector<2x512xf32> -> vector<2x512xf32>
    %219 = arith.addf %211, %218 : vector<2x512xf32>
    %c5_200 = arith.constant 5 : index
    %c0_201 = arith.constant 0 : index
    %c0_202 = arith.constant 0 : index
    %220 = vector.load %arg15[%c5_200, %c0_201, %c0_202] : memref<9x2x8xbf16, #tpu.memory_space<vmem>>, vector<1x2x8xbf16>
    %221 = vector.shape_cast %220 : vector<1x2x8xbf16> to vector<2x8xbf16>
    %cst_203 = arith.constant dense<0.000000e+00> : vector<2x256xf32>
    %222 = tpu.matmul %221, %180, %cst_203 {dimension_numbers = #tpu.dot_dimension_numbers<[1], [0], [0], [1], [0, 0, 1, 1], [], []>} : vector<2x8xbf16>, vector<8x256xbf16>, vector<2x256xf32> -> vector<2x256xf32>
    %223 = arith.truncf %222 : vector<2x256xf32> to vector<2x256xbf16>
    %c5_204 = arith.constant 5 : index
    %c0_205 = arith.constant 0 : index
    %c0_206 = arith.constant 0 : index
    %224 = vector.load %arg16[%c5_204, %c0_205, %c0_206] : memref<9x256x512xbf16, #tpu.memory_space<vmem>>, vector<1x256x512xbf16>
    %225 = vector.shape_cast %224 : vector<1x256x512xbf16> to vector<256x512xbf16>
    %cst_207 = arith.constant dense<0.000000e+00> : vector<2x512xf32>
    %226 = tpu.matmul %223, %225, %cst_207 {dimension_numbers = #tpu.dot_dimension_numbers<[1], [0], [0], [1], [0, 0, 1, 1], [], []>} : vector<2x256xbf16>, vector<256x512xbf16>, vector<2x512xf32> -> vector<2x512xf32>
    %227 = arith.addf %219, %226 : vector<2x512xf32>
    %c6_208 = arith.constant 6 : index
    %c0_209 = arith.constant 0 : index
    %c0_210 = arith.constant 0 : index
    %228 = vector.load %arg15[%c6_208, %c0_209, %c0_210] : memref<9x2x8xbf16, #tpu.memory_space<vmem>>, vector<1x2x8xbf16>
    %229 = vector.shape_cast %228 : vector<1x2x8xbf16> to vector<2x8xbf16>
    %cst_211 = arith.constant dense<0.000000e+00> : vector<2x256xf32>
    %230 = tpu.matmul %229, %180, %cst_211 {dimension_numbers = #tpu.dot_dimension_numbers<[1], [0], [0], [1], [0, 0, 1, 1], [], []>} : vector<2x8xbf16>, vector<8x256xbf16>, vector<2x256xf32> -> vector<2x256xf32>
    %231 = arith.truncf %230 : vector<2x256xf32> to vector<2x256xbf16>
    %c6_212 = arith.constant 6 : index
    %c0_213 = arith.constant 0 : index
    %c0_214 = arith.constant 0 : index
    %232 = vector.load %arg16[%c6_212, %c0_213, %c0_214] : memref<9x256x512xbf16, #tpu.memory_space<vmem>>, vector<1x256x512xbf16>
    %233 = vector.shape_cast %232 : vector<1x256x512xbf16> to vector<256x512xbf16>
    %cst_215 = arith.constant dense<0.000000e+00> : vector<2x512xf32>
    %234 = tpu.matmul %231, %233, %cst_215 {dimension_numbers = #tpu.dot_dimension_numbers<[1], [0], [0], [1], [0, 0, 1, 1], [], []>} : vector<2x256xbf16>, vector<256x512xbf16>, vector<2x512xf32> -> vector<2x512xf32>
    %235 = arith.addf %227, %234 : vector<2x512xf32>
    %c7_216 = arith.constant 7 : index
    %c0_217 = arith.constant 0 : index
    %c0_218 = arith.constant 0 : index
    %236 = vector.load %arg15[%c7_216, %c0_217, %c0_218] : memref<9x2x8xbf16, #tpu.memory_space<vmem>>, vector<1x2x8xbf16>
    %237 = vector.shape_cast %236 : vector<1x2x8xbf16> to vector<2x8xbf16>
    %cst_219 = arith.constant dense<0.000000e+00> : vector<2x256xf32>
    %238 = tpu.matmul %237, %180, %cst_219 {dimension_numbers = #tpu.dot_dimension_numbers<[1], [0], [0], [1], [0, 0, 1, 1], [], []>} : vector<2x8xbf16>, vector<8x256xbf16>, vector<2x256xf32> -> vector<2x256xf32>
    %239 = arith.truncf %238 : vector<2x256xf32> to vector<2x256xbf16>
    %c7_220 = arith.constant 7 : index
    %c0_221 = arith.constant 0 : index
    %c0_222 = arith.constant 0 : index
    %240 = vector.load %arg16[%c7_220, %c0_221, %c0_222] : memref<9x256x512xbf16, #tpu.memory_space<vmem>>, vector<1x256x512xbf16>
    %241 = vector.shape_cast %240 : vector<1x256x512xbf16> to vector<256x512xbf16>
    %cst_223 = arith.constant dense<0.000000e+00> : vector<2x512xf32>
    %242 = tpu.matmul %239, %241, %cst_223 {dimension_numbers = #tpu.dot_dimension_numbers<[1], [0], [0], [1], [0, 0, 1, 1], [], []>} : vector<2x256xbf16>, vector<256x512xbf16>, vector<2x512xf32> -> vector<2x512xf32>
    %243 = arith.addf %235, %242 : vector<2x512xf32>
    %c8_224 = arith.constant 8 : index
    %c0_225 = arith.constant 0 : index
    %c0_226 = arith.constant 0 : index
    %244 = vector.load %arg15[%c8_224, %c0_225, %c0_226] : memref<9x2x8xbf16, #tpu.memory_space<vmem>>, vector<1x2x8xbf16>
    %245 = vector.shape_cast %244 : vector<1x2x8xbf16> to vector<2x8xbf16>
    %cst_227 = arith.constant dense<0.000000e+00> : vector<2x256xf32>
    %246 = tpu.matmul %245, %180, %cst_227 {dimension_numbers = #tpu.dot_dimension_numbers<[1], [0], [0], [1], [0, 0, 1, 1], [], []>} : vector<2x8xbf16>, vector<8x256xbf16>, vector<2x256xf32> -> vector<2x256xf32>
    %247 = arith.truncf %246 : vector<2x256xf32> to vector<2x256xbf16>
    %c8_228 = arith.constant 8 : index
    %c0_229 = arith.constant 0 : index
    %c0_230 = arith.constant 0 : index
    %248 = vector.load %arg16[%c8_228, %c0_229, %c0_230] : memref<9x256x512xbf16, #tpu.memory_space<vmem>>, vector<1x256x512xbf16>
    %249 = vector.shape_cast %248 : vector<1x256x512xbf16> to vector<256x512xbf16>
    %cst_231 = arith.constant dense<0.000000e+00> : vector<2x512xf32>
    %250 = tpu.matmul %247, %249, %cst_231 {dimension_numbers = #tpu.dot_dimension_numbers<[1], [0], [0], [1], [0, 0, 1, 1], [], []>} : vector<2x256xbf16>, vector<256x512xbf16>, vector<2x512xf32> -> vector<2x512xf32>
    %251 = arith.addf %243, %250 : vector<2x512xf32>
    %c0_232 = arith.constant 0 : index
    %c0_233 = arith.constant 0 : index
    %252 = vector.load %arg17[%c0_232, %c0_233] : memref<1x512xf32, #tpu.memory_space<vmem>>, vector<1x512xf32>
    %253 = vector.broadcast %252 : vector<1x512xf32> to vector<2x512xf32>
    %254 = arith.addf %251, %253 : vector<2x512xf32>
    %cst_234 = arith.constant 0.000000e+00 : f32
    %255 = vector.broadcast %cst_234 : f32 to vector<2x512xf32>
    %256 = arith.maximumf %254, %255 : vector<2x512xf32>
    %c0_235 = arith.constant 0 : index
    %c0_236 = arith.constant 0 : index
    %257 = vector.load %arg18[%c0_235, %c0_236] : memref<1x512xf32, #tpu.memory_space<vmem>>, vector<1x512xf32>
    %258 = vector.broadcast %257 : vector<1x512xf32> to vector<2x512xf32>
    %259 = arith.mulf %256, %258 : vector<2x512xf32>
    %c0_237 = arith.constant 0 : index
    %c0_238 = arith.constant 0 : index
    %260 = vector.load %arg19[%c0_237, %c0_238] : memref<1x512xf32, #tpu.memory_space<vmem>>, vector<1x512xf32>
    %261 = vector.broadcast %260 : vector<1x512xf32> to vector<2x512xf32>
    %262 = arith.addf %259, %261 : vector<2x512xf32>
    %c0_239 = arith.constant 0 : index
    %c0_240 = arith.constant 0 : index
    %263 = vector.load %arg20[%c0_239, %c0_240] : memref<2x2xf32, #tpu.memory_space<vmem>>, vector<2x2xf32>
    %cst_241 = arith.constant dense<0.000000e+00> : vector<2x512xf32>
    %264 = tpu.matmul %263, %262, %cst_241 {dimension_numbers = #tpu.dot_dimension_numbers<[1], [0], [0], [1], [0, 0, 1, 1], [], []>} : vector<2x2xf32>, vector<2x512xf32>, vector<2x512xf32> -> vector<2x512xf32>
    %c0_242 = arith.constant 0 : index
    %c0_243 = arith.constant 0 : index
    %265 = vector.load %arg21[%c0_242, %c0_243] : memref<512x8xf32, #tpu.memory_space<vmem>>, vector<512x8xf32>
    %cst_244 = arith.constant dense<0.000000e+00> : vector<2x8xf32>
    %266 = tpu.matmul %264, %265, %cst_244 {dimension_numbers = #tpu.dot_dimension_numbers<[1], [0], [0], [1], [0, 0, 1, 1], [], []>} : vector<2x512xf32>, vector<512x8xf32>, vector<2x8xf32> -> vector<2x8xf32>
    %c0_245 = arith.constant 0 : index
    %c0_246 = arith.constant 0 : index
    %267 = vector.load %arg22[%c0_245, %c0_246] : memref<1x8xf32, #tpu.memory_space<vmem>>, vector<1x8xf32>
    %268 = vector.broadcast %267 : vector<1x8xf32> to vector<2x8xf32>
    %269 = arith.addf %266, %268 : vector<2x8xf32>
    %c0_247 = arith.constant 0 : index
    %c0_248 = arith.constant 0 : index
    %270 = vector.load %arg23[%c0_247, %c0_248] : memref<2x8xf32, #tpu.memory_space<vmem>>, vector<2x8xf32>
    tpu.vector_store %arg23[%c0_247, %c0_248], %269 {strides = array<i32>} : memref<2x8xf32, #tpu.memory_space<vmem>>, vector<2x8xf32>,
    return
  }
}

</mosaic_0001>

<bundles_post_ra>
// kernel: _lambda_.1
= control target key start
LH: loop header
LB: loop body
LE: loop exit
PB: predicated region body
PF: predicated region fallthrough
CT: control target
= control target key end

     0   :  { %s16026_s0 = inlined_call_operand.vmem [shape: bf16[128,64], index: 0, kind: input, shape index: {}]   ;;  %s16027_s1 = inlined_call_operand.vmem [shape: bf16[64,128], index: 1, kind: input, shape index: {}]   ;;  %s16028_s2 = inlined_call_operand.vmem [shape: f32[1,128], index: 2, kind: input, shape index: {}]   ;;  %s16029_s3 = inlined_call_operand.vmem [shape: f32[1,128], index: 3, kind: input, shape index: {}]   ;;  %s16030_s4 = inlined_call_operand.vmem [shape: f32[1,128], index: 4, kind: input, shape index: {}]   ;;  %s16031_s5 = inlined_call_operand.vmem [shape: bf16[9,32,128], index: 5, kind: input, shape index: {}]   ;;  %s16032_s6 = inlined_call_operand.vmem [shape: bf16[9,128,128], index: 6, kind: input, shape index: {}]   ;;  %s16033_s7 = inlined_call_operand.vmem [shape: f32[1,128], index: 7, kind: input, shape index: {}]   ;;  %s16034_s8 = inlined_call_operand.vmem [shape: f32[1,128], index: 8, kind: input, shape index: {}]   ;;  %s16035_s9 = inlined_call_operand.vmem [shape: f32[1,128], index: 9, kind: input, shape index: {}]   ;;  %s16036_s10 = inlined_call_operand.vmem [shape: bf16[9,8,32], index: 10, kind: input, shape index: {}]   ;;  %s16037_s11 = inlined_call_operand.vmem [shape: bf16[9,128,256], index: 11, kind: input, shape index: {}]   ;;  %s16038_s12 = inlined_call_operand.vmem [shape: f32[1,256], index: 12, kind: input, shape index: {}]   ;;  %s16039_s13 = inlined_call_operand.vmem [shape: f32[1,256], index: 13, kind: input, shape index: {}]   ;;  %s16040_s14 = inlined_call_operand.vmem [shape: f32[1,256], index: 14, kind: input, shape index: {}]   ;;  %s16041_s15 = inlined_call_operand.vmem [shape: bf16[9,2,8], index: 15, kind: input, shape index: {}]   ;;  %s16042_s16 = inlined_call_operand.vmem [shape: bf16[9,256,512], index: 16, kind: input, shape index: {}]   ;;  %s16043_s17 = inlined_call_operand.vmem [shape: f32[1,512], index: 17, kind: input, shape index: {}]   ;;  %s16044_s18 = inlined_call_operand.vmem [shape: f32[1,512], index: 18, kind: input, shape index: {}]   ;;  %s16045_s19 = inlined_call_operand.vmem [shape: f32[1,512], index: 19, kind: input, shape index: {}]   ;;  %s16046_s20 = inlined_call_operand.vmem [shape: f32[2,2], index: 20, kind: input, shape index: {}]   ;;  %s16047_s21 = inlined_call_operand.vmem [shape: f32[512,8], index: 21, kind: input, shape index: {}]   ;;  %s16048_s22 = inlined_call_operand.vmem [shape: f32[1,8], index: 22, kind: input, shape index: {}]   ;;  %s16049_s23 = inlined_call_operand.hbm [shape: f32[2,8], index: 23, kind: output, shape index: {}]  }
   0x1   :  { %16054 = sst [smem:[#allocation5_spill]] %s16026_s0 }
   0x2   :  { %16055 = sst [smem:[#allocation6_spill]] %s16027_s1 }
   0x3   :  { %16056 = sst [smem:[#allocation7_spill]] %s16028_s2 }
   0x4   :  { %16057 = sst [smem:[#allocation8_spill]] %s16029_s3 }
   0x5   :  { %16058 = sst [smem:[#allocation9_spill]] %s16030_s4 }
   0x6   :  { %16059 = sst [smem:[#allocation10_spill]] %s16031_s5 }
   0x7   :  { %16060 = sst [smem:[#allocation11_spill]] %s16032_s6 }
   0x8   :  { %16061 = sst [smem:[#allocation12_spill]] %s16033_s7 }
   0x9   :  { %s16062_s24 = sld [smem:[#allocation6_spill]]  ;;  %vm171_vm0 = vcmask 523264   ;;  %s16063_s27 = sld [smem:[#allocation5_spill]] }
   0xa   :  { %s16064_s0 = sld [smem:[#allocation10_spill]]  ;;  %s16065_s5 = sld [smem:[#allocation7_spill]] }
   0xb   :  { %s16066_s26 = sld [smem:[#allocation8_spill]]  ;;  %s16067_s7 = sld [smem:[#allocation9_spill]] }
   0xf   :  { %v11450_v0 = vld [vmem:[%s16062_s24] sm:$0xff]   ;;  %v11451_v1 = vld [vmem:[%s16062_s24 + $0x8] sm:$0xff]   ;;  %v11452_v2 = vld [vmem:[%s16062_s24 + $0x10] sm:$0xff]  }
  0x10   :  { %10894 = vmatprep.subr.bf16.mxu0 %v11450_v0  ;;  %v11454_v3 = vld [vmem:[%s16063_s27] sm:$0xff]   ;;  %v11453_v4 = vld [vmem:[%s16062_s24 + $0x18] sm:$0xff]   ;;  %v11455_v5 = vld [vmem:[%s16063_s27 + $0x8] sm:$0xff]  }
  0x11   :  { %10895 = vmatpush3.bf16.msra.mxu0 %v11450_v0  ;;  %10902 = vmatprep.mubr.msk.bf16.mxu0 %vm171_vm0, %v11454_v3  ;;  %v11456_v6 = vld [vmem:[%s16063_s27 + $0x10] sm:$0xff]   ;;  %v11457_v7 = vld [vmem:[%s16063_s27 + $0x18] sm:$0xff]   ;;  %v11458_v8 = vld [vmem:[%s16063_s27 + $0x20] sm:$0xff]  }
  0x12   :  { %10896 = vmatprep.subr.bf16.mxu0 %v11451_v1  ;;  %v11459_v9 = vld [vmem:[%s16063_s27 + $0x28] sm:$0xff]   ;;  %v11460_v10 = vld [vmem:[%s16063_s27 + $0x30] sm:$0xff]   ;;  %v11461_v11 = vld [vmem:[%s16063_s27 + $0x38] sm:$0xff]  }
  0x13   :  { %v11462_v12 = vld [vmem:[%s16064_s0 + $0x10] sm:$0xff]   ;;  %v11464_v13 = vld [vmem:[%s16064_s0] sm:$0xff]  }
  0x14   :  { %10934 = vmatprep.mubr.bf16.mxu1 %v11464_v13  ;;  %v12833_v14 = vld [vmem:[%s16065_s5] ss:$0 sm:$0xff] }
  0x15   :  { %10897 = vmatpush3.bf16.msra.mxu0 %v11451_v1  ;;  %v12838_v16 = vld [vmem:[%s16066_s26] ss:$0 sm:$0xff] }
  0x16   :  { %10898 = vmatprep.subr.bf16.mxu0 %v11452_v2  ;;  %v12846_v24 = vld [vmem:[%s16067_s7] ss:$0 sm:$0xff] }
  0x19   :  { %10899 = vmatpush3.bf16.msra.mxu0 %v11452_v2 }
  0x1a   :  { %10900 = vmatprep.subr.bf16.mxu0 %v11453_v4 }
  0x1d   :  { %10901 = vmatpush3.bf16.msra.mxu0 %v11453_v4 }
  0x20   :  { %10903 = vmatmul.mubr.msk.bf16.vlgmr.msra.gmra.mrb[0].mxu0 %vm171_vm0, %v11455_v5 }
  0x21   :  { %10906 = vmatprep.mubr.msk.bf16.mxu0 %vm171_vm0, %v11456_v6 }
  0x28   :  { %10907 = vmatmul.mubr.msk.bf16.gmra.mrb[4].mxu0 %vm171_vm0, %v11457_v7 }
  0x29   :  { %10910 = vmatprep.mubr.msk.bf16.mxu0 %vm171_vm0, %v11458_v8 }
  0x30   :  { %10911 = vmatmul.mubr.msk.bf16.gmra.mrb[8].mxu0 %vm171_vm0, %v11459_v9 }
  0x31   :  { %10914 = vmatprep.mubr.msk.bf16.mxu0 %vm171_vm0, %v11460_v10 }
  0x38   :  { %10915 = vmatmul.mubr.msk.bf16.gmra.mrb[12].mxu0 %vm171_vm0, %v11461_v11 }
  0x39   :  { %10954 = vmatprep.mubr.bf16.mxu0 %v11462_v12 }
  0xf3   :  { %v10904_v15 = vpop.f32.mrb[0].mxu0 }
  0xf4   :  { %v239_v17 = vadd.f32 %v10904_v15, %v12833_v14  ;;  %v230_v18 = vpop.f32.mrb[1].mxu0 }
  0xf5   :  { %v231_v19 = vadd.f32 %v12833_v14, %v230_v18  ;;  %v10905_v20 = vpop.f32.mrb[2].mxu0 }
  0xf6   :  { %v295_v21 = vmax.f32 %v239_v17, 0.0  ;;  %v242_v22 = vadd.f32 %v10905_v20, %v12833_v14  ;;  %v233_v23 = vpop.f32.mrb[3].mxu0 }
  0xf7   :  { %v293_v25 = vmax.f32 %v231_v19, 0.0  ;;  %v234_v26 = vadd.f32 %v12833_v14, %v233_v23 }
  0xf8   :  { %v318_v27 = vmul.f32 %v12838_v16, %v295_v21  ;;  %v296_v28 = vmax.f32 %v242_v22, 0.0 }
  0xf9   :  { %v316_v29 = vmul.f32 %v12838_v16, %v293_v25  ;;  %v294_v30 = vmax.f32 %v234_v26, 0.0 }
  0xfa   :  { %v319_v31 = vmul.f32 %v12838_v16, %v296_v28  ;;  %v341_v34 = vadd.f32 %v12846_v24, %v318_v27 }
  0xfb   :  { %v317_v32 = vmul.f32 %v12838_v16, %v294_v30  ;;  %v10908_v33 = vpop.f32.mrb[4].mxu0  ;;  %v339_v38 = vadd.f32 %v12846_v24, %v316_v29 }
  0xfc   :  { %v342_v35 = vadd.f32 %v12846_v24, %v319_v31  ;;  %v255_v36 = vadd.f32 %v10908_v33, %v12833_v14  ;;  %v246_v37 = vpop.f32.mrb[5].mxu0 }
  0xfd   :  { %v340_v39 = vadd.f32 %v12846_v24, %v317_v32  ;;  %v247_v40 = vadd.f32 %v12833_v14, %v246_v37  ;;  %v10909_v41 = vpop.f32.mrb[6].mxu0 }
  0xfe   :  { %v12859_v42 = vpack.c.bf16 %v342_v35, %v341_v34  ;;  %v299_v43 = vmax.f32 %v255_v36, 0.0  ;;  %v258_v44 = vadd.f32 %v10909_v41, %v12833_v14  ;;  %v249_v45 = vpop.f32.mrb[7].mxu0 }
  0xff   :  { %v12862_v46 = vpack.c.bf16 %v340_v39, %v339_v38  ;;  %v297_v47 = vmax.f32 %v247_v40, 0.0  ;;  %v250_v48 = vadd.f32 %v12833_v14, %v249_v45  ;;  %v11467_v45 = vld [vmem:[%s16064_s0 + $0x28] sm:$0xff]  }
 0x100   :  { %v322_v49 = vmul.f32 %v12838_v16, %v299_v43  ;;  %v300_v50 = vmax.f32 %v258_v44, 0.0  ;;  %v11466_v44 = vld [vmem:[%s16064_s0 + $0x20] sm:$0xff]  }
 0x101   :  { %v320_v51 = vmul.f32 %v12838_v16, %v297_v47  ;;  %v298_v52 = vmax.f32 %v250_v48, 0.0  ;;  %10918 = vmatprep.subr.bf16.mxu1 %v12862_v46  ;;  %10938 = vmatprep.subr.bf16.mxu0 %v12862_v46  ;;  %v11468_v47 = vld [vmem:[%s16064_s0 + $0x30] sm:$0xff]  }
 0x102   :  { %v323_v53 = vmul.f32 %v12838_v16, %v300_v50  ;;  %10919 = vmatpush3.bf16.msra.mxu1 %v12862_v46  ;;  %10939 = vmatpush3.bf16.msra.mxu0 %v12862_v46  ;;  %v345_v56 = vadd.f32 %v12846_v24, %v322_v49 }
 0x103   :  { %v321_v54 = vmul.f32 %v12838_v16, %v298_v52  ;;  %v10912_v55 = vpop.f32.mrb[8].mxu0  ;;  %10920 = vmatprep.subr.bf16.mxu1 %v12859_v42  ;;  %10940 = vmatprep.subr.bf16.mxu0 %v12859_v42  ;;  %v343_v60 = vadd.f32 %v12846_v24, %v320_v51 }
 0x104   :  { %v346_v57 = vadd.f32 %v12846_v24, %v323_v53  ;;  %v271_v58 = vadd.f32 %v10912_v55, %v12833_v14  ;;  %v262_v59 = vpop.f32.mrb[9].mxu0 }
 0x105   :  { %v344_v61 = vadd.f32 %v12846_v24, %v321_v54  ;;  %v263_v62 = vadd.f32 %v12833_v14, %v262_v59  ;;  %v10913_v63 = vpop.f32.mrb[10].mxu0 }
 0x106   :  { %v12881_v0 = vpack.c.bf16 %v346_v57, %v345_v56  ;;  %v303_v1 = vmax.f32 %v271_v58, 0.0  ;;  %v274_v2 = vadd.f32 %v10913_v63, %v12833_v14  ;;  %v265_v3 = vpop.f32.mrb[11].mxu0  ;;  %10921 = vmatpush3.bf16.msra.mxu1 %v12859_v42  ;;  %10941 = vmatpush3.bf16.msra.mxu0 %v12859_v42 }
 0x107   :  { %v12886_v4 = vpack.c.bf16 %v344_v61, %v343_v60  ;;  %v301_v5 = vmax.f32 %v263_v62, 0.0  ;;  %v266_v6 = vadd.f32 %v12833_v14, %v265_v3 }
 0x108   :  { %v326_v7 = vmul.f32 %v12838_v16, %v303_v1  ;;  %v304_v8 = vmax.f32 %v274_v2, 0.0 }
 0x109   :  { %v324_v9 = vmul.f32 %v12838_v16, %v301_v5  ;;  %v302_v10 = vmax.f32 %v266_v6, 0.0  ;;  %10922 = vmatprep.subr.bf16.mxu1 %v12886_v4  ;;  %10942 = vmatprep.subr.bf16.mxu0 %v12886_v4 }
 0x10a   :  { %v327_v11 = vmul.f32 %v12838_v16, %v304_v8  ;;  %10923 = vmatpush3.bf16.msra.mxu1 %v12886_v4  ;;  %10943 = vmatpush3.bf16.msra.mxu0 %v12886_v4  ;;  %v349_v15 = vadd.f32 %v12846_v24, %v326_v7 }
 0x10b   :  { %v325_v12 = vmul.f32 %v12838_v16, %v302_v10  ;;  %v10916_v13 = vpop.f32.mrb[12].mxu0  ;;  %10924 = vmatprep.subr.bf16.mxu1 %v12881_v0  ;;  %10944 = vmatprep.subr.bf16.mxu0 %v12881_v0  ;;  %v347_v20 = vadd.f32 %v12846_v24, %v324_v9 }
 0x10c   :  { %v350_v17 = vadd.f32 %v12846_v24, %v327_v11  ;;  %v287_v18 = vadd.f32 %v10916_v13, %v12833_v14  ;;  %v278_v19 = vpop.f32.mrb[13].mxu0 }
 0x10d   :  { %v348_v21 = vadd.f32 %v12846_v24, %v325_v12  ;;  %v279_v22 = vadd.f32 %v12833_v14, %v278_v19  ;;  %v10917_v23 = vpop.f32.mrb[14].mxu0 }
 0x10e   :  { %v12905_v25 = vpack.c.bf16 %v350_v17, %v349_v15  ;;  %v307_v26 = vmax.f32 %v287_v18, 0.0  ;;  %v290_v27 = vadd.f32 %v10917_v23, %v12833_v14  ;;  %v281_v28 = vpop.f32.mrb[15].mxu0  ;;  %10925 = vmatpush3.bf16.msra.mxu1 %v12881_v0  ;;  %10945 = vmatpush3.bf16.msra.mxu0 %v12881_v0 }
 0x10f   :  { %v12910_v29 = vpack.c.bf16 %v348_v21, %v347_v20  ;;  %v305_v30 = vmax.f32 %v279_v22, 0.0  ;;  %v282_v31 = vadd.f32 %v12833_v14, %v281_v28 }
 0x110   :  { %v330_v32 = vmul.f32 %v12838_v16, %v307_v26  ;;  %v308_v33 = vmax.f32 %v290_v27, 0.0 }
 0x111   :  { %v328_v34 = vmul.f32 %v12838_v16, %v305_v30  ;;  %v306_v35 = vmax.f32 %v282_v31, 0.0  ;;  %10926 = vmatprep.subr.bf16.mxu1 %v12910_v29  ;;  %10946 = vmatprep.subr.bf16.mxu0 %v12910_v29 }
 0x112   :  { %v331_v36 = vmul.f32 %v12838_v16, %v308_v33  ;;  %10927 = vmatpush3.bf16.msra.mxu1 %v12910_v29  ;;  %10947 = vmatpush3.bf16.msra.mxu0 %v12910_v29  ;;  %v353_v14 = vadd.f32 %v12846_v24, %v330_v32 }
 0x113   :  { %v329_v37 = vmul.f32 %v12838_v16, %v306_v35  ;;  %10928 = vmatprep.subr.bf16.mxu1 %v12905_v25  ;;  %10948 = vmatprep.subr.bf16.mxu0 %v12905_v25  ;;  %v351_v39 = vadd.f32 %v12846_v24, %v328_v34  ;;  %v11463_v16 = vld [vmem:[%s16064_s0 + $0x18] sm:$0xff]  }
 0x114   :  { %v354_v38 = vadd.f32 %v12846_v24, %v331_v36 }
 0x115   :  { %v352_v40 = vadd.f32 %v12846_v24, %v329_v37  ;;  %v11465_v24 = vld [vmem:[%s16064_s0 + $0x8] sm:$0xff]  }
 0x116   :  { %v12927_v41 = vpack.c.bf16 %v354_v38, %v353_v14  ;;  %10929 = vmatpush3.bf16.msra.mxu1 %v12905_v25  ;;  %10949 = vmatpush3.bf16.msra.mxu0 %v12905_v25 }
 0x117   :  { %v12931_v43 = vpack.c.bf16 %v352_v40, %v351_v39 }
 0x119   :  { %10930 = vmatprep.subr.bf16.mxu1 %v12931_v43  ;;  %10950 = vmatprep.subr.bf16.mxu0 %v12931_v43 }
 0x11a   :  { %10931 = vmatpush3.bf16.msra.mxu1 %v12931_v43  ;;  %10951 = vmatpush3.bf16.msra.mxu0 %v12931_v43 }
 0x11b   :  { %10932 = vmatprep.subr.bf16.mxu1 %v12927_v41  ;;  %10952 = vmatprep.subr.bf16.mxu0 %v12927_v41 }
 0x11e   :  { %10933 = vmatpush3.bf16.msra.mxu1 %v12927_v41  ;;  %10953 = vmatpush3.bf16.msra.mxu0 %v12927_v41 }
 0x11f   :  { %10998 = vmatprep.subr.bf16.mxu0 %v12862_v46 }
 0x121   :  { %10955 = vmatmul.mubr.bf16.vlgmr.msra.gmra.mrb[16].mxu0 %v11463_v16  ;;  %10935 = vmatmul.mubr.bf16.vlgmr.msra.gmra.mrb[0].mxu1 %v11465_v24 }
 0x122   :  { %10999 = vmatpush3.bf16.msra.mxu0 %v12862_v46  ;;  %11014 = vmatprep.mubr.bf16.mxu0 %v11466_v44 }
 0x123   :  { %11000 = vmatprep.subr.bf16.mxu0 %v12859_v42 }
 0x126   :  { %11001 = vmatpush3.bf16.msra.mxu0 %v12859_v42 }
 0x127   :  { %11002 = vmatprep.subr.bf16.mxu0 %v12886_v4 }
 0x12a   :  { %11003 = vmatpush3.bf16.msra.mxu0 %v12886_v4 }
 0x12b   :  { %11004 = vmatprep.subr.bf16.mxu0 %v12881_v0 }
 0x12e   :  { %11005 = vmatpush3.bf16.msra.mxu0 %v12881_v0 }
 0x12f   :  { %11006 = vmatprep.subr.bf16.mxu0 %v12910_v29 }
 0x132   :  { %11007 = vmatpush3.bf16.msra.mxu0 %v12910_v29 }
 0x133   :  { %11008 = vmatprep.subr.bf16.mxu0 %v12905_v25 }
 0x136   :  { %11009 = vmatpush3.bf16.msra.mxu0 %v12905_v25 }
 0x137   :  { %11010 = vmatprep.subr.bf16.mxu0 %v12931_v43 }
 0x13a   :  { %11011 = vmatpush3.bf16.msra.mxu0 %v12931_v43 }
 0x13b   :  { %11012 = vmatprep.subr.bf16.mxu0 %v12927_v41 }
 0x13e   :  { %11013 = vmatpush3.bf16.msra.mxu0 %v12927_v41 }
 0x13f   :  { %11038 = vmatprep.subr.bf16.mxu0 %v12862_v46 }
 0x141   :  { %11015 = vmatmul.mubr.bf16.vlgmr.msra.gmra.mrb[20].mxu0 %v11467_v45 }
 0x142   :  { %11039 = vmatpush3.bf16.msra.mxu0 %v12862_v46  ;;  %11054 = vmatprep.mubr.bf16.mxu0 %v11468_v47 }
 0x143   :  { %11040 = vmatprep.subr.bf16.mxu0 %v12859_v42 }
 0x146   :  { %11041 = vmatpush3.bf16.msra.mxu0 %v12859_v42 }
 0x147   :  { %11042 = vmatprep.subr.bf16.mxu0 %v12886_v4 }
 0x14a   :  { %11043 = vmatpush3.bf16.msra.mxu0 %v12886_v4 }
 0x14b   :  { %11044 = vmatprep.subr.bf16.mxu0 %v12881_v0 }
 0x14c   :  { %28 = vsyncpa [#allocation3], 0  ;;  %s16068_s6 = sld [smem:[#allocation11_spill]]  ;;  %v11469_v50 = vld [vmem:[%s16064_s0 + $0x38] sm:$0xff]   ;;  %v11470_v51 = vld [vmem:[%s16064_s0 + $0x40] sm:$0xff]   ;;  %vm12657_vm1 = vmmov 0  }
 0x14d   :  { %v11471_v59 = vld [vmem:[%s16064_s0 + $0x48] sm:$0xff]   ;;  %v11472_v60 = vld [vmem:[%s16064_s0 + $0x50] sm:$0xff]   ;;  %v11473_v61 = vld [vmem:[%s16064_s0 + $0x58] sm:$0xff]   ;;  %s16069_s28 = sld [smem:[#allocation12_spill]]  ;;  %vm2067_vm2 = vcmask 261120   ;;  %vm3786_vm3 = vcmask 1043456  }
 0x14e   :  { %11045 = vmatpush3.bf16.msra.mxu0 %v12881_v0  ;;  %v11474_v62 = vld [vmem:[%s16064_s0 + $0x60] sm:$0xff]   ;;  %v11475_v63 = vld [vmem:[%s16064_s0 + $0x68] sm:$0xff]   ;;  %v11478_v1 = vld [vmem:[%s16064_s0 + $0x70] sm:$0xff]   ;;  %vm3782_vm4 = vcmask 64512   ;;  %vm8537_vm5 = vcmask 1041408   ;;  %vm8533_vm6 = vcmask 15360  }
 0x14f   :  { %11046 = vmatprep.subr.bf16.mxu0 %v12910_v29  ;;  %v11480_v2 = vld [vmem:[%s16064_s0 + $0x78] sm:$0xff]   ;;  %v11495_v3 = vld [vmem:[%s16064_s0 + $0x80] sm:$0xff]   ;;  %v11496_v17 = vld [vmem:[%s16064_s0 + $0x88] sm:$0xff]   ;;  %vm8903_vm7 = vcmask 58368  }
 0x152   :  { %11047 = vmatpush3.bf16.msra.mxu0 %v12910_v29  ;;  %v11476_v48 = vld [vmem:[%s16068_s6 + $0x40] sm:$0xff]   ;;  %v11477_v49 = vld [vmem:[%s16068_s6 + $0x48] sm:$0xff]   ;;  %v11479_v52 = vld [vmem:[%s16068_s6 + $0x50] sm:$0xff]  }
 0x153   :  { %11048 = vmatprep.subr.bf16.mxu0 %v12905_v25  ;;  %10958 = vmatprep.subr.bf16.mxu1 %v11476_v48  ;;  %v11481_v53 = vld [vmem:[%s16068_s6 + $0x58] sm:$0xff]   ;;  %v11482_v54 = vld [vmem:[%s16068_s6 + $0x60] sm:$0xff]   ;;  %v11483_v55 = vld [vmem:[%s16068_s6 + $0x68] sm:$0xff]  }
 0x154   :  { %10959 = vmatpush3.bf16.msra.mxu1 %v11476_v48  ;;  %v11484_v56 = vld [vmem:[%s16068_s6 + $0x70] sm:$0xff]   ;;  %v11485_v57 = vld [vmem:[%s16068_s6 + $0x78] sm:$0xff]   ;;  %v13034_v58 = vld [vmem:[%s16068_s6] sm:$0xff]  }
 0x155   :  { %10960 = vmatprep.subr.bf16.mxu1 %v11477_v49  ;;  %v11487_v13 = vld [vmem:[%s16068_s6 + $0x8] sm:$0xff]   ;;  %v11488_v15 = vld [vmem:[%s16068_s6 + $0x10] sm:$0xff]   ;;  %v11489_v18 = vld [vmem:[%s16068_s6 + $0x18] sm:$0xff]  }
 0x156   :  { %11049 = vmatpush3.bf16.msra.mxu0 %v12905_v25  ;;  %v11490_v19 = vld [vmem:[%s16068_s6 + $0x20] sm:$0xff]   ;;  %v11491_v20 = vld [vmem:[%s16068_s6 + $0x28] sm:$0xff]   ;;  %v11492_v21 = vld [vmem:[%s16068_s6 + $0x30] sm:$0xff]  }
 0x157   :  { %11050 = vmatprep.subr.bf16.mxu0 %v12931_v43  ;;  %v11493_v22 = vld [vmem:[%s16068_s6 + $0x38] sm:$0xff]   ;;  %v11497_v31 = vld [vmem:[%s16068_s6 + $0x88] sm:$0xff]   ;;  %v11498_v32 = vld [vmem:[%s16068_s6 + $0x90] sm:$0xff]  }
 0x158   :  { %10961 = vmatpush3.bf16.msra.mxu1 %v11477_v49  ;;  %v11499_v33 = vld [vmem:[%s16068_s6 + $0x98] sm:$0xff]   ;;  %v11500_v34 = vld [vmem:[%s16068_s6 + $0xa0] sm:$0xff]   ;;  %v11501_v35 = vld [vmem:[%s16068_s6 + $0xa8] sm:$0xff]  }
 0x159   :  { %10962 = vmatprep.subr.bf16.mxu1 %v11479_v52  ;;  %v11502_v36 = vld [vmem:[%s16068_s6 + $0xb0] sm:$0xff]   ;;  %v11503_v37 = vld [vmem:[%s16068_s6 + $0xb8] sm:$0xff]   ;;  %v11504_v38 = vld [vmem:[%s16068_s6 + $0xc0] sm:$0xff]  }
 0x15a   :  { %11051 = vmatpush3.bf16.msra.mxu0 %v12931_v43  ;;  %v11505_v24 = vld [vmem:[%s16068_s6 + $0xc8] sm:$0xff]   ;;  %v11506_v44 = vld [vmem:[%s16068_s6 + $0xd0] sm:$0xff]   ;;  %v11507_v45 = vld [vmem:[%s16068_s6 + $0xd8] sm:$0xff]  }
 0x15b   :  { %11052 = vmatprep.subr.bf16.mxu0 %v12927_v41  ;;  %v11508_v47 = vld [vmem:[%s16068_s6 + $0xe0] sm:$0xff]   ;;  %v11509_v48 = vld [vmem:[%s16068_s6 + $0xe8] sm:$0xff]   ;;  %v11510_v49 = vld [vmem:[%s16068_s6 + $0xf0] sm:$0xff]  }
 0x15c   :  { %10963 = vmatpush3.bf16.msra.mxu1 %v11479_v52  ;;  %v11512_v52 = vld [vmem:[%s16068_s6 + $0x100] sm:$0xff]  }
 0x15d   :  { %10964 = vmatprep.subr.bf16.mxu1 %v11481_v53 }
 0x15e   :  { %11053 = vmatpush3.bf16.msra.mxu0 %v12927_v41 }
 0x15f   :  { %11078 = vmatprep.subr.bf16.mxu0 %v12862_v46 }
 0x160   :  { %10965 = vmatpush3.bf16.msra.mxu1 %v11481_v53 }
 0x161   :  { %11055 = vmatmul.mubr.bf16.vlgmr.msra.gmra.mrb[24].mxu0 %v11469_v50  ;;  %10966 = vmatprep.subr.bf16.mxu1 %v11482_v54  ;;  %v11511_v50 = vld [vmem:[%s16068_s6 + $0xf8] sm:$0xff]  }
 0x162   :  { %11079 = vmatpush3.bf16.msra.mxu0 %v12862_v46  ;;  %11094 = vmatprep.mubr.bf16.mxu0 %v11470_v51 }
 0x163   :  { %11080 = vmatprep.subr.bf16.mxu0 %v12859_v42 }
 0x164   :  { %10967 = vmatpush3.bf16.msra.mxu1 %v11482_v54 }
 0x165   :  { %10968 = vmatprep.subr.bf16.mxu1 %v11483_v55 }
 0x166   :  { %11081 = vmatpush3.bf16.msra.mxu0 %v12859_v42 }
 0x167   :  { %11082 = vmatprep.subr.bf16.mxu0 %v12886_v4 }
 0x168   :  { %10969 = vmatpush3.bf16.msra.mxu1 %v11483_v55 }
 0x169   :  { %10970 = vmatprep.subr.bf16.mxu1 %v11484_v56 }
 0x16a   :  { %11083 = vmatpush3.bf16.msra.mxu0 %v12886_v4 }
 0x16b   :  { %11084 = vmatprep.subr.bf16.mxu0 %v12881_v0 }
 0x16c   :  { %10971 = vmatpush3.bf16.msra.mxu1 %v11484_v56 }
 0x16d   :  { %10972 = vmatprep.subr.bf16.mxu1 %v11485_v57 }
 0x16e   :  { %11085 = vmatpush3.bf16.msra.mxu0 %v12881_v0 }
 0x16f   :  { %11086 = vmatprep.subr.bf16.mxu0 %v12910_v29 }
 0x170   :  { %10973 = vmatpush3.bf16.msra.mxu1 %v11485_v57 }
 0x171   :  { %10978 = vmatprep.subr.bf16.mxu1 %v13034_v58 }
 0x172   :  { %11087 = vmatpush3.bf16.msra.mxu0 %v12910_v29 }
 0x173   :  { %11088 = vmatprep.subr.bf16.mxu0 %v12905_v25 }
 0x176   :  { %11089 = vmatpush3.bf16.msra.mxu0 %v12905_v25 }
 0x177   :  { %11090 = vmatprep.subr.bf16.mxu0 %v12931_v43 }
 0x17a   :  { %11091 = vmatpush3.bf16.msra.mxu0 %v12931_v43 }
 0x17b   :  { %11092 = vmatprep.subr.bf16.mxu0 %v12927_v41 }
 0x17e   :  { %11093 = vmatpush3.bf16.msra.mxu0 %v12927_v41 }
 0x17f   :  { %11118 = vmatprep.subr.bf16.mxu0 %v12862_v46 }
 0x181   :  { %11095 = vmatmul.mubr.bf16.vlgmr.msra.gmra.mrb[28].mxu0 %v11471_v59  ;;  %v11514_v59 = vld [vmem:[%s16068_s6 + $0x110] sm:$0xff]  }
 0x182   :  { %11119 = vmatpush3.bf16.msra.mxu0 %v12862_v46  ;;  %11134 = vmatprep.mubr.bf16.mxu0 %v11472_v60  ;;  %v11515_v60 = vld [vmem:[%s16068_s6 + $0x118] sm:$0xff]  }
 0x183   :  { %11120 = vmatprep.subr.bf16.mxu0 %v12859_v42 }
 0x186   :  { %11121 = vmatpush3.bf16.msra.mxu0 %v12859_v42 }
 0x187   :  { %11122 = vmatprep.subr.bf16.mxu0 %v12886_v4 }
 0x18a   :  { %11123 = vmatpush3.bf16.msra.mxu0 %v12886_v4 }
 0x18b   :  { %11124 = vmatprep.subr.bf16.mxu0 %v12881_v0 }
 0x18e   :  { %11125 = vmatpush3.bf16.msra.mxu0 %v12881_v0 }
 0x18f   :  { %11126 = vmatprep.subr.bf16.mxu0 %v12910_v29 }
 0x192   :  { %11127 = vmatpush3.bf16.msra.mxu0 %v12910_v29 }
 0x193   :  { %11128 = vmatprep.subr.bf16.mxu0 %v12905_v25 }
 0x196   :  { %11129 = vmatpush3.bf16.msra.mxu0 %v12905_v25 }
 0x197   :  { %11130 = vmatprep.subr.bf16.mxu0 %v12931_v43 }
 0x19a   :  { %11131 = vmatpush3.bf16.msra.mxu0 %v12931_v43 }
 0x19b   :  { %11132 = vmatprep.subr.bf16.mxu0 %v12927_v41 }
 0x19e   :  { %11133 = vmatpush3.bf16.msra.mxu0 %v12927_v41 }
 0x19f   :  { %11158 = vmatprep.subr.bf16.mxu0 %v12862_v46 }
 0x1a1   :  { %11135 = vmatmul.mubr.bf16.vlgmr.msra.gmra.mrb[32].mxu0 %v11473_v61  ;;  %v11516_v61 = vld [vmem:[%s16068_s6 + $0x120] sm:$0xff]  }
 0x1a2   :  { %11159 = vmatpush3.bf16.msra.mxu0 %v12862_v46  ;;  %11174 = vmatprep.mubr.bf16.mxu0 %v11474_v62  ;;  %v11517_v62 = vld [vmem:[%s16068_s6 + $0x128] sm:$0xff]  }
 0x1a3   :  { %11160 = vmatprep.subr.bf16.mxu0 %v12859_v42 }
 0x1a6   :  { %11161 = vmatpush3.bf16.msra.mxu0 %v12859_v42 }
 0x1a7   :  { %11162 = vmatprep.subr.bf16.mxu0 %v12886_v4 }
 0x1aa   :  { %11163 = vmatpush3.bf16.msra.mxu0 %v12886_v4 }
 0x1ab   :  { %11164 = vmatprep.subr.bf16.mxu0 %v12881_v0 }
 0x1ae   :  { %11165 = vmatpush3.bf16.msra.mxu0 %v12881_v0 }
 0x1af   :  { %11166 = vmatprep.subr.bf16.mxu0 %v12910_v29 }
 0x1b2   :  { %11167 = vmatpush3.bf16.msra.mxu0 %v12910_v29 }
 0x1b3   :  { %11168 = vmatprep.subr.bf16.mxu0 %v12905_v25 }
 0x1b6   :  { %11169 = vmatpush3.bf16.msra.mxu0 %v12905_v25 }
 0x1b7   :  { %11170 = vmatprep.subr.bf16.mxu0 %v12931_v43 }
 0x1ba   :  { %11171 = vmatpush3.bf16.msra.mxu0 %v12931_v43 }
 0x1bb   :  { %11172 = vmatprep.subr.bf16.mxu0 %v12927_v41 }
 0x1be   :  { %11173 = vmatpush3.bf16.msra.mxu0 %v12927_v41 }
 0x1bf   :  { %11198 = vmatprep.subr.bf16.mxu0 %v12862_v46 }
 0x1c1   :  { %11175 = vmatmul.mubr.bf16.vlgmr.msra.gmra.mrb[36].mxu0 %v11475_v63  ;;  %v11518_v63 = vld [vmem:[%s16068_s6 + $0x130] sm:$0xff]  }
 0x1c2   :  { %11199 = vmatpush3.bf16.msra.mxu0 %v12862_v46  ;;  %11214 = vmatprep.mubr.bf16.mxu0 %v11478_v1  ;;  %v11519_v1 = vld [vmem:[%s16068_s6 + $0x138] sm:$0xff]  }
 0x1c3   :  { %11200 = vmatprep.subr.bf16.mxu0 %v12859_v42 }
 0x1c6   :  { %11201 = vmatpush3.bf16.msra.mxu0 %v12859_v42 }
 0x1c7   :  { %11202 = vmatprep.subr.bf16.mxu0 %v12886_v4 }
 0x1ca   :  { %11203 = vmatpush3.bf16.msra.mxu0 %v12886_v4 }
 0x1cb   :  { %11204 = vmatprep.subr.bf16.mxu0 %v12881_v0 }
 0x1ce   :  { %11205 = vmatpush3.bf16.msra.mxu0 %v12881_v0 }
 0x1cf   :  { %11206 = vmatprep.subr.bf16.mxu0 %v12910_v29 }
 0x1d2   :  { %11207 = vmatpush3.bf16.msra.mxu0 %v12910_v29 }
 0x1d3   :  { %11208 = vmatprep.subr.bf16.mxu0 %v12905_v25 }
 0x1d6   :  { %11209 = vmatpush3.bf16.msra.mxu0 %v12905_v25 }
 0x1d7   :  { %11210 = vmatprep.subr.bf16.mxu0 %v12931_v43 }
 0x1da   :  { %11211 = vmatpush3.bf16.msra.mxu0 %v12931_v43 }
 0x1db   :  { %11212 = vmatprep.subr.bf16.mxu0 %v12927_v41 }
 0x1de   :  { %11213 = vmatpush3.bf16.msra.mxu0 %v12927_v41 }
 0x1df   :  { %11238 = vmatprep.subr.bf16.mxu0 %v12862_v46 }
 0x1e1   :  { %11215 = vmatmul.mubr.bf16.vlgmr.msra.gmra.mrb[40].mxu0 %v11480_v2 }
 0x1e2   :  { %11239 = vmatpush3.bf16.msra.mxu0 %v12862_v46  ;;  %11254 = vmatprep.mubr.bf16.mxu0 %v11495_v3  ;;  %v11520_v3 = vld [vmem:[%s16068_s6 + $0x140] sm:$0xff]  }
 0x1e3   :  { %11240 = vmatprep.subr.bf16.mxu0 %v12859_v42 }
 0x1e6   :  { %11241 = vmatpush3.bf16.msra.mxu0 %v12859_v42 }
 0x1e7   :  { %11242 = vmatprep.subr.bf16.mxu0 %v12886_v4 }
 0x1ea   :  { %11243 = vmatpush3.bf16.msra.mxu0 %v12886_v4 }
 0x1eb   :  { %11244 = vmatprep.subr.bf16.mxu0 %v12881_v0 }
 0x1ee   :  { %11245 = vmatpush3.bf16.msra.mxu0 %v12881_v0 }
 0x1ef   :  { %11246 = vmatprep.subr.bf16.mxu0 %v12910_v29 }
 0x1f2   :  { %11247 = vmatpush3.bf16.msra.mxu0 %v12910_v29 }
 0x1f3   :  { %11248 = vmatprep.subr.bf16.mxu0 %v12905_v25 }
 0x1f4   :  { %v10956_v46 = vpop.f32.mrb[16].mxu0  ;;  %v10936_v5 = vpop.f32.mrb[0].mxu1 }
 0x1f5   :  { %v497_v6 = vpop.f32.mrb[17].mxu0  ;;  %v413_v7 = vpop.f32.mrb[1].mxu1 }
 0x1f6   :  { %v10957_v8 = vpop.f32.mrb[18].mxu0  ;;  %11249 = vmatpush3.bf16.msra.mxu0 %v12905_v25  ;;  %v10937_v42 = vpop.f32.mrb[2].mxu1  ;;  %v11494_v25 = vld [vmem:[%s16068_s6 + $0x80] sm:$0xff]  }
 0x1f7   :  { %v513_v9 = vpack.c.bf16 %v10957_v8, %v10956_v46  ;;  %v500_v4 = vpop.f32.mrb[19].mxu0  ;;  %11250 = vmatprep.subr.bf16.mxu0 %v12931_v43  ;;  %v429_v10 = vpack.c.bf16 %v10937_v42, %v10936_v5  ;;  %v416_v0 = vpop.f32.mrb[3].mxu1  ;;  %v11521_v42 = vld [vmem:[%s16068_s6 + $0x148] sm:$0xff]  }
 0x1f8   :  { %v512_v11 = vpack.c.bf16 %v500_v4, %v497_v6  ;;  %v428_v12 = vpack.c.bf16 %v416_v0, %v413_v7  ;;  %v11523_v4 = vld [vmem:[%s16068_s6 + $0x158] sm:$0xff]   ;;  %v11525_v0 = vld [vmem:[%s16068_s6 + $0x168] sm:$0xff]  }
 0x1fa   :  { %10974 = vmatprep.mubr.bf16.mxu1 %v512_v11  ;;  %11251 = vmatpush3.bf16.msra.mxu0 %v12931_v43  ;;  %v11526_v11 = vld [vmem:[%s16068_s6 + $0x170] sm:$0xff]  }
 0x1fb   :  { %10975 = vmatmul.mubr.bf16.vlgmr.msra.gmra.mrb[4].mxu1 %v513_v9  ;;  %11252 = vmatprep.subr.bf16.mxu0 %v12927_v41  ;;  %v11522_v9 = vld [vmem:[%s16068_s6 + $0x150] sm:$0xff]  }
 0x1fc   :  { %10979 = vmatpush3.bf16.msra.mxu1 %v13034_v58  ;;  %10994 = vmatprep.mubr.bf16.mxu1 %v428_v12  ;;  %v11513_v58 = vld [vmem:[%s16068_s6 + $0x108] sm:$0xff]   ;;  %v11527_v12 = vld [vmem:[%s16068_s6 + $0x178] sm:$0xff]  }
 0x1fd   :  { %10980 = vmatprep.subr.bf16.mxu1 %v11487_v13 }
 0x1fe   :  { %11253 = vmatpush3.bf16.msra.mxu0 %v12927_v41 }
 0x200   :  { %10981 = vmatpush3.bf16.msra.mxu1 %v11487_v13 }
 0x201   :  { %10982 = vmatprep.subr.bf16.mxu1 %v11488_v15  ;;  %11255 = vmatmul.mubr.bf16.vlgmr.msra.gmra.mrb[44].mxu0 %v11496_v17 }
 0x204   :  { %10983 = vmatpush3.bf16.msra.mxu1 %v11488_v15  ;;  %v11528_v15 = vld [vmem:[%s16068_s6 + $0x180] sm:$0xff]  }
 0x205   :  { %10984 = vmatprep.subr.bf16.mxu1 %v11489_v18 }
 0x208   :  { %10985 = vmatpush3.bf16.msra.mxu1 %v11489_v18 }
 0x209   :  { %10986 = vmatprep.subr.bf16.mxu1 %v11490_v19 }
 0x20c   :  { %10987 = vmatpush3.bf16.msra.mxu1 %v11490_v19 }
 0x20d   :  { %10988 = vmatprep.subr.bf16.mxu1 %v11491_v20 }
 0x210   :  { %10989 = vmatpush3.bf16.msra.mxu1 %v11491_v20 }
 0x211   :  { %10990 = vmatprep.subr.bf16.mxu1 %v11492_v21 }
 0x214   :  { %10991 = vmatpush3.bf16.msra.mxu1 %v11492_v21  ;;  %v11016_v23 = vpop.f32.mrb[20].mxu0 }
 0x215   :  { %10992 = vmatprep.subr.bf16.mxu1 %v11493_v22  ;;  %v776_v26 = vpop.f32.mrb[21].mxu0 }
 0x216   :  { %v11017_v27 = vpop.f32.mrb[22].mxu0 }
 0x217   :  { %v792_v28 = vpack.c.bf16 %v11017_v27, %v11016_v23  ;;  %v779_v29 = vpop.f32.mrb[23].mxu0  ;;  %v11530_v23 = vld [vmem:[%s16068_s6 + $0x190] sm:$0xff]   ;;  %v11533_v27 = vld [vmem:[%s16068_s6 + $0x1a8] sm:$0xff]  }
 0x218   :  { %10993 = vmatpush3.bf16.msra.mxu1 %v11493_v22  ;;  %v791_v30 = vpack.c.bf16 %v779_v29, %v776_v26  ;;  %v11529_v22 = vld [vmem:[%s16068_s6 + $0x188] sm:$0xff]   ;;  %v11532_v26 = vld [vmem:[%s16068_s6 + $0x1a0] sm:$0xff]   ;;  %v11535_v29 = vld [vmem:[%s16068_s6 + $0x1b8] sm:$0xff]  }
 0x219   :  { %11018 = vmatprep.subr.bf16.mxu1 %v11494_v25 }
 0x21b   :  { %10995 = vmatmul.mubr.bf16.vlgmr.msra.gmra.mrb[4].mxu1 %v429_v10  ;;  %v11524_v10 = vld [vmem:[%s16068_s6 + $0x160] sm:$0xff]  }
 0x21c   :  { %11019 = vmatpush3.bf16.msra.mxu1 %v11494_v25  ;;  %11034 = vmatprep.mubr.bf16.mxu1 %v791_v30  ;;  %v11531_v25 = vld [vmem:[%s16068_s6 + $0x198] sm:$0xff]  }
 0x21d   :  { %11020 = vmatprep.subr.bf16.mxu1 %v11497_v31 }
 0x220   :  { %11021 = vmatpush3.bf16.msra.mxu1 %v11497_v31  ;;  %v11536_v31 = vld [vmem:[%s16068_s6 + $0x1c0] sm:$0xff]  }
 0x221   :  { %11022 = vmatprep.subr.bf16.mxu1 %v11498_v32 }
 0x224   :  { %11023 = vmatpush3.bf16.msra.mxu1 %v11498_v32 }
 0x225   :  { %11024 = vmatprep.subr.bf16.mxu1 %v11499_v33 }
 0x228   :  { %11025 = vmatpush3.bf16.msra.mxu1 %v11499_v33 }
 0x229   :  { %11026 = vmatprep.subr.bf16.mxu1 %v11500_v34 }
 0x22c   :  { %11027 = vmatpush3.bf16.msra.mxu1 %v11500_v34 }
 0x22d   :  { %11028 = vmatprep.subr.bf16.mxu1 %v11501_v35 }
 0x230   :  { %11029 = vmatpush3.bf16.msra.mxu1 %v11501_v35 }
 0x231   :  { %11030 = vmatprep.subr.bf16.mxu1 %v11502_v36 }
 0x234   :  { %11031 = vmatpush3.bf16.msra.mxu1 %v11502_v36  ;;  %v11056_v14 = vpop.f32.mrb[24].mxu0 }
 0x235   :  { %11032 = vmatprep.subr.bf16.mxu1 %v11503_v37  ;;  %v962_v39 = vpop.f32.mrb[25].mxu0 }
 0x236   :  { %v11057_v40 = vpop.f32.mrb[26].mxu0 }
 0x237   :  { %v978_v41 = vpack.c.bf16 %v11057_v40, %v11056_v14  ;;  %v965_v43 = vpop.f32.mrb[27].mxu0  ;;  %v11538_v14 = vld [vmem:[%s16068_s6 + $0x1d0] sm:$0xff]   ;;  %v11541_v40 = vld [vmem:[%s16068_s6 + $0x1e8] sm:$0xff]  }
 0x238   :  { %11033 = vmatpush3.bf16.msra.mxu1 %v11503_v37  ;;  %v977_v16 = vpack.c.bf16 %v965_v43, %v962_v39  ;;  %v11537_v37 = vld [vmem:[%s16068_s6 + $0x1c8] sm:$0xff]   ;;  %v11540_v39 = vld [vmem:[%s16068_s6 + $0x1e0] sm:$0xff]   ;;  %v11543_v43 = vld [vmem:[%s16068_s6 + $0x1f8] sm:$0xff]  }
 0x239   :  { %11058 = vmatprep.subr.bf16.mxu1 %v11504_v38 }
 0x23b   :  { %11035 = vmatmul.mubr.bf16.vlgmr.msra.gmra.mrb[4].mxu1 %v792_v28  ;;  %v11534_v28 = vld [vmem:[%s16068_s6 + $0x1b0] sm:$0xff]  }
 0x23c   :  { %11059 = vmatpush3.bf16.msra.mxu1 %v11504_v38  ;;  %11074 = vmatprep.mubr.bf16.mxu1 %v977_v16  ;;  %v11539_v38 = vld [vmem:[%s16068_s6 + $0x1d8] sm:$0xff]  }
 0x23d   :  { %11060 = vmatprep.subr.bf16.mxu1 %v11505_v24 }
 0x240   :  { %11061 = vmatpush3.bf16.msra.mxu1 %v11505_v24  ;;  %v11544_v24 = vld [vmem:[%s16068_s6 + $0x200] sm:$0xff]  }
 0x241   :  { %11062 = vmatprep.subr.bf16.mxu1 %v11506_v44 }
 0x244   :  { %11063 = vmatpush3.bf16.msra.mxu1 %v11506_v44 }
 0x245   :  { %11064 = vmatprep.subr.bf16.mxu1 %v11507_v45 }
 0x248   :  { %11065 = vmatpush3.bf16.msra.mxu1 %v11507_v45 }
 0x249   :  { %11066 = vmatprep.subr.bf16.mxu1 %v11508_v47 }
 0x24c   :  { %11067 = vmatpush3.bf16.msra.mxu1 %v11508_v47 }
 0x24d   :  { %11068 = vmatprep.subr.bf16.mxu1 %v11509_v48 }
 0x250   :  { %11069 = vmatpush3.bf16.msra.mxu1 %v11509_v48 }
 0x251   :  { %11070 = vmatprep.subr.bf16.mxu1 %v11510_v49 }
 0x254   :  { %11071 = vmatpush3.bf16.msra.mxu1 %v11510_v49  ;;  %v11096_v51 = vpop.f32.mrb[28].mxu0 }
 0x255   :  { %11072 = vmatprep.subr.bf16.mxu1 %v11511_v50  ;;  %v1148_v53 = vpop.f32.mrb[29].mxu0 }
 0x256   :  { %v11097_v54 = vpop.f32.mrb[30].mxu0 }
 0x257   :  { %v1164_v55 = vpack.c.bf16 %v11097_v54, %v11096_v51  ;;  %v1151_v56 = vpop.f32.mrb[31].mxu0  ;;  %v11546_v51 = vld [vmem:[%s16068_s6 + $0x210] sm:$0xff]   ;;  %v11549_v54 = vld [vmem:[%s16068_s6 + $0x228] sm:$0xff]  }
 0x258   :  { %11073 = vmatpush3.bf16.msra.mxu1 %v11511_v50  ;;  %v1163_v57 = vpack.c.bf16 %v1151_v56, %v1148_v53  ;;  %v11545_v50 = vld [vmem:[%s16068_s6 + $0x208] sm:$0xff]   ;;  %v11548_v53 = vld [vmem:[%s16068_s6 + $0x220] sm:$0xff]   ;;  %v11551_v56 = vld [vmem:[%s16068_s6 + $0x238] sm:$0xff]  }
 0x259   :  { %11098 = vmatprep.subr.bf16.mxu1 %v11512_v52 }
 0x25b   :  { %11075 = vmatmul.mubr.bf16.vlgmr.msra.gmra.mrb[4].mxu1 %v978_v41  ;;  %v11542_v41 = vld [vmem:[%s16068_s6 + $0x1f0] sm:$0xff]  }
 0x25c   :  { %11099 = vmatpush3.bf16.msra.mxu1 %v11512_v52  ;;  %11114 = vmatprep.mubr.bf16.mxu1 %v1163_v57  ;;  %v11547_v52 = vld [vmem:[%s16068_s6 + $0x218] sm:$0xff]   ;;  %v12656_v57 = vmov 0.0  }
 0x25d   :  { %11100 = vmatprep.subr.bf16.mxu1 %v11513_v58  ;;  %11278 = vmatprep.subr.bf16.mxu0 %v12656_v57 }
 0x25e   :  { %11282 = vmatprep.mubr.msk.bf16.mxu0 %vm12657_vm1, %v12656_v57 }
 0x260   :  { %11101 = vmatpush3.bf16.msra.mxu1 %v11513_v58  ;;  %v9192_v58 = vld [vmem:[%s16069_s28] ss:$0 sm:$0xff] }
 0x261   :  { %11102 = vmatprep.subr.bf16.mxu1 %v11514_v59 }
 0x264   :  { %11103 = vmatpush3.bf16.msra.mxu1 %v11514_v59 }
 0x265   :  { %11104 = vmatprep.subr.bf16.mxu1 %v11515_v60 }
 0x268   :  { %11105 = vmatpush3.bf16.msra.mxu1 %v11515_v60 }
 0x269   :  { %11106 = vmatprep.subr.bf16.mxu1 %v11516_v61 }
 0x26c   :  { %11107 = vmatpush3.bf16.msra.mxu1 %v11516_v61 }
 0x26d   :  { %11108 = vmatprep.subr.bf16.mxu1 %v11517_v62 }
 0x270   :  { %11109 = vmatpush3.bf16.msra.mxu1 %v11517_v62  ;;  %v9193_v62 = vld [vmem:[%s16034_s8] ss:$0 sm:$0xff] }
 0x271   :  { %11110 = vmatprep.subr.bf16.mxu1 %v11518_v63 }
 0x274   :  { %11111 = vmatpush3.bf16.msra.mxu1 %v11518_v63  ;;  %v11136_v2 = vpop.f32.mrb[32].mxu0 }
 0x275   :  { %11112 = vmatprep.subr.bf16.mxu1 %v11519_v1  ;;  %v1334_v46 = vpop.f32.mrb[33].mxu0 }
 0x276   :  { %v11137_v5 = vpop.f32.mrb[34].mxu0 }
 0x277   :  { %v1350_v6 = vpack.c.bf16 %v11137_v5, %v11136_v2  ;;  %v1337_v7 = vpop.f32.mrb[35].mxu0 }
 0x278   :  { %11113 = vmatpush3.bf16.msra.mxu1 %v11519_v1  ;;  %v1349_v8 = vpack.c.bf16 %v1337_v7, %v1334_v46 }
 0x279   :  { %11138 = vmatprep.subr.bf16.mxu1 %v11520_v3 }
 0x27b   :  { %11115 = vmatmul.mubr.bf16.vlgmr.msra.gmra.mrb[4].mxu1 %v1164_v55  ;;  %v11550_v55 = vld [vmem:[%s16068_s6 + $0x230] sm:$0xff]  }
 0x27c   :  { %11139 = vmatpush3.bf16.msra.mxu1 %v11520_v3  ;;  %11154 = vmatprep.mubr.bf16.mxu1 %v1349_v8 }
 0x27d   :  { %11140 = vmatprep.subr.bf16.mxu1 %v11521_v42 }
 0x280   :  { %11141 = vmatpush3.bf16.msra.mxu1 %v11521_v42  ;;  %v9194_v42 = vld [vmem:[%s16035_s9] ss:$0 sm:$0xff] }
 0x281   :  { %11142 = vmatprep.subr.bf16.mxu1 %v11522_v9 }
 0x284   :  { %11143 = vmatpush3.bf16.msra.mxu1 %v11522_v9 }
 0x285   :  { %11144 = vmatprep.subr.bf16.mxu1 %v11523_v4 }
 0x288   :  { %11145 = vmatpush3.bf16.msra.mxu1 %v11523_v4 }
 0x289   :  { %11146 = vmatprep.subr.bf16.mxu1 %v11524_v10 }
 0x28c   :  { %11147 = vmatpush3.bf16.msra.mxu1 %v11524_v10 }
 0x28d   :  { %11148 = vmatprep.subr.bf16.mxu1 %v11525_v0 }
 0x290   :  { %11149 = vmatpush3.bf16.msra.mxu1 %v11525_v0 }
 0x291   :  { %11150 = vmatprep.subr.bf16.mxu1 %v11526_v11 }
 0x294   :  { %11151 = vmatpush3.bf16.msra.mxu1 %v11526_v11  ;;  %v11176_v13 = vpop.f32.mrb[36].mxu0 }
 0x295   :  { %11152 = vmatprep.subr.bf16.mxu1 %v11527_v12  ;;  %v1520_v17 = vpop.f32.mrb[37].mxu0 }
 0x296   :  { %v11177_v18 = vpop.f32.mrb[38].mxu0 }
 0x297   :  { %v1536_v19 = vpack.c.bf16 %v11177_v18, %v11176_v13  ;;  %v1523_v20 = vpop.f32.mrb[39].mxu0 }
 0x298   :  { %11153 = vmatpush3.bf16.msra.mxu1 %v11527_v12  ;;  %v1535_v21 = vpack.c.bf16 %v1523_v20, %v1520_v17  ;;  %v2066_v20 = vld [vmem:[%s16036_s10] sm:$0xf] }
 0x299   :  { %11178 = vmatprep.subr.bf16.mxu1 %v11528_v15 }
 0x29b   :  { %11155 = vmatmul.mubr.bf16.vlgmr.msra.gmra.mrb[4].mxu1 %v1350_v6 }
 0x29c   :  { %11179 = vmatpush3.bf16.msra.mxu1 %v11528_v15  ;;  %11194 = vmatprep.mubr.bf16.mxu1 %v1535_v21  ;;  %v9246_v21 = vld [vmem:[%s16036_s10 + $0x8] sm:$0xf] }
 0x29d   :  { %11180 = vmatprep.subr.bf16.mxu1 %v11529_v22 }
 0x2a0   :  { %11181 = vmatpush3.bf16.msra.mxu1 %v11529_v22  ;;  %v11552_v22 = vld [vmem:[%s16037_s11 + $0x100] ss:$8 sps:$4 sm:$0xff]  }
 0x2a1   :  { %11182 = vmatprep.subr.bf16.mxu1 %v11530_v23 }
 0x2a4   :  { %11183 = vmatpush3.bf16.msra.mxu1 %v11530_v23  ;;  %v11557_v23 = vld [vmem:[%s16037_s11 + $0x114] ss:$8 sps:$4 sm:$0xff]  }
 0x2a5   :  { %11184 = vmatprep.subr.bf16.mxu1 %v11531_v25 }
 0x2a8   :  { %11185 = vmatpush3.bf16.msra.mxu1 %v11531_v25  ;;  %v11555_v25 = vld [vmem:[%s16037_s11 + $0x110] ss:$8 sps:$4 sm:$0xff]  }
 0x2a9   :  { %11186 = vmatprep.subr.bf16.mxu1 %v11532_v26 }
 0x2ac   :  { %11187 = vmatpush3.bf16.msra.mxu1 %v11532_v26  ;;  %v11560_v26 = vld [vmem:[%s16037_s11 + $0x84] ss:$8 sps:$4 sm:$0xff]  }
 0x2ad   :  { %11188 = vmatprep.subr.bf16.mxu1 %v11533_v27 }
 0x2b0   :  { %11189 = vmatpush3.bf16.msra.mxu1 %v11533_v27  ;;  %v11563_v27 = vld [vmem:[%s16037_s11 + $0x124] ss:$8 sps:$4 sm:$0xff]  }
 0x2b1   :  { %11190 = vmatprep.subr.bf16.mxu1 %v11534_v28 }
 0x2b4   :  { %11191 = vmatpush3.bf16.msra.mxu1 %v11534_v28  ;;  %v11216_v30 = vpop.f32.mrb[40].mxu0  ;;  %v9196_v28 = vld [vmem:[%s16036_s10 + $0x4] sm:$0xf] }
 0x2b5   :  { %11192 = vmatprep.subr.bf16.mxu1 %v11535_v29  ;;  %v1706_v32 = vpop.f32.mrb[41].mxu0 }
 0x2b6   :  { %v11217_v33 = vpop.f32.mrb[42].mxu0 }
 0x2b7   :  { %v1722_v34 = vpack.c.bf16 %v11217_v33, %v11216_v30  ;;  %v1709_v35 = vpop.f32.mrb[43].mxu0  ;;  %v11561_v30 = vld [vmem:[%s16037_s11 + $0x120] ss:$8 sps:$4 sm:$0xff]   ;;  %v11564_v33 = vld [vmem:[%s16037_s11 + $0x90] ss:$8 sps:$4 sm:$0xff]  }
 0x2b8   :  { %11193 = vmatpush3.bf16.msra.mxu1 %v11535_v29  ;;  %v1721_v36 = vpack.c.bf16 %v1709_v35, %v1706_v32  ;;  %v11558_v29 = vld [vmem:[%s16037_s11 + $0x80] ss:$8 sps:$4 sm:$0xff]   ;;  %v11569_v32 = vld [vmem:[%s16037_s11 + $0x134] ss:$8 sps:$4 sm:$0xff]   ;;  %v11572_v35 = vld [vmem:[%s16037_s11 + $0xa4] ss:$8 sps:$4 sm:$0xff]  }
 0x2b9   :  { %11218 = vmatprep.subr.bf16.mxu1 %v11536_v31 }
 0x2bb   :  { %11195 = vmatmul.mubr.bf16.vlgmr.msra.gmra.mrb[4].mxu1 %v1536_v19  ;;  %v11554_v19 = vld [vmem:[%s16037_s11 + $0x104] ss:$8 sps:$4 sm:$0xff]  }
 0x2bc   :  { %11219 = vmatpush3.bf16.msra.mxu1 %v11536_v31  ;;  %11234 = vmatprep.mubr.bf16.mxu1 %v1721_v36  ;;  %v11566_v31 = vld [vmem:[%s16037_s11 + $0x94] ss:$8 sps:$4 sm:$0xff]   ;;  %v11575_v36 = vld [vmem:[%s16037_s11 + $0x144] ss:$8 sps:$4 sm:$0xff]  }
 0x2bd   :  { %11220 = vmatprep.subr.bf16.mxu1 %v11537_v37 }
 0x2c0   :  { %11221 = vmatpush3.bf16.msra.mxu1 %v11537_v37  ;;  %v11570_v37 = vld [vmem:[%s16037_s11 + $0xa0] ss:$8 sps:$4 sm:$0xff]  }
 0x2c1   :  { %11222 = vmatprep.subr.bf16.mxu1 %v11538_v14 }
 0x2c4   :  { %11223 = vmatpush3.bf16.msra.mxu1 %v11538_v14  ;;  %v11573_v14 = vld [vmem:[%s16037_s11 + $0x140] ss:$8 sps:$4 sm:$0xff]  }
 0x2c5   :  { %11224 = vmatprep.subr.bf16.mxu1 %v11539_v38 }
 0x2c8   :  { %11225 = vmatpush3.bf16.msra.mxu1 %v11539_v38  ;;  %v11578_v38 = vld [vmem:[%s16037_s11 + $0xb4] ss:$8 sps:$4 sm:$0xff]  }
 0x2c9   :  { %11226 = vmatprep.subr.bf16.mxu1 %v11540_v39 }
 0x2cc   :  { %11227 = vmatpush3.bf16.msra.mxu1 %v11540_v39  ;;  %v11581_v39 = vld [vmem:[%s16037_s11 + $0x154] ss:$8 sps:$4 sm:$0xff]  }
 0x2cd   :  { %11228 = vmatprep.subr.bf16.mxu1 %v11541_v40 }
 0x2d0   :  { %11229 = vmatpush3.bf16.msra.mxu1 %v11541_v40  ;;  %v11576_v40 = vld [vmem:[%s16037_s11 + $0xb0] ss:$8 sps:$4 sm:$0xff]  }
 0x2d1   :  { %11230 = vmatprep.subr.bf16.mxu1 %v11542_v41 }
 0x2d4   :  { %11231 = vmatpush3.bf16.msra.mxu1 %v11542_v41  ;;  %v11256_v16 = vpop.f32.mrb[44].mxu0  ;;  %v11579_v41 = vld [vmem:[%s16037_s11 + $0x150] ss:$8 sps:$4 sm:$0xff]  }
 0x2d5   :  { %11232 = vmatprep.subr.bf16.mxu1 %v11543_v43  ;;  %v1892_v44 = vpop.f32.mrb[45].mxu0 }
 0x2d6   :  { %v11257_v45 = vpop.f32.mrb[46].mxu0 }
 0x2d7   :  { %v1908_v47 = vpack.c.bf16 %v11257_v45, %v11256_v16  ;;  %v1895_v48 = vpop.f32.mrb[47].mxu0  ;;  %v11587_v16 = vld [vmem:[%s16037_s11 + $0x164] ss:$8 sps:$4 sm:$0xff]   ;;  %v11590_v45 = vld [vmem:[%s16037_s11 + $0xd4] ss:$8 sps:$4 sm:$0xff]  }
 0x2d8   :  { %11233 = vmatpush3.bf16.msra.mxu1 %v11543_v43  ;;  %v1907_v49 = vpack.c.bf16 %v1895_v48, %v1892_v44  ;;  %v11584_v43 = vld [vmem:[%s16037_s11 + $0xc4] ss:$8 sps:$4 sm:$0xff]   ;;  %v11585_v44 = vld [vmem:[%s16037_s11 + $0x160] ss:$8 sps:$4 sm:$0xff]   ;;  %v11588_v48 = vld [vmem:[%s16037_s11 + $0xd0] ss:$8 sps:$4 sm:$0xff]  }
 0x2d9   :  { %11258 = vmatprep.subr.bf16.mxu1 %v11544_v24 }
 0x2db   :  { %11235 = vmatmul.mubr.bf16.vlgmr.msra.gmra.mrb[4].mxu1 %v1722_v34  ;;  %v11567_v34 = vld [vmem:[%s16037_s11 + $0x130] ss:$8 sps:$4 sm:$0xff]  }
 0x2dc   :  { %11259 = vmatpush3.bf16.msra.mxu1 %v11544_v24  ;;  %11274 = vmatprep.mubr.bf16.mxu1 %v1907_v49  ;;  %v11582_v24 = vld [vmem:[%s16037_s11 + $0xc0] ss:$8 sps:$4 sm:$0xff]   ;;  %v11591_v49 = vld [vmem:[%s16037_s11 + $0x170] ss:$8 sps:$4 sm:$0xff]  }
 0x2dd   :  { %11260 = vmatprep.subr.bf16.mxu1 %v11545_v50 }
 0x2e0   :  { %11261 = vmatpush3.bf16.msra.mxu1 %v11545_v50  ;;  %v11596_v50 = vld [vmem:[%s16037_s11 + $0xe4] ss:$8 sps:$4 sm:$0xff]  }
 0x2e1   :  { %11262 = vmatprep.subr.bf16.mxu1 %v11546_v51 }
 0x2e4   :  { %11263 = vmatpush3.bf16.msra.mxu1 %v11546_v51  ;;  %v11594_v51 = vld [vmem:[%s16037_s11 + $0xe0] ss:$8 sps:$4 sm:$0xff]  }
 0x2e5   :  { %11264 = vmatprep.subr.bf16.mxu1 %v11547_v52 }
 0x2e8   :  { %11265 = vmatpush3.bf16.msra.mxu1 %v11547_v52  ;;  %v12658_v52 = vmov 0  }
 0x2e9   :  { %11266 = vmatprep.subr.bf16.mxu1 %v11548_v53 }
 0x2ec   :  { %11267 = vmatpush3.bf16.msra.mxu1 %v11548_v53  ;;  %v11597_v53 = vld [vmem:[%s16037_s11 + $0xf0] ss:$8 sps:$4 sm:$0xff]  }
 0x2ed   :  { %11268 = vmatprep.subr.bf16.mxu1 %v11549_v54 }
 0x2f0   :  { %11269 = vmatpush3.bf16.msra.mxu1 %v11549_v54  ;;  %v11599_v54 = vld [vmem:[%s16037_s11 + $0xf4] ss:$8 sps:$4 sm:$0xff]  }
 0x2f1   :  { %11270 = vmatprep.subr.bf16.mxu1 %v11550_v55 }
 0x2f4   :  { %11271 = vmatpush3.bf16.msra.mxu1 %v11550_v55  ;;  %v11602_v55 = vld [vmem:[%s16037_s11 + $0x4] ss:$8 sps:$4 sm:$0xff]  }
 0x2f5   :  { %11272 = vmatprep.subr.bf16.mxu1 %v11551_v56 }
 0x2f8   :  { %11273 = vmatpush3.bf16.msra.mxu1 %v11551_v56 }
 0x2f9   :  { %11294 = vmatprep.subr.bf16.mxu1 %v12656_v57 }
 0x2fb   :  { %11275 = vmatmul.mubr.bf16.vlgmr.msra.gmra.mrb[4].mxu1 %v1908_v47  ;;  %v11593_v47 = vld [vmem:[%s16037_s11 + $0x174] ss:$8 sps:$4 sm:$0xff]  }
 0x2fc   :  { %11298 = vmatprep.mubr.msk.bf16.mxu1 %vm12657_vm1, %v12656_v57 }
 0x3ce   :  { %v11276_v59 = vpop.f32.mrb[4].mxu1 }
 0x3cf   :  { %v2036_v60 = vadd.f32 %v11276_v59, %v9192_v58  ;;  %v2008_v61 = vpop.f32.mrb[5].mxu1 }
 0x3d0   :  { %v2034_v63 = vadd.f32 %v9192_v58, %v2008_v61  ;;  %v11277_v1 = vpop.f32.mrb[6].mxu1 }
 0x3d1   :  { %v2040_v2 = vmax.f32 %v2036_v60, 0.0  ;;  %v2037_v3 = vadd.f32 %v11277_v1, %v9192_v58  ;;  %v2011_v46 = vpop.f32.mrb[7].mxu1 }
 0x3d2   :  { %v2038_v5 = vmax.f32 %v2034_v63, 0.0  ;;  %v2035_v6 = vadd.f32 %v9192_v58, %v2011_v46 }
 0x3d3   :  { %v2051_v7 = vmul.f32 %v9193_v62, %v2040_v2  ;;  %v2041_v8 = vmax.f32 %v2037_v3, 0.0  ;;  %v11626_v3 = vld [vmem:[%s16037_s11 + $0x204] ss:$8 sps:$4 sm:$0xff]  }
 0x3d4   :  { %v2049_v9 = vmul.f32 %v9193_v62, %v2038_v5  ;;  %v2039_v4 = vmax.f32 %v2035_v6, 0.0  ;;  %v11600_v5 = vld [vmem:[%s16037_s11] ss:$8 sps:$4 sm:$0xff]   ;;  %v9314_v6 = vld [vmem:[%s16036_s10 + $0x10] sm:$0xf] }
 0x3d5   :  { %v2052_v10 = vmul.f32 %v9193_v62, %v2041_v8  ;;  %v2062_v11 = vadd.f32 %v9194_v42, %v2051_v7 }
 0x3d6   :  { %v2050_v0 = vmul.f32 %v9193_v62, %v2039_v4  ;;  %v2060_v13 = vadd.f32 %v9194_v42, %v2049_v9  ;;  %v11624_v9 = vld [vmem:[%s16037_s11 + $0x200] ss:$8 sps:$4 sm:$0xff]  }
 0x3d7   :  { %v2063_v12 = vadd.f32 %v9194_v42, %v2052_v10  ;;  %v11629_v10 = vld [vmem:[%s16037_s11 + $0x214] ss:$8 sps:$4 sm:$0xff]  }
 0x3d8   :  { %v2061_v15 = vadd.f32 %v9194_v42, %v2050_v0  ;;  %v11605_v42 = vld [vmem:[%s16037_s11 + $0x14] ss:$8 sps:$4 sm:$0xff]  }
 0x3d9   :  { %v13336_v17 = vpack.c.bf16 %v2063_v12, %v2062_v11  ;;  %v11603_v11 = vld [vmem:[%s16037_s11 + $0x10] ss:$8 sps:$4 sm:$0xff]   ;;  %v11608_v12 = vld [vmem:[%s16037_s11 + $0x24] ss:$8 sps:$4 sm:$0xff]  }
 0x3da   :  { %v13338_v18 = vpack.c.bf16 %v2061_v15, %v2060_v13  ;;  %v11627_v13 = vld [vmem:[%s16037_s11 + $0x210] ss:$8 sps:$4 sm:$0xff]   ;;  %v11632_v15 = vld [vmem:[%s16037_s11 + $0x224] ss:$8 sps:$4 sm:$0xff]  }
 0x3dc   :  { %11279 = vmatpush3.bf16.msra.mxu0 %v13338_v18  ;;  %11295 = vmatpush3.bf16.msra.mxu1 %v13338_v18 }
 0x3dd   :  { %11280 = vmatprep.subr.bf16.mxu0 %v12656_v57  ;;  %11296 = vmatprep.subr.bf16.mxu1 %v12656_v57 }
 0x3e0   :  { %11281 = vmatpush3.bf16.msra.mxu0 %v13336_v17  ;;  %11297 = vmatpush3.bf16.msra.mxu1 %v13336_v17 }
 0x3e1   :  { %11286 = vmatprep.subr.bf16.mxu0 %v12656_v57  ;;  %2576 = vmatprep.subr.bf16.mxu1 %v11554_v19  ;;  %v11606_v19 = vld [vmem:[%s16037_s11 + $0x20] ss:$8 sps:$4 sm:$0xff]  }
 0x3e3   :  { %11283 = vmatmul.mubr.msk.bf16.vlgmr.msra.gmra.mrb[48].mxu0 %vm2067_vm2, %v2066_v20  ;;  %11299 = vmatmul.mubr.msk.bf16.vlgmr.msra.gmra.mrb[8].mxu1 %vm2067_vm2, %v9246_v21  ;;  %v11611_v20 = vld [vmem:[%s16037_s11 + $0x34] ss:$8 sps:$4 sm:$0xff]   ;;  %v11630_v21 = vld [vmem:[%s16037_s11 + $0x220] ss:$8 sps:$4 sm:$0xff]  }
 0x3e4   :  { %11287 = vmatpush3.bf16.msra.mxu0 %v13338_v18  ;;  %11290 = vmatprep.mubr.msk.bf16.mxu0 %vm12657_vm1, %v12656_v57 }
 0x3e5   :  { %11288 = vmatprep.subr.bf16.mxu0 %v12656_v57  ;;  %2577 = vmatpush1.bf16.msra.mxu1 %v11552_v22  ;;  %v11635_v22 = vld [vmem:[%s16037_s11 + $0x234] ss:$8 sps:$4 sm:$0xff]  }
 0x3e6   :  { %2578 = vmatprep.subr.bf16.mxu1 %v11557_v23  ;;  %2608 = vmatprep.mubr.bf16.mxu1 %v12658_v52  ;;  %v11609_v23 = vld [vmem:[%s16037_s11 + $0x30] ss:$8 sps:$4 sm:$0xff]  }
 0x3e8   :  { %11289 = vmatpush3.bf16.msra.mxu0 %v13336_v17 }
 0x3e9   :  { %2579 = vmatpush1.bf16.msra.mxu1 %v11555_v25  ;;  %2271 = vmatprep.subr.bf16.mxu0 %v11560_v26  ;;  %v11614_v25 = vld [vmem:[%s16037_s11 + $0x44] ss:$8 sps:$4 sm:$0xff]   ;;  %v11633_v26 = vld [vmem:[%s16037_s11 + $0x230] ss:$8 sps:$4 sm:$0xff]  }
 0x3ea   :  { %2580 = vmatprep.subr.bf16.mxu1 %v11563_v27  ;;  %v11638_v27 = vld [vmem:[%s16037_s11 + $0x244] ss:$8 sps:$4 sm:$0xff]  }
 0x3eb   :  { %11291 = vmatmul.mubr.msk.bf16.vlgmr.msra.gmra.mrb[52].mxu0 %vm2067_vm2, %v9196_v28  ;;  %v11612_v28 = vld [vmem:[%s16037_s11 + $0x40] ss:$8 sps:$4 sm:$0xff]  }
 0x3ec   :  { %2272 = vmatpush1.bf16.msra.mxu0 %v11558_v29  ;;  %2303 = vmatprep.mubr.bf16.mxu0 %v12658_v52  ;;  %v11617_v29 = vld [vmem:[%s16037_s11 + $0x54] ss:$8 sps:$4 sm:$0xff]  }
 0x3ed   :  { %2581 = vmatpush1.bf16.msra.mxu1 %v11561_v30  ;;  %2273 = vmatprep.subr.bf16.mxu0 %v11566_v31  ;;  %v11636_v30 = vld [vmem:[%s16037_s11 + $0x240] ss:$8 sps:$4 sm:$0xff]   ;;  %v11641_v31 = vld [vmem:[%s16037_s11 + $0x254] ss:$8 sps:$4 sm:$0xff]  }
 0x3ee   :  { %2582 = vmatprep.subr.bf16.mxu1 %v11569_v32  ;;  %v11615_v32 = vld [vmem:[%s16037_s11 + $0x50] ss:$8 sps:$4 sm:$0xff]  }
 0x3f0   :  { %2274 = vmatpush1.bf16.msra.mxu0 %v11564_v33  ;;  %v11620_v33 = vld [vmem:[%s16037_s11 + $0x64] ss:$8 sps:$4 sm:$0xff]  }
 0x3f1   :  { %2583 = vmatpush1.bf16.msra.mxu1 %v11567_v34  ;;  %2275 = vmatprep.subr.bf16.mxu0 %v11572_v35  ;;  %v11639_v34 = vld [vmem:[%s16037_s11 + $0x250] ss:$8 sps:$4 sm:$0xff]   ;;  %v11644_v35 = vld [vmem:[%s16037_s11 + $0x264] ss:$8 sps:$4 sm:$0xff]  }
 0x3f2   :  { %2584 = vmatprep.subr.bf16.mxu1 %v11575_v36  ;;  %v11618_v36 = vld [vmem:[%s16037_s11 + $0x60] ss:$8 sps:$4 sm:$0xff]  }
 0x3f4   :  { %2276 = vmatpush1.bf16.msra.mxu0 %v11570_v37  ;;  %v11623_v37 = vld [vmem:[%s16037_s11 + $0x74] ss:$8 sps:$4 sm:$0xff]  }
 0x3f5   :  { %2585 = vmatpush1.bf16.msra.mxu1 %v11573_v14  ;;  %2277 = vmatprep.subr.bf16.mxu0 %v11578_v38  ;;  %v11642_v14 = vld [vmem:[%s16037_s11 + $0x260] ss:$8 sps:$4 sm:$0xff]   ;;  %v11621_v38 = vld [vmem:[%s16037_s11 + $0x70] ss:$8 sps:$4 sm:$0xff]  }
 0x3f6   :  { %2586 = vmatprep.subr.bf16.mxu1 %v11581_v39 }
 0x3f8   :  { %2278 = vmatpush1.bf16.msra.mxu0 %v11576_v40  ;;  %v9280_v40 = vld [vmem:[%s16036_s10 + $0xc] sm:$0xf] }
 0x3f9   :  { %2587 = vmatpush1.bf16.msra.mxu1 %v11579_v41  ;;  %2279 = vmatprep.subr.bf16.mxu0 %v11584_v43  ;;  %v11645_v41 = vld [vmem:[%s16037_s11 + $0x270] ss:$8 sps:$4 sm:$0xff]   ;;  %v11647_v43 = vld [vmem:[%s16037_s11 + $0x274] ss:$8 sps:$4 sm:$0xff]  }
 0x3fa   :  { %2588 = vmatprep.subr.bf16.mxu1 %v11587_v16  ;;  %v11648_v16 = vld [vmem:[%s16037_s11 + $0x180] ss:$8 sps:$4 sm:$0xff]  }
 0x3fc   :  { %2280 = vmatpush1.bf16.msra.mxu0 %v11582_v24  ;;  %v11650_v24 = vld [vmem:[%s16037_s11 + $0x184] ss:$8 sps:$4 sm:$0xff]  }
 0x3fd   :  { %2589 = vmatpush1.bf16.msra.mxu1 %v11585_v44  ;;  %2281 = vmatprep.subr.bf16.mxu0 %v11590_v45  ;;  %v11651_v44 = vld [vmem:[%s16037_s11 + $0x190] ss:$8 sps:$4 sm:$0xff]   ;;  %v11653_v45 = vld [vmem:[%s16037_s11 + $0x194] ss:$8 sps:$4 sm:$0xff]  }
 0x3fe   :  { %2590 = vmatprep.subr.bf16.mxu1 %v11593_v47  ;;  %v11656_v47 = vld [vmem:[%s16037_s11 + $0x1a4] ss:$8 sps:$4 sm:$0xff]  }
 0x400   :  { %2282 = vmatpush1.bf16.msra.mxu0 %v11588_v48  ;;  %v11654_v48 = vld [vmem:[%s16037_s11 + $0x1a0] ss:$8 sps:$4 sm:$0xff]  }
 0x401   :  { %2591 = vmatpush1.bf16.msra.mxu1 %v11591_v49  ;;  %2283 = vmatprep.subr.bf16.mxu0 %v11596_v50  ;;  %v11659_v49 = vld [vmem:[%s16037_s11 + $0x1b4] ss:$8 sps:$4 sm:$0xff]   ;;  %v11657_v50 = vld [vmem:[%s16037_s11 + $0x1b0] ss:$8 sps:$4 sm:$0xff]  }
 0x402   :  { %11310 = vmatprep.subr.bf16.mxu1 %v12656_v57 }
 0x404   :  { %2284 = vmatpush1.bf16.msra.mxu0 %v11594_v51  ;;  %v11662_v51 = vld [vmem:[%s16037_s11 + $0x1c4] ss:$8 sps:$4 sm:$0xff]  }
 0x405   :  { %2285 = vmatprep.subr.bf16.mxu0 %v11599_v54  ;;  %v11665_v54 = vld [vmem:[%s16037_s11 + $0x1d4] ss:$8 sps:$4 sm:$0xff]  }
 0x408   :  { %2286 = vmatpush1.bf16.msra.mxu0 %v11597_v53  ;;  %v11660_v53 = vld [vmem:[%s16037_s11 + $0x1c0] ss:$8 sps:$4 sm:$0xff]  }
 0x409   :  { %2392 = vmatprep.subr.bf16.mxu0 %v11602_v55  ;;  %v11663_v55 = vld [vmem:[%s16037_s11 + $0x1d0] ss:$8 sps:$4 sm:$0xff]  }
 0x4b6   :  { %v13466_v56 = vpop.f32.mrb[48].mxu0  ;;  %v2472_v58 = vpop.f32.mrb[8].mxu1 }
 0x4b7   :  { %v2478_v59 = vpack.c.bf16 %v2472_v58, %v2472_v58  ;;  %v11284_v60 = vpop.f32.mrb[49].mxu0  ;;  %v11300_v61 = vpop.f32.mrb[9].mxu1  ;;  %v2111_v39 = vpack.c.bf16 %v13466_v56, %v13466_v56  ;;  %v11668_v56 = vld [vmem:[%s16037_s11 + $0x1e4] ss:$8 sps:$4 sm:$0xff]   ;;  %v11666_v58 = vld [vmem:[%s16037_s11 + $0x1e0] ss:$8 sps:$4 sm:$0xff]  }
 0x4b8   :  { %v2108_v62 = vpop.f32.mrb[50].mxu0  ;;  %v2475_v63 = vpop.f32.mrb[10].mxu1  ;;  %v11671_v60 = vld [vmem:[%s16037_s11 + $0x1f4] ss:$8 sps:$4 sm:$0xff]  }
 0x4b9   :  { %v11285_v1 = vpop.f32.mrb[51].mxu0  ;;  %2609 = vmatmul.mubr.bf16.vlgmr.msra.gmra.mrb[12].mxu1 %v2478_v59  ;;  %v11301_v2 = vpop.f32.mrb[11].mxu1  ;;  %v11669_v59 = vld [vmem:[%s16037_s11 + $0x1f0] ss:$8 sps:$4 sm:$0xff]  }
 0x4ba   :  { %11311 = vmatpush3.bf16.msra.mxu1 %v13338_v18  ;;  %11314 = vmatprep.mubr.msk.bf16.mxu1 %vm12657_vm1, %v12656_v57 }
 0x4bb   :  { %11312 = vmatprep.subr.bf16.mxu1 %v12656_v57 }
 0x4be   :  { %11313 = vmatpush3.bf16.msra.mxu1 %v13336_v17  ;;  %v2167_v46 = vpop.f32.mrb[52].mxu0 }
 0x4bf   :  { %v2173_v7 = vpack.c.bf16 %v2167_v46, %v2167_v46  ;;  %v11292_v8 = vpop.f32.mrb[53].mxu0  ;;  %2948 = vmatprep.subr.bf16.mxu1 %v11626_v3 }
 0x4c0   :  { %v2170_v4 = vpop.f32.mrb[54].mxu0 }
 0x4c1   :  { %v11293_v0 = vpop.f32.mrb[55].mxu0  ;;  %2304 = vmatmul.mubr.bf16.vlgmr.msra.gmra.mrb[56].mxu0 %v2173_v7  ;;  %11315 = vmatmul.mubr.msk.bf16.vlgmr.msra.gmra.mrb[16].mxu1 %vm2067_vm2, %v9314_v6  ;;  %v11674_v4 = vld [vmem:[%s16037_s11 + $0x304] ss:$8 sps:$4 sm:$0xff]  }
 0x4c2   :  { %2393 = vmatpush1.bf16.msra.mxu0 %v11600_v5  ;;  %2424 = vmatprep.mubr.bf16.mxu0 %v12658_v52  ;;  %v11672_v0 = vld [vmem:[%s16037_s11 + $0x300] ss:$8 sps:$4 sm:$0xff]  }
 0x4c3   :  { %2394 = vmatprep.subr.bf16.mxu0 %v11605_v42  ;;  %2949 = vmatpush1.bf16.msra.mxu1 %v11624_v9 }
 0x4c4   :  { %2950 = vmatprep.subr.bf16.mxu1 %v11629_v10  ;;  %2980 = vmatprep.mubr.bf16.mxu1 %v12658_v52  ;;  %v9382_v10 = vld [vmem:[%s16036_s10 + $0x18] sm:$0xf] }
 0x4c6   :  { %2395 = vmatpush1.bf16.msra.mxu0 %v11603_v11  ;;  %v11677_v11 = vld [vmem:[%s16037_s11 + $0x314] ss:$8 sps:$4 sm:$0xff]  }
 0x4c7   :  { %2396 = vmatprep.subr.bf16.mxu0 %v11608_v12  ;;  %2951 = vmatpush1.bf16.msra.mxu1 %v11627_v13  ;;  %v11675_v12 = vld [vmem:[%s16037_s11 + $0x310] ss:$8 sps:$4 sm:$0xff]   ;;  %v11680_v13 = vld [vmem:[%s16037_s11 + $0x324] ss:$8 sps:$4 sm:$0xff]  }
 0x4c8   :  { %2952 = vmatprep.subr.bf16.mxu1 %v11632_v15  ;;  %v11678_v15 = vld [vmem:[%s16037_s11 + $0x320] ss:$8 sps:$4 sm:$0xff]  }
 0x4ca   :  { %2397 = vmatpush1.bf16.msra.mxu0 %v11606_v19  ;;  %v11683_v19 = vld [vmem:[%s16037_s11 + $0x334] ss:$8 sps:$4 sm:$0xff]  }
 0x4cb   :  { %2398 = vmatprep.subr.bf16.mxu0 %v11611_v20  ;;  %2953 = vmatpush1.bf16.msra.mxu1 %v11630_v21  ;;  %v11681_v20 = vld [vmem:[%s16037_s11 + $0x330] ss:$8 sps:$4 sm:$0xff]   ;;  %v11686_v21 = vld [vmem:[%s16037_s11 + $0x344] ss:$8 sps:$4 sm:$0xff]  }
 0x4cc   :  { %2954 = vmatprep.subr.bf16.mxu1 %v11635_v22  ;;  %v11684_v22 = vld [vmem:[%s16037_s11 + $0x340] ss:$8 sps:$4 sm:$0xff]  }
 0x4ce   :  { %2399 = vmatpush1.bf16.msra.mxu0 %v11609_v23  ;;  %v11689_v23 = vld [vmem:[%s16037_s11 + $0x354] ss:$8 sps:$4 sm:$0xff]  }
 0x4cf   :  { %2400 = vmatprep.subr.bf16.mxu0 %v11614_v25  ;;  %2955 = vmatpush1.bf16.msra.mxu1 %v11633_v26  ;;  %v11687_v25 = vld [vmem:[%s16037_s11 + $0x350] ss:$8 sps:$4 sm:$0xff]   ;;  %v11692_v26 = vld [vmem:[%s16037_s11 + $0x364] ss:$8 sps:$4 sm:$0xff]  }
 0x4d0   :  { %2956 = vmatprep.subr.bf16.mxu1 %v11638_v27 }
 0x4d2   :  { %2401 = vmatpush1.bf16.msra.mxu0 %v11612_v28  ;;  %v11690_v28 = vld [vmem:[%s16037_s11 + $0x360] ss:$8 sps:$4 sm:$0xff]  }
 0x4d3   :  { %2402 = vmatprep.subr.bf16.mxu0 %v11617_v29  ;;  %2957 = vmatpush1.bf16.msra.mxu1 %v11636_v30 }
 0x4d4   :  { %2958 = vmatprep.subr.bf16.mxu1 %v11641_v31 }
 0x4d6   :  { %2403 = vmatpush1.bf16.msra.mxu0 %v11615_v32 }
 0x4d7   :  { %2404 = vmatprep.subr.bf16.mxu0 %v11620_v33  ;;  %2959 = vmatpush1.bf16.msra.mxu1 %v11639_v34 }
 0x4d8   :  { %2960 = vmatprep.subr.bf16.mxu1 %v11644_v35 }
 0x4da   :  { %2405 = vmatpush1.bf16.msra.mxu0 %v11618_v36 }
 0x4db   :  { %2406 = vmatprep.subr.bf16.mxu0 %v11623_v37  ;;  %2961 = vmatpush1.bf16.msra.mxu1 %v11642_v14 }
 0x4dc   :  { %2962 = vmatprep.subr.bf16.mxu1 %v11647_v43  ;;  %v11695_v43 = vld [vmem:[%s16037_s11 + $0x374] ss:$8 sps:$4 sm:$0xff]  }
 0x4de   :  { %2407 = vmatpush1.bf16.msra.mxu0 %v11621_v38 }
 0x4df   :  { %11302 = vmatprep.subr.bf16.mxu0 %v12656_v57  ;;  %2963 = vmatpush1.bf16.msra.mxu1 %v11645_v41  ;;  %v11693_v41 = vld [vmem:[%s16037_s11 + $0x370] ss:$8 sps:$4 sm:$0xff]  }
 0x4e0   :  { %11326 = vmatprep.subr.bf16.mxu1 %v12656_v57 }
 0x4e1   :  { %2425 = vmatmul.mubr.bf16.vlgmr.msra.gmra.mrb[60].mxu0 %v2111_v39 }
 0x4e2   :  { %11303 = vmatpush3.bf16.msra.mxu0 %v13338_v18  ;;  %11306 = vmatprep.mubr.msk.bf16.mxu0 %vm12657_vm1, %v12656_v57 }
 0x4e3   :  { %11304 = vmatprep.subr.bf16.mxu0 %v12656_v57 }
 0x4e6   :  { %11305 = vmatpush3.bf16.msra.mxu0 %v13336_v17 }
 0x4e7   :  { %2762 = vmatprep.subr.bf16.mxu0 %v11650_v24  ;;  %v11698_v24 = vld [vmem:[%s16037_s11 + $0x284] ss:$8 sps:$4 sm:$0xff]  }
 0x4e9   :  { %11307 = vmatmul.mubr.msk.bf16.vlgmr.msra.gmra.mrb[64].mxu0 %vm2067_vm2, %v9280_v40  ;;  %v9348_v40 = vld [vmem:[%s16036_s10 + $0x14] sm:$0xf] }
 0x4ea   :  { %2794 = vmatprep.mubr.bf16.mxu0 %v12658_v52  ;;  %2763 = vmatpush1.bf16.msra.mxu0 %v11648_v16  ;;  %v11696_v16 = vld [vmem:[%s16037_s11 + $0x280] ss:$8 sps:$4 sm:$0xff]  }
 0x4eb   :  { %2764 = vmatprep.subr.bf16.mxu0 %v11653_v45  ;;  %v11699_v45 = vld [vmem:[%s16037_s11 + $0x290] ss:$8 sps:$4 sm:$0xff]  }
 0x4ee   :  { %2765 = vmatpush1.bf16.msra.mxu0 %v11651_v44  ;;  %v11701_v44 = vld [vmem:[%s16037_s11 + $0x294] ss:$8 sps:$4 sm:$0xff]  }
 0x4ef   :  { %2766 = vmatprep.subr.bf16.mxu0 %v11656_v47  ;;  %v11704_v47 = vld [vmem:[%s16037_s11 + $0x2a4] ss:$8 sps:$4 sm:$0xff]  }
 0x4f2   :  { %2767 = vmatpush1.bf16.msra.mxu0 %v11654_v48  ;;  %v11702_v48 = vld [vmem:[%s16037_s11 + $0x2a0] ss:$8 sps:$4 sm:$0xff]  }
 0x4f3   :  { %2768 = vmatprep.subr.bf16.mxu0 %v11659_v49  ;;  %v11707_v49 = vld [vmem:[%s16037_s11 + $0x2b4] ss:$8 sps:$4 sm:$0xff]  }
 0x4f6   :  { %2769 = vmatpush1.bf16.msra.mxu0 %v11657_v50  ;;  %v11705_v50 = vld [vmem:[%s16037_s11 + $0x2b0] ss:$8 sps:$4 sm:$0xff]  }
 0x4f7   :  { %2770 = vmatprep.subr.bf16.mxu0 %v11662_v51  ;;  %v11710_v51 = vld [vmem:[%s16037_s11 + $0x2c4] ss:$8 sps:$4 sm:$0xff]  }
 0x4fa   :  { %2771 = vmatpush1.bf16.msra.mxu0 %v11660_v53  ;;  %v11708_v53 = vld [vmem:[%s16037_s11 + $0x2c0] ss:$8 sps:$4 sm:$0xff]  }
 0x4fb   :  { %2772 = vmatprep.subr.bf16.mxu0 %v11665_v54  ;;  %v11713_v54 = vld [vmem:[%s16037_s11 + $0x2d4] ss:$8 sps:$4 sm:$0xff]  }
 0x4fe   :  { %2773 = vmatpush1.bf16.msra.mxu0 %v11663_v55  ;;  %v11711_v55 = vld [vmem:[%s16037_s11 + $0x2d0] ss:$8 sps:$4 sm:$0xff]  }
 0x4ff   :  { %2774 = vmatprep.subr.bf16.mxu0 %v11668_v56  ;;  %v11716_v56 = vld [vmem:[%s16037_s11 + $0x2e4] ss:$8 sps:$4 sm:$0xff]  }
 0x502   :  { %2775 = vmatpush1.bf16.msra.mxu0 %v11666_v58  ;;  %v11714_v58 = vld [vmem:[%s16037_s11 + $0x2e0] ss:$8 sps:$4 sm:$0xff]  }
 0x503   :  { %2776 = vmatprep.subr.bf16.mxu0 %v11671_v60  ;;  %v11717_v60 = vld [vmem:[%s16037_s11 + $0x2f0] ss:$8 sps:$4 sm:$0xff]  }
 0x506   :  { %2777 = vmatpush1.bf16.msra.mxu0 %v11669_v59  ;;  %v11719_v59 = vld [vmem:[%s16037_s11 + $0x2f4] ss:$8 sps:$4 sm:$0xff]  }
 0x507   :  { %11318 = vmatprep.subr.bf16.mxu0 %v12656_v57 }
 0x58c   :  { %v2610_v61 = vpop.f32.mrb[12].mxu1 }
 0x58d   :  { %v2612_v62 = vpop.f32.mrb[13].mxu1 }
 0x58e   :  { %v2614_v63 = vpop.f32.mrb[14].mxu1 }
 0x58f   :  { %v2615_v1 = vpop.f32.mrb[15].mxu1 }
 0x594   :  { %v2305_v2 = vpop.f32.mrb[56].mxu0  ;;  %v2844_v3 = vpop.f32.mrb[16].mxu1 }
 0x595   :  { %v2850_v46 = vpack.c.bf16 %v2844_v3, %v2844_v3  ;;  %v2307_v5 = vpop.f32.mrb[57].mxu0  ;;  %v11316_v6 = vpop.f32.mrb[17].mxu1 }
 0x596   :  { %v2309_v7 = vpop.f32.mrb[58].mxu0  ;;  %v2847_v8 = vpop.f32.mrb[18].mxu1 }
 0x597   :  { %v2310_v42 = vpop.f32.mrb[59].mxu0  ;;  %2981 = vmatmul.mubr.bf16.vlgmr.msra.gmra.mrb[20].mxu1 %v2850_v46  ;;  %v11317_v9 = vpop.f32.mrb[19].mxu1  ;;  %v11722_v7 = vld [vmem:[%s16037_s11 + $0x404] ss:$8 sps:$4 sm:$0xff]   ;;  %v9450_v8 = vld [vmem:[%s16036_s10 + $0x20] sm:$0xf] }
 0x598   :  { %11327 = vmatpush3.bf16.msra.mxu1 %v13338_v18  ;;  %11330 = vmatprep.mubr.msk.bf16.mxu1 %vm12657_vm1, %v12656_v57  ;;  %v11720_v42 = vld [vmem:[%s16037_s11 + $0x400] ss:$8 sps:$4 sm:$0xff]   ;;  %v11728_v9 = vld [vmem:[%s16037_s11 + $0x414] ss:$8 sps:$4 sm:$0xff]  }
 0x599   :  { %11328 = vmatprep.subr.bf16.mxu1 %v12656_v57 }
 0x59c   :  { %11329 = vmatpush3.bf16.msra.mxu1 %v13336_v17 }
 0x59d   :  { %3320 = vmatprep.subr.bf16.mxu1 %v11674_v4  ;;  %v11726_v4 = vld [vmem:[%s16037_s11 + $0x410] ss:$8 sps:$4 sm:$0xff]  }
 0x59f   :  { %11331 = vmatmul.mubr.msk.bf16.vlgmr.msra.gmra.mrb[24].mxu1 %vm2067_vm2, %v9382_v10  ;;  %v11734_v10 = vld [vmem:[%s16037_s11 + $0x424] ss:$8 sps:$4 sm:$0xff]  }
 0x5a0   :  { %3321 = vmatpush1.bf16.msra.mxu1 %v11672_v0  ;;  %3352 = vmatprep.mubr.bf16.mxu1 %v12658_v52  ;;  %v11732_v0 = vld [vmem:[%s16037_s11 + $0x420] ss:$8 sps:$4 sm:$0xff]  }
 0x5a1   :  { %3322 = vmatprep.subr.bf16.mxu1 %v11677_v11  ;;  %v11740_v11 = vld [vmem:[%s16037_s11 + $0x434] ss:$8 sps:$4 sm:$0xff]  }
 0x5a4   :  { %3323 = vmatpush1.bf16.msra.mxu1 %v11675_v12  ;;  %v11738_v12 = vld [vmem:[%s16037_s11 + $0x430] ss:$8 sps:$4 sm:$0xff]  }
 0x5a5   :  { %3324 = vmatprep.subr.bf16.mxu1 %v11680_v13  ;;  %v11746_v13 = vld [vmem:[%s16037_s11 + $0x444] ss:$8 sps:$4 sm:$0xff]  }
 0x5a8   :  { %3325 = vmatpush1.bf16.msra.mxu1 %v11678_v15  ;;  %v11744_v15 = vld [vmem:[%s16037_s11 + $0x440] ss:$8 sps:$4 sm:$0xff]  }
 0x5a9   :  { %3326 = vmatprep.subr.bf16.mxu1 %v11683_v19  ;;  %v11752_v19 = vld [vmem:[%s16037_s11 + $0x454] ss:$8 sps:$4 sm:$0xff]  }
 0x5ac   :  { %3327 = vmatpush1.bf16.msra.mxu1 %v11681_v20  ;;  %v11750_v20 = vld [vmem:[%s16037_s11 + $0x450] ss:$8 sps:$4 sm:$0xff]  }
 0x5ad   :  { %3328 = vmatprep.subr.bf16.mxu1 %v11686_v21 }
 0x5b0   :  { %3329 = vmatpush1.bf16.msra.mxu1 %v11684_v22 }
 0x5b1   :  { %3330 = vmatprep.subr.bf16.mxu1 %v11689_v23 }
 0x5b4   :  { %v2426_v27 = vpop.f32.mrb[60].mxu0  ;;  %3331 = vmatpush1.bf16.msra.mxu1 %v11687_v25 }
 0x5b5   :  { %v2427_v29 = vadd.f32 %v2426_v27, %v2305_v2  ;;  %v2428_v30 = vpop.f32.mrb[61].mxu0  ;;  %3332 = vmatprep.subr.bf16.mxu1 %v11692_v26 }
 0x5b6   :  { %v2429_v31 = vadd.f32 %v2428_v30, %v2307_v5  ;;  %v2430_v32 = vpop.f32.mrb[62].mxu0 }
 0x5b7   :  { %v2431_v33 = vpop.f32.mrb[63].mxu0  ;;  %v13687_v34 = vadd.f32 %v2610_v61, %v2427_v29 }
 0x5b8   :  { %3333 = vmatpush1.bf16.msra.mxu1 %v11690_v28  ;;  %v13689_v35 = vadd.f32 %v2612_v62, %v2429_v31 }
 0x5b9   :  { %3334 = vmatprep.subr.bf16.mxu1 %v11695_v43  ;;  %v11747_v43 = vld [vmem:[%s16037_s11 + $0x3c0] ss:$8 sps:$4 sm:$0xff]  }
 0x5bc   :  { %v2658_v36 = vpop.f32.mrb[64].mxu0  ;;  %3335 = vmatpush1.bf16.msra.mxu1 %v11693_v41  ;;  %v11749_v41 = vld [vmem:[%s16037_s11 + $0x3c4] ss:$8 sps:$4 sm:$0xff]  }
 0x5bd   :  { %v2664_v37 = vpack.c.bf16 %v2658_v36, %v2658_v36  ;;  %v11308_v14 = vpop.f32.mrb[65].mxu0  ;;  %11342 = vmatprep.subr.bf16.mxu1 %v12656_v57 }
 0x5be   :  { %v2661_v38 = vpop.f32.mrb[66].mxu0  ;;  %v11737_v14 = vld [vmem:[%s16037_s11 + $0x3a4] ss:$8 sps:$4 sm:$0xff]  }
 0x5bf   :  { %v11309_v39 = vpop.f32.mrb[67].mxu0  ;;  %2795 = vmatmul.mubr.bf16.vlgmr.msra.gmra.mrb[68].mxu0 %v2664_v37  ;;  %v11723_v37 = vld [vmem:[%s16037_s11 + $0x380] ss:$8 sps:$4 sm:$0xff]  }
 0x5c0   :  { %11319 = vmatpush3.bf16.msra.mxu0 %v13338_v18  ;;  %11322 = vmatprep.mubr.msk.bf16.mxu0 %vm12657_vm1, %v12656_v57  ;;  %v11735_v38 = vld [vmem:[%s16037_s11 + $0x3a0] ss:$8 sps:$4 sm:$0xff]   ;;  %v11743_v39 = vld [vmem:[%s16037_s11 + $0x3b4] ss:$8 sps:$4 sm:$0xff]  }
 0x5c1   :  { %11320 = vmatprep.subr.bf16.mxu0 %v12656_v57 }
 0x5c4   :  { %11321 = vmatpush3.bf16.msra.mxu0 %v13336_v17 }
 0x5c5   :  { %3134 = vmatprep.subr.bf16.mxu0 %v11698_v24  ;;  %v11755_v24 = vld [vmem:[%s16037_s11 + $0x3d4] ss:$8 sps:$4 sm:$0xff]  }
 0x5c7   :  { %11323 = vmatmul.mubr.msk.bf16.vlgmr.msra.gmra.mrb[72].mxu0 %vm2067_vm2, %v9348_v40  ;;  %v11741_v40 = vld [vmem:[%s16037_s11 + $0x3b0] ss:$8 sps:$4 sm:$0xff]  }
 0x5c8   :  { %3166 = vmatprep.mubr.bf16.mxu0 %v12658_v52  ;;  %3135 = vmatpush1.bf16.msra.mxu0 %v11696_v16  ;;  %v11753_v16 = vld [vmem:[%s16037_s11 + $0x3d0] ss:$8 sps:$4 sm:$0xff]  }
 0x5c9   :  { %3136 = vmatprep.subr.bf16.mxu0 %v11701_v44  ;;  %v11758_v44 = vld [vmem:[%s16037_s11 + $0x464] ss:$8 sps:$4 sm:$0xff]  }
 0x5cc   :  { %3137 = vmatpush1.bf16.msra.mxu0 %v11699_v45  ;;  %v11756_v45 = vld [vmem:[%s16037_s11 + $0x460] ss:$8 sps:$4 sm:$0xff]  }
 0x5cd   :  { %3138 = vmatprep.subr.bf16.mxu0 %v11704_v47  ;;  %v11761_v47 = vld [vmem:[%s16037_s11 + $0x3e4] ss:$8 sps:$4 sm:$0xff]  }
 0x5d0   :  { %3139 = vmatpush1.bf16.msra.mxu0 %v11702_v48  ;;  %v11759_v48 = vld [vmem:[%s16037_s11 + $0x3e0] ss:$8 sps:$4 sm:$0xff]  }
 0x5d1   :  { %3140 = vmatprep.subr.bf16.mxu0 %v11707_v49  ;;  %v11764_v49 = vld [vmem:[%s16037_s11 + $0x474] ss:$8 sps:$4 sm:$0xff]  }
 0x5d4   :  { %3141 = vmatpush1.bf16.msra.mxu0 %v11705_v50  ;;  %v11762_v50 = vld [vmem:[%s16037_s11 + $0x470] ss:$8 sps:$4 sm:$0xff]  }
 0x5d5   :  { %3142 = vmatprep.subr.bf16.mxu0 %v11710_v51  ;;  %v11767_v51 = vld [vmem:[%s16037_s11 + $0x3f4] ss:$8 sps:$4 sm:$0xff]  }
 0x5d8   :  { %3143 = vmatpush1.bf16.msra.mxu0 %v11708_v53  ;;  %v11765_v53 = vld [vmem:[%s16037_s11 + $0x3f0] ss:$8 sps:$4 sm:$0xff]  }
 0x5d9   :  { %3144 = vmatprep.subr.bf16.mxu0 %v11713_v54 }
 0x5dc   :  { %3145 = vmatpush1.bf16.msra.mxu0 %v11711_v55 }
 0x5dd   :  { %3146 = vmatprep.subr.bf16.mxu0 %v11716_v56 }
 0x5e0   :  { %3147 = vmatpush1.bf16.msra.mxu0 %v11714_v58 }
 0x5e1   :  { %3148 = vmatprep.subr.bf16.mxu0 %v11719_v59 }
 0x5e4   :  { %3149 = vmatpush1.bf16.msra.mxu0 %v11717_v60 }
 0x5e5   :  { %11334 = vmatprep.subr.bf16.mxu0 %v12656_v57 }
 0x66a   :  { %v2982_v61 = vpop.f32.mrb[20].mxu1 }
 0x66b   :  { %v2984_v62 = vpop.f32.mrb[21].mxu1 }
 0x66c   :  { %v2986_v63 = vpop.f32.mrb[22].mxu1 }
 0x66d   :  { %v2987_v1 = vpop.f32.mrb[23].mxu1 }
 0x672   :  { %v3216_v2 = vpop.f32.mrb[24].mxu1 }
 0x673   :  { %v3222_v3 = vpack.c.bf16 %v3216_v2, %v3216_v2  ;;  %v11332_v46 = vpop.f32.mrb[25].mxu1 }
 0x674   :  { %v3219_v5 = vpop.f32.mrb[26].mxu1 }
 0x675   :  { %3353 = vmatmul.mubr.bf16.vlgmr.msra.gmra.mrb[28].mxu1 %v3222_v3  ;;  %v11333_v6 = vpop.f32.mrb[27].mxu1 }
 0x676   :  { %11343 = vmatpush3.bf16.msra.mxu1 %v13338_v18  ;;  %11346 = vmatprep.mubr.msk.bf16.mxu1 %vm12657_vm1, %v12656_v57 }
 0x677   :  { %11344 = vmatprep.subr.bf16.mxu1 %v12656_v57 }
 0x67a   :  { %11345 = vmatpush3.bf16.msra.mxu1 %v13336_v17 }
 0x67b   :  { %3692 = vmatprep.subr.bf16.mxu1 %v11722_v7 }
 0x67d   :  { %11347 = vmatmul.mubr.msk.bf16.vlgmr.msra.gmra.mrb[32].mxu1 %vm2067_vm2, %v9450_v8 }
 0x67e   :  { %3693 = vmatpush1.bf16.msra.mxu1 %v11720_v42  ;;  %3724 = vmatprep.mubr.bf16.mxu1 %v12658_v52 }
 0x67f   :  { %3694 = vmatprep.subr.bf16.mxu1 %v11728_v9 }
 0x682   :  { %3695 = vmatpush1.bf16.msra.mxu1 %v11726_v4 }
 0x683   :  { %3696 = vmatprep.subr.bf16.mxu1 %v11734_v10 }
 0x686   :  { %3697 = vmatpush1.bf16.msra.mxu1 %v11732_v0 }
 0x687   :  { %3698 = vmatprep.subr.bf16.mxu1 %v11740_v11  ;;  %v11768_v11 = vld [vmem:[%s16042_s16 + $0x200] ss:$16 sps:$4 sm:$0xff]  }
 0x68a   :  { %3699 = vmatpush1.bf16.msra.mxu1 %v11738_v12  ;;  %v11770_v12 = vld [vmem:[%s16042_s16 + $0x204] ss:$16 sps:$4 sm:$0xff]  }
 0x68b   :  { %3700 = vmatprep.subr.bf16.mxu1 %v11746_v13  ;;  %v11776_v13 = vld [vmem:[%s16042_s16 + $0x224] ss:$16 sps:$4 sm:$0xff]  }
 0x68e   :  { %3701 = vmatpush1.bf16.msra.mxu1 %v11744_v15  ;;  %v11774_v15 = vld [vmem:[%s16042_s16 + $0x220] ss:$16 sps:$4 sm:$0xff]  }
 0x68f   :  { %3702 = vmatprep.subr.bf16.mxu1 %v11752_v19  ;;  %v11782_v19 = vld [vmem:[%s16042_s16 + $0x244] ss:$16 sps:$4 sm:$0xff]  }
 0x692   :  { %v2796_v21 = vpop.f32.mrb[68].mxu0  ;;  %3703 = vmatpush1.bf16.msra.mxu1 %v11750_v20  ;;  %v11780_v20 = vld [vmem:[%s16042_s16 + $0x240] ss:$16 sps:$4 sm:$0xff]  }
 0x693   :  { %v2803_v22 = vadd.f32 %v2796_v21, %v13687_v34  ;;  %v2798_v23 = vpop.f32.mrb[69].mxu0  ;;  %v11725_v34 = vld [vmem:[%s16037_s11 + $0x384] ss:$8 sps:$4 sm:$0xff]   ;;  %3704 = vmatprep.subr.bf16.mxu1 %v11758_v44 }
 0x694   :  { %v2804_v25 = vadd.f32 %v2798_v23, %v13689_v35  ;;  %v2800_v26 = vpop.f32.mrb[70].mxu0  ;;  %v9416_v35 = vld [vmem:[%s16036_s10 + $0x1c] sm:$0xf]  ;;  %v11788_v21 = vld [vmem:[%s16042_s16 + $0x264] ss:$16 sps:$4 sm:$0xff]  }
 0x695   :  { %v2801_v27 = vpop.f32.mrb[71].mxu0  ;;  %v13805_v28 = vadd.f32 %v2982_v61, %v2803_v22  ;;  %v11786_v22 = vld [vmem:[%s16042_s16 + $0x260] ss:$16 sps:$4 sm:$0xff]   ;;  %v11794_v23 = vld [vmem:[%s16042_s16 + $0x284] ss:$16 sps:$4 sm:$0xff]  }
 0x696   :  { %v13807_v29 = vadd.f32 %v2984_v62, %v2804_v25  ;;  %3705 = vmatpush1.bf16.msra.mxu1 %v11756_v45  ;;  %v11792_v25 = vld [vmem:[%s16042_s16 + $0x280] ss:$16 sps:$4 sm:$0xff]   ;;  %v11800_v26 = vld [vmem:[%s16042_s16 + $0x2a4] ss:$16 sps:$4 sm:$0xff]  }
 0x697   :  { %3706 = vmatprep.subr.bf16.mxu1 %v11764_v49  ;;  %v11798_v27 = vld [vmem:[%s16042_s16 + $0x2a0] ss:$16 sps:$4 sm:$0xff]  }
 0x698   :  { %v3735_v45 = vld [vmem:[%s16038_s12] sm:$0x3] }
 0x69a   :  { %v3030_v30 = vpop.f32.mrb[72].mxu0  ;;  %3707 = vmatpush1.bf16.msra.mxu1 %v11762_v50 }
 0x69b   :  { %v3036_v31 = vpack.c.bf16 %v3030_v30, %v3030_v30  ;;  %v11324_v32 = vpop.f32.mrb[73].mxu0  ;;  %4333 = vmatprep.subr.bf16.mxu1 %v11770_v12  ;;  %v11812_v30 = vld [vmem:[%s16042_s16 + $0x2e4] ss:$16 sps:$4 sm:$0xff]   ;;  %v11773_v12 = vld [vmem:[%s16042_s16 + $0x20c] ss:$16 sps:$4 sm:$0xff]  }
 0x69c   :  { %v3033_v33 = vpop.f32.mrb[74].mxu0  ;;  %v11818_v32 = vld [vmem:[%s16042_s16 + $0x304] ss:$16 sps:$4 sm:$0xff]  }
 0x69d   :  { %v11325_v36 = vpop.f32.mrb[75].mxu0  ;;  %3167 = vmatmul.mubr.bf16.vlgmr.msra.gmra.mrb[76].mxu0 %v3036_v31  ;;  %v11810_v31 = vld [vmem:[%s16042_s16 + $0x2e0] ss:$16 sps:$4 sm:$0xff]  }
 0x69e   :  { %11335 = vmatpush3.bf16.msra.mxu0 %v13338_v18  ;;  %11338 = vmatprep.mubr.msk.bf16.mxu0 %vm12657_vm1, %v12656_v57  ;;  %v11731_v18 = vld [vmem:[%s16037_s11 + $0x394] ss:$8 sps:$4 sm:$0xff]   ;;  %v11816_v33 = vld [vmem:[%s16042_s16 + $0x300] ss:$16 sps:$4 sm:$0xff]  }
 0x69f   :  { %11336 = vmatprep.subr.bf16.mxu0 %v12656_v57  ;;  %v11824_v36 = vld [vmem:[%s16042_s16 + $0x324] ss:$16 sps:$4 sm:$0xff]  }
 0x6a2   :  { %11337 = vmatpush3.bf16.msra.mxu0 %v13336_v17  ;;  %v11729_v17 = vld [vmem:[%s16037_s11 + $0x390] ss:$8 sps:$4 sm:$0xff]  }
 0x6a3   :  { %3506 = vmatprep.subr.bf16.mxu0 %v11725_v34  ;;  %v11822_v34 = vld [vmem:[%s16042_s16 + $0x320] ss:$16 sps:$4 sm:$0xff]  }
 0x6a5   :  { %11339 = vmatmul.mubr.msk.bf16.vlgmr.msra.gmra.mrb[80].mxu0 %vm2067_vm2, %v9416_v35  ;;  %v11830_v35 = vld [vmem:[%s16042_s16 + $0x344] ss:$16 sps:$4 sm:$0xff]  }
 0x6a6   :  { %3507 = vmatpush1.bf16.msra.mxu0 %v11723_v37  ;;  %3538 = vmatprep.mubr.bf16.mxu0 %v12658_v52  ;;  %v11828_v37 = vld [vmem:[%s16042_s16 + $0x340] ss:$16 sps:$4 sm:$0xff]  }
 0x6a7   :  { %3508 = vmatprep.subr.bf16.mxu0 %v11731_v18  ;;  %v11836_v18 = vld [vmem:[%s16042_s16 + $0x364] ss:$16 sps:$4 sm:$0xff]  }
 0x6aa   :  { %3509 = vmatpush1.bf16.msra.mxu0 %v11729_v17  ;;  %v11834_v17 = vld [vmem:[%s16042_s16 + $0x360] ss:$16 sps:$4 sm:$0xff]  }
 0x6ab   :  { %3510 = vmatprep.subr.bf16.mxu0 %v11737_v14  ;;  %v11842_v14 = vld [vmem:[%s16042_s16 + $0x384] ss:$16 sps:$4 sm:$0xff]  }
 0x6ae   :  { %3511 = vmatpush1.bf16.msra.mxu0 %v11735_v38  ;;  %v11840_v38 = vld [vmem:[%s16042_s16 + $0x380] ss:$16 sps:$4 sm:$0xff]  }
 0x6af   :  { %3512 = vmatprep.subr.bf16.mxu0 %v11743_v39 }
 0x6b2   :  { %3513 = vmatpush1.bf16.msra.mxu0 %v11741_v40 }
 0x6b3   :  { %3514 = vmatprep.subr.bf16.mxu0 %v11749_v41 }
 0x6b6   :  { %3515 = vmatpush1.bf16.msra.mxu0 %v11747_v43 }
 0x6b7   :  { %3516 = vmatprep.subr.bf16.mxu0 %v11755_v24 }
 0x6ba   :  { %3517 = vmatpush1.bf16.msra.mxu0 %v11753_v16  ;;  %v3737_v16 = vlaneseq }
 0x6bb   :  { %3518 = vmatprep.subr.bf16.mxu0 %v11761_v47 }
 0x6bc   :  { %v13964_v24 = vshrl.u32 %v3737_v16, 7  ;;  %v11846_v16 = vld [vmem:[%s16042_s16 + $0x3a0] ss:$16 sps:$4 sm:$0xff]  }
 0x6be   :  { %3519 = vmatpush1.bf16.msra.mxu0 %v11759_v48  ;;  %v13967_v44 = vsub.s32 0, %v13964_v24  ;;  %v13973_v47 = vsub.s32 1, %v13964_v24 }
 0x6bf   :  { %3520 = vmatprep.subr.bf16.mxu0 %v11767_v51 }
 0x6c0   :  { %v3740_v50 = vrot.slane %v3735_v45, %v13967_v44 }
 0x6c2   :  { %3521 = vmatpush1.bf16.msra.mxu0 %v11765_v53  ;;  %v3751_v53 = vld [vmem:[%s16039_s13] sm:$0x3] }
 0x748   :  { %v3354_v54 = vpop.f32.mrb[28].mxu1 }
 0x749   :  { %v3356_v55 = vpop.f32.mrb[29].mxu1 }
 0x74a   :  { %v3358_v56 = vpop.f32.mrb[30].mxu1 }
 0x74b   :  { %v3359_v58 = vpop.f32.mrb[31].mxu1 }
 0x750   :  { %v3588_v59 = vpop.f32.mrb[32].mxu1 }
 0x751   :  { %v3594_v60 = vpack.c.bf16 %v3588_v59, %v3588_v59  ;;  %v11348_v61 = vpop.f32.mrb[33].mxu1 }
 0x752   :  { %v3591_v62 = vpop.f32.mrb[34].mxu1 }
 0x753   :  { %v11349_v63 = vpop.f32.mrb[35].mxu1  ;;  %3725 = vmatmul.mubr.bf16.vlgmr.msra.gmra.mrb[36].mxu1 %v3594_v60  ;;  %v3765_v60 = vld [vmem:[%s16040_s14] sm:$0x3] }
 0x754   :  { %4334 = vmatpush1.bf16.msra.mxu1 %v11768_v11  ;;  %v3756_v63 = vrot.slane %v3751_v53, %v13967_v44  ;;  %v3781_v11 = vld [vmem:[%s16041_s15] sm:$0x1] }
 0x755   :  { %4335 = vmatprep.subr.bf16.mxu1 %v11776_v13  ;;  %v9486_v13 = vld [vmem:[%s16041_s15 + $0x1] sm:$0x1] }
 0x758   :  { %4336 = vmatpush1.bf16.msra.mxu1 %v11774_v15  ;;  %v11771_v15 = vld [vmem:[%s16042_s16 + $0x208] ss:$16 sps:$4 sm:$0xff]  }
 0x759   :  { %4337 = vmatprep.subr.bf16.mxu1 %v11782_v19  ;;  %v11779_v19 = vld [vmem:[%s16042_s16 + $0x22c] ss:$16 sps:$4 sm:$0xff]  }
 0x75c   :  { %4338 = vmatpush1.bf16.msra.mxu1 %v11780_v20  ;;  %v11777_v20 = vld [vmem:[%s16042_s16 + $0x228] ss:$16 sps:$4 sm:$0xff]  }
 0x75d   :  { %4339 = vmatprep.subr.bf16.mxu1 %v11788_v21  ;;  %v11785_v21 = vld [vmem:[%s16042_s16 + $0x24c] ss:$16 sps:$4 sm:$0xff]  }
 0x760   :  { %4340 = vmatpush1.bf16.msra.mxu1 %v11786_v22  ;;  %v11783_v22 = vld [vmem:[%s16042_s16 + $0x248] ss:$16 sps:$4 sm:$0xff]  }
 0x761   :  { %4341 = vmatprep.subr.bf16.mxu1 %v11794_v23  ;;  %v11791_v23 = vld [vmem:[%s16042_s16 + $0x26c] ss:$16 sps:$4 sm:$0xff]  }
 0x764   :  { %4342 = vmatpush1.bf16.msra.mxu1 %v11792_v25  ;;  %v11789_v25 = vld [vmem:[%s16042_s16 + $0x268] ss:$16 sps:$4 sm:$0xff]  }
 0x765   :  { %4343 = vmatprep.subr.bf16.mxu1 %v11800_v26  ;;  %v11797_v26 = vld [vmem:[%s16042_s16 + $0x28c] ss:$16 sps:$4 sm:$0xff]  }
 0x768   :  { %4344 = vmatpush1.bf16.msra.mxu1 %v11798_v27  ;;  %v11795_v27 = vld [vmem:[%s16042_s16 + $0x288] ss:$16 sps:$4 sm:$0xff]  }
 0x770   :  { %v3168_v1 = vpop.f32.mrb[76].mxu0 }
 0x771   :  { %v3175_v2 = vadd.f32 %v3168_v1, %v13805_v28  ;;  %v3170_v3 = vpop.f32.mrb[77].mxu0  ;;  %v11806_v28 = vld [vmem:[%s16042_s16 + $0x2c4] ss:$16 sps:$4 sm:$0xff]  }
 0x772   :  { %v3176_v46 = vadd.f32 %v3170_v3, %v13807_v29  ;;  %v3172_v5 = vpop.f32.mrb[78].mxu0  ;;  %v11804_v29 = vld [vmem:[%s16042_s16 + $0x2c0] ss:$16 sps:$4 sm:$0xff]   ;;  %4345 = vmatprep.subr.bf16.mxu1 %v11806_v28  ;;  %v11803_v28 = vld [vmem:[%s16042_s16 + $0x2ac] ss:$16 sps:$4 sm:$0xff]  }
 0x773   :  { %v3173_v6 = vpop.f32.mrb[79].mxu0  ;;  %v13881_v7 = vadd.f32 %v3354_v54, %v3175_v2  ;;  %4346 = vmatpush1.bf16.msra.mxu1 %v11804_v29  ;;  %v3760_v2 = vrot.slane %v3751_v53, %v13973_v47  ;;  %v11801_v29 = vld [vmem:[%s16042_s16 + $0x2a8] ss:$16 sps:$4 sm:$0xff]   ;;  %v11860_v53 = vld [vmem:[%s16042_s16 + $0x3e4] ss:$16 sps:$4 sm:$0xff]  }
 0x774   :  { %v13883_v8 = vadd.f32 %v3356_v55, %v3176_v46  ;;  %4347 = vmatprep.subr.bf16.mxu1 %v11812_v30  ;;  %v3744_v55 = vrot.slane %v3735_v45, %v13973_v47  ;;  %v3770_v46 = vrot.slane %v3765_v60, %v13967_v44  ;;  %v3774_v6 = vrot.slane %v3765_v60, %v13973_v47  ;;  %v11809_v30 = vld [vmem:[%s16042_s16 + $0x2cc] ss:$16 sps:$4 sm:$0xff]   ;;  %v11849_v45 = vld [vmem:[%s16042_s16 + $0x3a8] ss:$16 sps:$4 sm:$0xff]  }
 0x777   :  { %4348 = vmatpush1.bf16.msra.mxu1 %v11810_v31  ;;  %v11807_v31 = vld [vmem:[%s16042_s16 + $0x2c8] ss:$16 sps:$4 sm:$0xff]  }
 0x778   :  { %v3402_v42 = vpop.f32.mrb[80].mxu0  ;;  %4349 = vmatprep.subr.bf16.mxu1 %v11818_v32  ;;  %v11815_v32 = vld [vmem:[%s16042_s16 + $0x2ec] ss:$16 sps:$4 sm:$0xff]  }
 0x779   :  { %v3408_v9 = vpack.c.bf16 %v3402_v42, %v3402_v42  ;;  %v11340_v4 = vpop.f32.mrb[81].mxu0 }
 0x77a   :  { %v3405_v10 = vpop.f32.mrb[82].mxu0 }
 0x77b   :  { %v11341_v0 = vpop.f32.mrb[83].mxu0  ;;  %3539 = vmatmul.mubr.bf16.vlgmr.msra.gmra.mrb[84].mxu0 %v3408_v9  ;;  %4350 = vmatpush1.bf16.msra.mxu1 %v11816_v33  ;;  %v11813_v33 = vld [vmem:[%s16042_s16 + $0x2e8] ss:$16 sps:$4 sm:$0xff]  }
 0x77c   :  { %3825 = vmatprep.mubr.bf16.mxu0 %v12658_v52  ;;  %4351 = vmatprep.subr.bf16.mxu1 %v11824_v36  ;;  %v11821_v36 = vld [vmem:[%s16042_s16 + $0x30c] ss:$16 sps:$4 sm:$0xff]  }
 0x77f   :  { %4352 = vmatpush1.bf16.msra.mxu1 %v11822_v34  ;;  %v11819_v34 = vld [vmem:[%s16042_s16 + $0x308] ss:$16 sps:$4 sm:$0xff]  }
 0x780   :  { %4353 = vmatprep.subr.bf16.mxu1 %v11830_v35  ;;  %v11827_v35 = vld [vmem:[%s16042_s16 + $0x32c] ss:$16 sps:$4 sm:$0xff]  }
 0x783   :  { %4354 = vmatpush1.bf16.msra.mxu1 %v11828_v37  ;;  %v11825_v37 = vld [vmem:[%s16042_s16 + $0x328] ss:$16 sps:$4 sm:$0xff]  }
 0x784   :  { %4355 = vmatprep.subr.bf16.mxu1 %v11836_v18  ;;  %v11833_v18 = vld [vmem:[%s16042_s16 + $0x34c] ss:$16 sps:$4 sm:$0xff]  }
 0x787   :  { %4356 = vmatpush1.bf16.msra.mxu1 %v11834_v17  ;;  %v11831_v17 = vld [vmem:[%s16042_s16 + $0x348] ss:$16 sps:$4 sm:$0xff]  }
 0x788   :  { %4357 = vmatprep.subr.bf16.mxu1 %v11842_v14  ;;  %v11839_v14 = vld [vmem:[%s16042_s16 + $0x36c] ss:$16 sps:$4 sm:$0xff]  }
 0x78b   :  { %4358 = vmatpush1.bf16.msra.mxu1 %v11840_v38  ;;  %v11837_v38 = vld [vmem:[%s16042_s16 + $0x368] ss:$16 sps:$4 sm:$0xff]  }
 0x826   :  { %v3726_v39 = vpop.f32.mrb[36].mxu1 }
 0x827   :  { %v3728_v40 = vpop.f32.mrb[37].mxu1 }
 0x828   :  { %v3730_v41 = vpop.f32.mrb[38].mxu1 }
 0x829   :  { %v3731_v43 = vpop.f32.mrb[39].mxu1  ;;  %v11848_v41 = vld [vmem:[%s16042_s16 + $0x3a4] ss:$16 sps:$4 sm:$0xff]  }
 0x82a   :  { %v11851_v43 = vld [vmem:[%s16042_s16 + $0x3ac] ss:$16 sps:$4 sm:$0xff]   ;;  %4359 = vmatprep.subr.bf16.mxu1 %v11848_v41  ;;  %v11912_v41 = vld [vmem:[%s16042_s16 + $0x100] ss:$16 sps:$4 sm:$0xff]  }
 0x82b   :  { %4360 = vmatpush1.bf16.msra.mxu1 %v11846_v16  ;;  %v11920_v16 = vld [vmem:[%s16042_s16 + $0x124] ss:$16 sps:$4 sm:$0xff]  }
 0x84e   :  { %v3540_v48 = vpop.f32.mrb[84].mxu0 }
 0x84f   :  { %v3547_v49 = vadd.f32 %v3540_v48, %v13881_v7  ;;  %v3542_v51 = vpop.f32.mrb[85].mxu0  ;;  %v11852_v48 = vld [vmem:[%s16042_s16 + $0x3c0] ss:$16 sps:$4 sm:$0xff]  }
 0x850   :  { %v3548_v54 = vadd.f32 %v3542_v51, %v13883_v8  ;;  %v3544_v56 = vpop.f32.mrb[86].mxu0  ;;  %v11857_v51 = vld [vmem:[%s16042_s16 + $0x3cc] ss:$16 sps:$4 sm:$0xff]  }
 0x851   :  { %v3733_v58 = vadd.f32 %v3726_v39, %v3547_v49  ;;  %v3545_v59 = vpop.f32.mrb[87].mxu0  ;;  %v11845_v39 = vld [vmem:[%s16042_s16 + $0x38c] ss:$16 sps:$4 sm:$0xff]   ;;  %v11854_v49 = vld [vmem:[%s16042_s16 + $0x3c4] ss:$16 sps:$4 sm:$0xff]  }
 0x852   :  { %v3734_v61 = vadd.f32 %v3728_v40, %v3548_v54  ;;  %v11843_v40 = vld [vmem:[%s16042_s16 + $0x388] ss:$16 sps:$4 sm:$0xff]   ;;  %4361 = vmatprep.subr.bf16.mxu1 %v11854_v49  ;;  %v11863_v54 = vld [vmem:[%s16042_s16 + $0x3ec] ss:$16 sps:$4 sm:$0xff]  }
 0x853   :  { %v3747_v62 = vadd.f32 %v3740_v50, %v3733_v58  ;;  %v11855_v50 = vld [vmem:[%s16042_s16 + $0x3c8] ss:$16 sps:$4 sm:$0xff]   ;;  %4362 = vmatpush1.bf16.msra.mxu1 %v11852_v48  ;;  %v11866_v58 = vld [vmem:[%s16042_s16 + $0x4] ss:$16 sps:$4 sm:$0xff]   ;;  %v11869_v59 = vld [vmem:[%s16042_s16 + $0xc] ss:$16 sps:$4 sm:$0xff]  }
 0x854   :  { %v3748_v1 = vadd.f32 %v3744_v55, %v3734_v61  ;;  %v11858_v55 = vld [vmem:[%s16042_s16 + $0x3e0] ss:$16 sps:$4 sm:$0xff]   ;;  %v11861_v56 = vld [vmem:[%s16042_s16 + $0x3e8] ss:$16 sps:$4 sm:$0xff]   ;;  %4363 = vmatprep.subr.bf16.mxu1 %v11860_v53 }
 0x855   :  { %v3749_v3 = vmax.f32 %v3747_v62, 0.0  ;;  %v11918_v48 = vld [vmem:[%s16042_s16 + $0x120] ss:$16 sps:$4 sm:$0xff]   ;;  %v11921_v49 = vld [vmem:[%s16042_s16 + $0x128] ss:$16 sps:$4 sm:$0xff]  }
 0x856   :  { %v3750_v5 = vmax.f32 %v3748_v1, 0.0  ;;  %v11924_v53 = vld [vmem:[%s16042_s16 + $0x140] ss:$16 sps:$4 sm:$0xff]  }
 0x857   :  { %v3763_v7 = vmul.f32 %v3756_v63, %v3749_v3  ;;  %4364 = vmatpush1.bf16.msra.mxu1 %v11858_v55  ;;  %v11932_v55 = vld [vmem:[%s16042_s16 + $0x164] ss:$16 sps:$4 sm:$0xff]  }
 0x858   :  { %v3764_v8 = vmul.f32 %v3760_v2, %v3750_v5  ;;  %4735 = vmatprep.subr.bf16.mxu1 %v11866_v58  ;;  %v11864_v5 = vld [vmem:[%s16042_s16] ss:$16 sps:$4 sm:$0xff]  }
 0x859   :  { %v3777_v42 = vadd.f32 %v3770_v46, %v3763_v7  ;;  %v11930_v58 = vld [vmem:[%s16042_s16 + $0x160] ss:$16 sps:$4 sm:$0xff]  }
 0x85a   :  { %v3778_v9 = vadd.f32 %v3774_v6, %v3764_v8  ;;  %v11867_v6 = vld [vmem:[%s16042_s16 + $0x8] ss:$16 sps:$4 sm:$0xff]  }
 0x85b   :  { %v3779_v4 = vpack.c.bf16 %v3777_v42, %v3777_v42  ;;  %v11872_v42 = vld [vmem:[%s16042_s16 + $0x24] ss:$16 sps:$4 sm:$0xff]  }
 0x85c   :  { %v13989_v10 = vpack.c.bf16 %v3778_v9, %v3778_v9  ;;  %v11875_v9 = vld [vmem:[%s16042_s16 + $0x2c] ss:$16 sps:$4 sm:$0xff]  }
 0x85d   :  { %v13992_v0 = vsel %vm3786_vm3, %v3779_v4, 0 }
 0x85e   :  { %9484 = vmatprep.subr.msk.bf16.mxu0 %vm3786_vm3, %v13989_v10 }
 0x85f   :  { %3794 = vmatpush1.bf16.msra.mxu0 %v13992_v0 }
 0x860   :  { %9487 = vmatprep.subr.msk.bf16.mxu0 %vm3786_vm3, %v13989_v10 }
 0x862   :  { %9485 = vmatmul.mubr.msk.bf16.vlgmr.msra.gmra.mrb[88].mxu0 %vm3782_vm4, %v3781_v11  ;;  %v11870_v11 = vld [vmem:[%s16042_s16 + $0x20] ss:$16 sps:$4 sm:$0xff]  }
 0x863   :  { %3906 = vmatpush1.bf16.msra.mxu0 %v13992_v0  ;;  %3937 = vmatprep.mubr.bf16.mxu0 %v12658_v52 }
 0x864   :  { %4374 = vmatprep.subr.bf16.mxu0 %v11773_v12  ;;  %v11873_v12 = vld [vmem:[%s16042_s16 + $0x28] ss:$16 sps:$4 sm:$0xff]  }
 0x86a   :  { %9488 = vmatmul.mubr.msk.bf16.vlgmr.msra.gmra.mrb[92].mxu0 %vm3782_vm4, %v9486_v13  ;;  %v11878_v13 = vld [vmem:[%s16042_s16 + $0x44] ss:$16 sps:$4 sm:$0xff]  }
 0x86b   :  { %4375 = vmatpush1.bf16.msra.mxu0 %v11771_v15  ;;  %v11881_v15 = vld [vmem:[%s16042_s16 + $0x4c] ss:$16 sps:$4 sm:$0xff]  }
 0x86c   :  { %4376 = vmatprep.subr.bf16.mxu0 %v11779_v19  ;;  %v11876_v19 = vld [vmem:[%s16042_s16 + $0x40] ss:$16 sps:$4 sm:$0xff]  }
 0x86f   :  { %4377 = vmatpush1.bf16.msra.mxu0 %v11777_v20  ;;  %v11879_v20 = vld [vmem:[%s16042_s16 + $0x48] ss:$16 sps:$4 sm:$0xff]  }
 0x870   :  { %4378 = vmatprep.subr.bf16.mxu0 %v11785_v21  ;;  %v11884_v21 = vld [vmem:[%s16042_s16 + $0x64] ss:$16 sps:$4 sm:$0xff]  }
 0x873   :  { %4379 = vmatpush1.bf16.msra.mxu0 %v11783_v22  ;;  %v11887_v22 = vld [vmem:[%s16042_s16 + $0x6c] ss:$16 sps:$4 sm:$0xff]  }
 0x874   :  { %4380 = vmatprep.subr.bf16.mxu0 %v11791_v23  ;;  %v11882_v23 = vld [vmem:[%s16042_s16 + $0x60] ss:$16 sps:$4 sm:$0xff]  }
 0x877   :  { %4381 = vmatpush1.bf16.msra.mxu0 %v11789_v25  ;;  %v11885_v25 = vld [vmem:[%s16042_s16 + $0x68] ss:$16 sps:$4 sm:$0xff]  }
 0x878   :  { %4382 = vmatprep.subr.bf16.mxu0 %v11797_v26  ;;  %v11890_v26 = vld [vmem:[%s16042_s16 + $0x84] ss:$16 sps:$4 sm:$0xff]  }
 0x87b   :  { %4383 = vmatpush1.bf16.msra.mxu0 %v11795_v27  ;;  %v11893_v27 = vld [vmem:[%s16042_s16 + $0x8c] ss:$16 sps:$4 sm:$0xff]  }
 0x87c   :  { %4384 = vmatprep.subr.bf16.mxu0 %v11803_v28  ;;  %v11888_v28 = vld [vmem:[%s16042_s16 + $0x80] ss:$16 sps:$4 sm:$0xff]  }
 0x87f   :  { %4385 = vmatpush1.bf16.msra.mxu0 %v11801_v29  ;;  %v11891_v29 = vld [vmem:[%s16042_s16 + $0x88] ss:$16 sps:$4 sm:$0xff]  }
 0x880   :  { %4386 = vmatprep.subr.bf16.mxu0 %v11809_v30  ;;  %v11896_v30 = vld [vmem:[%s16042_s16 + $0xa4] ss:$16 sps:$4 sm:$0xff]  }
 0x883   :  { %4387 = vmatpush1.bf16.msra.mxu0 %v11807_v31  ;;  %v11899_v31 = vld [vmem:[%s16042_s16 + $0xac] ss:$16 sps:$4 sm:$0xff]  }
 0x884   :  { %4388 = vmatprep.subr.bf16.mxu0 %v11815_v32  ;;  %v11894_v32 = vld [vmem:[%s16042_s16 + $0xa0] ss:$16 sps:$4 sm:$0xff]  }
 0x887   :  { %4389 = vmatpush1.bf16.msra.mxu0 %v11813_v33  ;;  %v11897_v33 = vld [vmem:[%s16042_s16 + $0xa8] ss:$16 sps:$4 sm:$0xff]  }
 0x888   :  { %4390 = vmatprep.subr.bf16.mxu0 %v11821_v36  ;;  %v11902_v36 = vld [vmem:[%s16042_s16 + $0xc4] ss:$16 sps:$4 sm:$0xff]  }
 0x88b   :  { %4391 = vmatpush1.bf16.msra.mxu0 %v11819_v34  ;;  %v11905_v34 = vld [vmem:[%s16042_s16 + $0xcc] ss:$16 sps:$4 sm:$0xff]  }
 0x88c   :  { %4392 = vmatprep.subr.bf16.mxu0 %v11827_v35  ;;  %v11900_v35 = vld [vmem:[%s16042_s16 + $0xc0] ss:$16 sps:$4 sm:$0xff]  }
 0x88f   :  { %4393 = vmatpush1.bf16.msra.mxu0 %v11825_v37  ;;  %v11903_v37 = vld [vmem:[%s16042_s16 + $0xc8] ss:$16 sps:$4 sm:$0xff]  }
 0x890   :  { %4394 = vmatprep.subr.bf16.mxu0 %v11833_v18  ;;  %v11908_v18 = vld [vmem:[%s16042_s16 + $0xe4] ss:$16 sps:$4 sm:$0xff]  }
 0x893   :  { %4395 = vmatpush1.bf16.msra.mxu0 %v11831_v17  ;;  %v11911_v17 = vld [vmem:[%s16042_s16 + $0xec] ss:$16 sps:$4 sm:$0xff]  }
 0x894   :  { %4396 = vmatprep.subr.bf16.mxu0 %v11839_v14  ;;  %v11906_v14 = vld [vmem:[%s16042_s16 + $0xe0] ss:$16 sps:$4 sm:$0xff]  }
 0x897   :  { %4397 = vmatpush1.bf16.msra.mxu0 %v11837_v38  ;;  %v11909_v38 = vld [vmem:[%s16042_s16 + $0xe8] ss:$16 sps:$4 sm:$0xff]  }
 0x898   :  { %4398 = vmatprep.subr.bf16.mxu0 %v11845_v39  ;;  %v11914_v39 = vld [vmem:[%s16042_s16 + $0x104] ss:$16 sps:$4 sm:$0xff]  }
 0x89b   :  { %4399 = vmatpush1.bf16.msra.mxu0 %v11843_v40  ;;  %v11917_v40 = vld [vmem:[%s16042_s16 + $0x10c] ss:$16 sps:$4 sm:$0xff]  }
 0x89c   :  { %4400 = vmatprep.subr.bf16.mxu0 %v11851_v43  ;;  %v11915_v43 = vld [vmem:[%s16042_s16 + $0x108] ss:$16 sps:$4 sm:$0xff]  }
 0x89f   :  { %4401 = vmatpush1.bf16.msra.mxu0 %v11849_v45  ;;  %v11923_v45 = vld [vmem:[%s16042_s16 + $0x12c] ss:$16 sps:$4 sm:$0xff]  }
 0x8a0   :  { %4402 = vmatprep.subr.bf16.mxu0 %v11857_v51  ;;  %v11929_v51 = vld [vmem:[%s16042_s16 + $0x14c] ss:$16 sps:$4 sm:$0xff]  }
 0x8a3   :  { %4403 = vmatpush1.bf16.msra.mxu0 %v11855_v50  ;;  %v11926_v50 = vld [vmem:[%s16042_s16 + $0x144] ss:$16 sps:$4 sm:$0xff]  }
 0x8a4   :  { %4404 = vmatprep.subr.bf16.mxu0 %v11863_v54  ;;  %v11927_v54 = vld [vmem:[%s16042_s16 + $0x148] ss:$16 sps:$4 sm:$0xff]  }
 0x8a7   :  { %4405 = vmatpush1.bf16.msra.mxu0 %v11861_v56  ;;  %v11935_v56 = vld [vmem:[%s16042_s16 + $0x16c] ss:$16 sps:$4 sm:$0xff]  }
 0x8a8   :  { %4776 = vmatprep.subr.bf16.mxu0 %v11869_v59  ;;  %v11933_v59 = vld [vmem:[%s16042_s16 + $0x168] ss:$16 sps:$4 sm:$0xff]  }
 0x935   :  { %v14129_v60 = vpop.f32.mrb[88].mxu0 }
 0x936   :  { %v3829_v61 = vpop.f32.mrb[89].mxu0 }
 0x937   :  { %v3831_v62 = vpop.f32.mrb[90].mxu0  ;;  %v3835_v4 = vpack.c.bf16 %v3829_v61, %v3829_v61  ;;  %v11938_v61 = vld [vmem:[%s16042_s16 + $0x184] ss:$16 sps:$4 sm:$0xff]  }
 0x938   :  { %v3832_v63 = vpop.f32.mrb[91].mxu0  ;;  %v11941_v62 = vld [vmem:[%s16042_s16 + $0x18c] ss:$16 sps:$4 sm:$0xff]  }
 0x939   :  { %v11936_v63 = vld [vmem:[%s16042_s16 + $0x180] ss:$16 sps:$4 sm:$0xff]  }
 0x93d   :  { %v3939_v1 = vpop.f32.mrb[92].mxu0 }
 0x93e   :  { %v3941_v2 = vpop.f32.mrb[93].mxu0  ;;  %v3946_v7 = vpack.c.bf16 %v3939_v1, %v3939_v1  ;;  %v11939_v1 = vld [vmem:[%s16042_s16 + $0x188] ss:$16 sps:$4 sm:$0xff]  }
 0x93f   :  { %v3947_v3 = vpack.c.bf16 %v3941_v2, %v3941_v2  ;;  %v3943_v46 = vpop.f32.mrb[94].mxu0  ;;  %v11944_v2 = vld [vmem:[%s16042_s16 + $0x1a4] ss:$16 sps:$4 sm:$0xff]  }
 0x940   :  { %v3944_v8 = vpop.f32.mrb[95].mxu0  ;;  %v11942_v46 = vld [vmem:[%s16042_s16 + $0x1a0] ss:$16 sps:$4 sm:$0xff]  }
 0x941   :  { %4365 = vmatprep.mubr.bf16.mxu1 %v3947_v3  ;;  %4406 = vmatprep.mubr.bf16.mxu0 %v3947_v3  ;;  %v11947_v3 = vld [vmem:[%s16042_s16 + $0x1ac] ss:$16 sps:$4 sm:$0xff]   ;;  %v11948_v8 = vld [vmem:[%s16042_s16 + $0x1c0] ss:$16 sps:$4 sm:$0xff]  }
 0x942   :  { %4366 = vmatmul.mubr.bf16.vlgmr.msra.gmra.mrb[40].mxu1 %v3946_v7  ;;  %4407 = vmatmul.mubr.bf16.vlgmr.msra.gmra.mrb[96].mxu0 %v3946_v7  ;;  %v11953_v7 = vld [vmem:[%s16042_s16 + $0x1cc] ss:$16 sps:$4 sm:$0xff]  }
 0x943   :  { %4736 = vmatpush1.bf16.msra.mxu1 %v11864_v5  ;;  %4777 = vmatpush1.bf16.msra.mxu0 %v11867_v6  ;;  %v11945_v5 = vld [vmem:[%s16042_s16 + $0x1a8] ss:$16 sps:$4 sm:$0xff]   ;;  %v11950_v6 = vld [vmem:[%s16042_s16 + $0x1c4] ss:$16 sps:$4 sm:$0xff]  }
 0x944   :  { %4767 = vmatprep.mubr.bf16.mxu1 %v3835_v4  ;;  %4808 = vmatprep.mubr.bf16.mxu0 %v3835_v4  ;;  %v11959_v4 = vld [vmem:[%s16042_s16 + $0x1ec] ss:$16 sps:$4 sm:$0xff]  }
 0x945   :  { %4737 = vmatprep.subr.bf16.mxu1 %v11872_v42  ;;  %4778 = vmatprep.subr.bf16.mxu0 %v11875_v9  ;;  %v11951_v42 = vld [vmem:[%s16042_s16 + $0x1c8] ss:$16 sps:$4 sm:$0xff]   ;;  %v11956_v9 = vld [vmem:[%s16042_s16 + $0x1e4] ss:$16 sps:$4 sm:$0xff]  }
 0x947   :  { %4738 = vmatpush1.bf16.msra.mxu1 %v11870_v11  ;;  %4779 = vmatpush1.bf16.msra.mxu0 %v11873_v12  ;;  %v11954_v11 = vld [vmem:[%s16042_s16 + $0x1e0] ss:$16 sps:$4 sm:$0xff]   ;;  %v11957_v12 = vld [vmem:[%s16042_s16 + $0x1e8] ss:$16 sps:$4 sm:$0xff]  }
 0x948   :  { %4739 = vmatprep.subr.bf16.mxu1 %v11878_v13  ;;  %4780 = vmatprep.subr.bf16.mxu0 %v11881_v15  ;;  %v11962_v13 = vld [vmem:[%s16042_s16 + $0x404] ss:$16 sps:$4 sm:$0xff]   ;;  %v11960_v15 = vld [vmem:[%s16042_s16 + $0x400] ss:$16 sps:$4 sm:$0xff]  }
 0x94b   :  { %4740 = vmatpush1.bf16.msra.mxu1 %v11876_v19  ;;  %4781 = vmatpush1.bf16.msra.mxu0 %v11879_v20  ;;  %v3834_v19 = vpack.c.bf16 %v14129_v60, %v14129_v60  ;;  %v11965_v20 = vld [vmem:[%s16042_s16 + $0x424] ss:$16 sps:$4 sm:$0xff]  }
 0x94c   :  { %4741 = vmatprep.subr.bf16.mxu1 %v11884_v21  ;;  %4782 = vmatprep.subr.bf16.mxu0 %v11887_v22  ;;  %v11963_v21 = vld [vmem:[%s16042_s16 + $0x420] ss:$16 sps:$4 sm:$0xff]   ;;  %v11968_v60 = vld [vmem:[%s16042_s16 + $0x444] ss:$16 sps:$4 sm:$0xff]  }
 0x94d   :  { %v9681_v22 = vld [vmem:[%s16041_s15 + $0x2] sm:$0x1] }
 0x94f   :  { %4742 = vmatpush1.bf16.msra.mxu1 %v11882_v23  ;;  %4783 = vmatpush1.bf16.msra.mxu0 %v11885_v25  ;;  %v11966_v23 = vld [vmem:[%s16042_s16 + $0x440] ss:$16 sps:$4 sm:$0xff]   ;;  %v11971_v25 = vld [vmem:[%s16042_s16 + $0x464] ss:$16 sps:$4 sm:$0xff]  }
 0x950   :  { %4743 = vmatprep.subr.bf16.mxu1 %v11890_v26  ;;  %4784 = vmatprep.subr.bf16.mxu0 %v11893_v27  ;;  %v11969_v26 = vld [vmem:[%s16042_s16 + $0x460] ss:$16 sps:$4 sm:$0xff]   ;;  %v11974_v27 = vld [vmem:[%s16042_s16 + $0x484] ss:$16 sps:$4 sm:$0xff]  }
 0x953   :  { %4744 = vmatpush1.bf16.msra.mxu1 %v11888_v28  ;;  %4785 = vmatpush1.bf16.msra.mxu0 %v11891_v29  ;;  %v11972_v28 = vld [vmem:[%s16042_s16 + $0x480] ss:$16 sps:$4 sm:$0xff]   ;;  %v11977_v29 = vld [vmem:[%s16042_s16 + $0x4a4] ss:$16 sps:$4 sm:$0xff]  }
 0x954   :  { %4745 = vmatprep.subr.bf16.mxu1 %v11896_v30  ;;  %4786 = vmatprep.subr.bf16.mxu0 %v11899_v31  ;;  %v11975_v30 = vld [vmem:[%s16042_s16 + $0x4a0] ss:$16 sps:$4 sm:$0xff]   ;;  %v11980_v31 = vld [vmem:[%s16042_s16 + $0x4c4] ss:$16 sps:$4 sm:$0xff]  }
 0x957   :  { %4746 = vmatpush1.bf16.msra.mxu1 %v11894_v32  ;;  %4787 = vmatpush1.bf16.msra.mxu0 %v11897_v33  ;;  %v11978_v32 = vld [vmem:[%s16042_s16 + $0x4c0] ss:$16 sps:$4 sm:$0xff]   ;;  %v11983_v33 = vld [vmem:[%s16042_s16 + $0x4e4] ss:$16 sps:$4 sm:$0xff]  }
 0x958   :  { %4747 = vmatprep.subr.bf16.mxu1 %v11902_v36  ;;  %4788 = vmatprep.subr.bf16.mxu0 %v11905_v34  ;;  %v12008_v36 = vld [vmem:[%s16042_s16 + $0x408] ss:$16 sps:$4 sm:$0xff]   ;;  %v12010_v34 = vld [vmem:[%s16042_s16 + $0x40c] ss:$16 sps:$4 sm:$0xff]  }
 0x95b   :  { %4748 = vmatpush1.bf16.msra.mxu1 %v11900_v35  ;;  %4789 = vmatpush1.bf16.msra.mxu0 %v11903_v37  ;;  %v12013_v35 = vld [vmem:[%s16042_s16 + $0x42c] ss:$16 sps:$4 sm:$0xff]   ;;  %v11981_v37 = vld [vmem:[%s16042_s16 + $0x4e0] ss:$16 sps:$4 sm:$0xff]  }
 0x95c   :  { %4749 = vmatprep.subr.bf16.mxu1 %v11908_v18  ;;  %4790 = vmatprep.subr.bf16.mxu0 %v11911_v17  ;;  %v12011_v18 = vld [vmem:[%s16042_s16 + $0x428] ss:$16 sps:$4 sm:$0xff]   ;;  %v11986_v17 = vld [vmem:[%s16042_s16 + $0x504] ss:$16 sps:$4 sm:$0xff]  }
 0x95f   :  { %4750 = vmatpush1.bf16.msra.mxu1 %v11906_v14  ;;  %4791 = vmatpush1.bf16.msra.mxu0 %v11909_v38  ;;  %v12016_v14 = vld [vmem:[%s16042_s16 + $0x44c] ss:$16 sps:$4 sm:$0xff]   ;;  %v11984_v38 = vld [vmem:[%s16042_s16 + $0x500] ss:$16 sps:$4 sm:$0xff]  }
 0x960   :  { %4751 = vmatprep.subr.bf16.mxu1 %v11914_v39  ;;  %4792 = vmatprep.subr.bf16.mxu0 %v11917_v40  ;;  %v12014_v39 = vld [vmem:[%s16042_s16 + $0x448] ss:$16 sps:$4 sm:$0xff]   ;;  %v11989_v40 = vld [vmem:[%s16042_s16 + $0x524] ss:$16 sps:$4 sm:$0xff]  }
 0x963   :  { %4752 = vmatpush1.bf16.msra.mxu1 %v11912_v41  ;;  %4793 = vmatpush1.bf16.msra.mxu0 %v11915_v43  ;;  %v12019_v41 = vld [vmem:[%s16042_s16 + $0x46c] ss:$16 sps:$4 sm:$0xff]   ;;  %v11987_v43 = vld [vmem:[%s16042_s16 + $0x520] ss:$16 sps:$4 sm:$0xff]  }
 0x964   :  { %4753 = vmatprep.subr.bf16.mxu1 %v11920_v16  ;;  %4794 = vmatprep.subr.bf16.mxu0 %v11923_v45  ;;  %v12017_v16 = vld [vmem:[%s16042_s16 + $0x468] ss:$16 sps:$4 sm:$0xff]   ;;  %v11992_v45 = vld [vmem:[%s16042_s16 + $0x544] ss:$16 sps:$4 sm:$0xff]  }
 0x967   :  { %4754 = vmatpush1.bf16.msra.mxu1 %v11918_v48  ;;  %4795 = vmatpush1.bf16.msra.mxu0 %v11921_v49  ;;  %v12022_v48 = vld [vmem:[%s16042_s16 + $0x48c] ss:$16 sps:$4 sm:$0xff]   ;;  %v11990_v49 = vld [vmem:[%s16042_s16 + $0x540] ss:$16 sps:$4 sm:$0xff]  }
 0x968   :  { %4755 = vmatprep.subr.bf16.mxu1 %v11926_v50  ;;  %4796 = vmatprep.subr.bf16.mxu0 %v11929_v51  ;;  %v12020_v50 = vld [vmem:[%s16042_s16 + $0x488] ss:$16 sps:$4 sm:$0xff]   ;;  %v11995_v51 = vld [vmem:[%s16042_s16 + $0x564] ss:$16 sps:$4 sm:$0xff]  }
 0x96b   :  { %4756 = vmatpush1.bf16.msra.mxu1 %v11924_v53  ;;  %4797 = vmatpush1.bf16.msra.mxu0 %v11927_v54  ;;  %v12025_v53 = vld [vmem:[%s16042_s16 + $0x4ac] ss:$16 sps:$4 sm:$0xff]   ;;  %v11993_v54 = vld [vmem:[%s16042_s16 + $0x560] ss:$16 sps:$4 sm:$0xff]  }
 0x96c   :  { %4757 = vmatprep.subr.bf16.mxu1 %v11932_v55  ;;  %4798 = vmatprep.subr.bf16.mxu0 %v11935_v56  ;;  %v12023_v55 = vld [vmem:[%s16042_s16 + $0x4a8] ss:$16 sps:$4 sm:$0xff]   ;;  %v11998_v56 = vld [vmem:[%s16042_s16 + $0x584] ss:$16 sps:$4 sm:$0xff]  }
 0x96f   :  { %4758 = vmatpush1.bf16.msra.mxu1 %v11930_v58  ;;  %4799 = vmatpush1.bf16.msra.mxu0 %v11933_v59  ;;  %v12028_v58 = vld [vmem:[%s16042_s16 + $0x4cc] ss:$16 sps:$4 sm:$0xff]   ;;  %v11996_v59 = vld [vmem:[%s16042_s16 + $0x580] ss:$16 sps:$4 sm:$0xff]  }
 0x970   :  { %4759 = vmatprep.subr.bf16.mxu1 %v11938_v61  ;;  %4800 = vmatprep.subr.bf16.mxu0 %v11941_v62  ;;  %v12026_v61 = vld [vmem:[%s16042_s16 + $0x4c8] ss:$16 sps:$4 sm:$0xff]   ;;  %v12001_v62 = vld [vmem:[%s16042_s16 + $0x5a4] ss:$16 sps:$4 sm:$0xff]  }
 0x973   :  { %4760 = vmatpush1.bf16.msra.mxu1 %v11936_v63  ;;  %4801 = vmatpush1.bf16.msra.mxu0 %v11939_v1  ;;  %v12031_v63 = vld [vmem:[%s16042_s16 + $0x4ec] ss:$16 sps:$4 sm:$0xff]   ;;  %v11999_v1 = vld [vmem:[%s16042_s16 + $0x5a0] ss:$16 sps:$4 sm:$0xff]  }
 0x974   :  { %4761 = vmatprep.subr.bf16.mxu1 %v11944_v2  ;;  %4802 = vmatprep.subr.bf16.mxu0 %v11947_v3  ;;  %v12029_v2 = vld [vmem:[%s16042_s16 + $0x4e8] ss:$16 sps:$4 sm:$0xff]   ;;  %v12004_v3 = vld [vmem:[%s16042_s16 + $0x5c4] ss:$16 sps:$4 sm:$0xff]  }
 0x977   :  { %4762 = vmatpush1.bf16.msra.mxu1 %v11942_v46  ;;  %4803 = vmatpush1.bf16.msra.mxu0 %v11945_v5  ;;  %v12034_v46 = vld [vmem:[%s16042_s16 + $0x50c] ss:$16 sps:$4 sm:$0xff]   ;;  %v12002_v5 = vld [vmem:[%s16042_s16 + $0x5c0] ss:$16 sps:$4 sm:$0xff]  }
 0x978   :  { %4763 = vmatprep.subr.bf16.mxu1 %v11950_v6  ;;  %4804 = vmatprep.subr.bf16.mxu0 %v11953_v7  ;;  %v12032_v6 = vld [vmem:[%s16042_s16 + $0x508] ss:$16 sps:$4 sm:$0xff]   ;;  %v12007_v7 = vld [vmem:[%s16042_s16 + $0x5e4] ss:$16 sps:$4 sm:$0xff]  }
 0x97b   :  { %4764 = vmatpush1.bf16.msra.mxu1 %v11948_v8  ;;  %4805 = vmatpush1.bf16.msra.mxu0 %v11951_v42  ;;  %v12037_v8 = vld [vmem:[%s16042_s16 + $0x52c] ss:$16 sps:$4 sm:$0xff]   ;;  %v12005_v42 = vld [vmem:[%s16042_s16 + $0x5e0] ss:$16 sps:$4 sm:$0xff]  }
 0x97c   :  { %4765 = vmatprep.subr.bf16.mxu1 %v11956_v9  ;;  %4806 = vmatprep.subr.bf16.mxu0 %v11959_v4  ;;  %v12035_v9 = vld [vmem:[%s16042_s16 + $0x528] ss:$16 sps:$4 sm:$0xff]   ;;  %v12040_v4 = vld [vmem:[%s16042_s16 + $0x54c] ss:$16 sps:$4 sm:$0xff]  }
 0x97f   :  { %4766 = vmatpush1.bf16.msra.mxu1 %v11954_v11  ;;  %4807 = vmatpush1.bf16.msra.mxu0 %v11957_v12  ;;  %v12038_v11 = vld [vmem:[%s16042_s16 + $0x548] ss:$16 sps:$4 sm:$0xff]   ;;  %v12043_v12 = vld [vmem:[%s16042_s16 + $0x56c] ss:$16 sps:$4 sm:$0xff]  }
 0x980   :  { %9682 = vmatprep.subr.msk.bf16.mxu1 %vm3786_vm3, %v13989_v10  ;;  %5250 = vmatprep.subr.bf16.mxu0 %v11962_v13  ;;  %v12041_v13 = vld [vmem:[%s16042_s16 + $0x568] ss:$16 sps:$4 sm:$0xff]  }
 0x982   :  { %4768 = vmatmul.mubr.bf16.vlgmr.msra.gmra.mrb[44].mxu1 %v3834_v19  ;;  %4809 = vmatmul.mubr.bf16.vlgmr.msra.gmra.mrb[100].mxu0 %v3834_v19  ;;  %v12044_v19 = vld [vmem:[%s16042_s16 + $0x588] ss:$16 sps:$4 sm:$0xff]  }
 0x983   :  { %4823 = vmatpush1.bf16.msra.mxu1 %v13992_v0  ;;  %5251 = vmatpush1.bf16.msra.mxu0 %v11960_v15  ;;  %v12046_v15 = vld [vmem:[%s16042_s16 + $0x58c] ss:$16 sps:$4 sm:$0xff]  }
 0x984   :  { %5252 = vmatprep.subr.bf16.mxu0 %v11965_v20  ;;  %4854 = vmatprep.mubr.bf16.mxu1 %v12658_v52  ;;  %v12049_v20 = vld [vmem:[%s16042_s16 + $0x5ac] ss:$16 sps:$4 sm:$0xff]  }
 0x985   :  { %5291 = vmatprep.subr.bf16.mxu1 %v12010_v34 }
 0x987   :  { %5253 = vmatpush1.bf16.msra.mxu0 %v11963_v21  ;;  %v12047_v21 = vld [vmem:[%s16042_s16 + $0x5a8] ss:$16 sps:$4 sm:$0xff]  }
 0x988   :  { %5254 = vmatprep.subr.bf16.mxu0 %v11968_v60  ;;  %v12052_v60 = vld [vmem:[%s16042_s16 + $0x5cc] ss:$16 sps:$4 sm:$0xff]  }
 0x98a   :  { %9683 = vmatmul.mubr.msk.bf16.vlgmr.msra.gmra.mrb[48].mxu1 %vm3782_vm4, %v9681_v22  ;;  %v12050_v22 = vld [vmem:[%s16042_s16 + $0x5c8] ss:$16 sps:$4 sm:$0xff]  }
 0x98b   :  { %5255 = vmatpush1.bf16.msra.mxu0 %v11966_v23  ;;  %5292 = vmatpush1.bf16.msra.mxu1 %v12008_v36  ;;  %v12055_v23 = vld [vmem:[%s16042_s16 + $0x5ec] ss:$16 sps:$4 sm:$0xff]  }
 0x98c   :  { %5256 = vmatprep.subr.bf16.mxu0 %v11971_v25  ;;  %5293 = vmatprep.subr.bf16.mxu1 %v12013_v35  ;;  %v12053_v25 = vld [vmem:[%s16042_s16 + $0x5e8] ss:$16 sps:$4 sm:$0xff]  }
 0x98f   :  { %5257 = vmatpush1.bf16.msra.mxu0 %v11969_v26  ;;  %5294 = vmatpush1.bf16.msra.mxu1 %v12011_v18  ;;  %v12058_v26 = vld [vmem:[%s16042_s16 + $0x604] ss:$16 sps:$4 sm:$0xff]  }
 0x990   :  { %5258 = vmatprep.subr.bf16.mxu0 %v11974_v27  ;;  %5295 = vmatprep.subr.bf16.mxu1 %v12016_v14 }
 0x993   :  { %5259 = vmatpush1.bf16.msra.mxu0 %v11972_v28  ;;  %5296 = vmatpush1.bf16.msra.mxu1 %v12014_v39 }
 0x994   :  { %5260 = vmatprep.subr.bf16.mxu0 %v11977_v29  ;;  %5297 = vmatprep.subr.bf16.mxu1 %v12019_v41 }
 0x997   :  { %5261 = vmatpush1.bf16.msra.mxu0 %v11975_v30  ;;  %5298 = vmatpush1.bf16.msra.mxu1 %v12017_v16 }
 0x998   :  { %5262 = vmatprep.subr.bf16.mxu0 %v11980_v31  ;;  %5299 = vmatprep.subr.bf16.mxu1 %v12022_v48 }
 0x99b   :  { %5263 = vmatpush1.bf16.msra.mxu0 %v11978_v32  ;;  %5300 = vmatpush1.bf16.msra.mxu1 %v12020_v50 }
 0x99c   :  { %5264 = vmatprep.subr.bf16.mxu0 %v11983_v33  ;;  %5301 = vmatprep.subr.bf16.mxu1 %v12025_v53 }
 0x99f   :  { %5265 = vmatpush1.bf16.msra.mxu0 %v11981_v37  ;;  %5302 = vmatpush1.bf16.msra.mxu1 %v12023_v55  ;;  %v12061_v55 = vld [vmem:[%s16042_s16 + $0x624] ss:$16 sps:$4 sm:$0xff]  }
 0x9a0   :  { %5266 = vmatprep.subr.bf16.mxu0 %v11986_v17  ;;  %5303 = vmatprep.subr.bf16.mxu1 %v12028_v58  ;;  %v12059_v58 = vld [vmem:[%s16042_s16 + $0x620] ss:$16 sps:$4 sm:$0xff]  }
 0x9a3   :  { %5267 = vmatpush1.bf16.msra.mxu0 %v11984_v38  ;;  %5304 = vmatpush1.bf16.msra.mxu1 %v12026_v61  ;;  %v12062_v61 = vld [vmem:[%s16042_s16 + $0x640] ss:$16 sps:$4 sm:$0xff]  }
 0x9a4   :  { %5268 = vmatprep.subr.bf16.mxu0 %v11989_v40  ;;  %5305 = vmatprep.subr.bf16.mxu1 %v12031_v63  ;;  %v12104_v63 = vld [vmem:[%s16042_s16 + $0x608] ss:$16 sps:$4 sm:$0xff]  }
 0x9a7   :  { %5269 = vmatpush1.bf16.msra.mxu0 %v11987_v43  ;;  %5306 = vmatpush1.bf16.msra.mxu1 %v12029_v2  ;;  %v12109_v2 = vld [vmem:[%s16042_s16 + $0x62c] ss:$16 sps:$4 sm:$0xff]  }
 0x9a8   :  { %5270 = vmatprep.subr.bf16.mxu0 %v11992_v45  ;;  %5307 = vmatprep.subr.bf16.mxu1 %v12034_v46  ;;  %v12107_v46 = vld [vmem:[%s16042_s16 + $0x628] ss:$16 sps:$4 sm:$0xff]  }
 0x9ab   :  { %5271 = vmatpush1.bf16.msra.mxu0 %v11990_v49  ;;  %5308 = vmatpush1.bf16.msra.mxu1 %v12032_v6  ;;  %v12112_v6 = vld [vmem:[%s16042_s16 + $0x64c] ss:$16 sps:$4 sm:$0xff]  }
 0x9ac   :  { %5272 = vmatprep.subr.bf16.mxu0 %v11995_v51  ;;  %5309 = vmatprep.subr.bf16.mxu1 %v12037_v8  ;;  %v12056_v51 = vld [vmem:[%s16042_s16 + $0x600] ss:$16 sps:$4 sm:$0xff]   ;;  %v12110_v8 = vld [vmem:[%s16042_s16 + $0x648] ss:$16 sps:$4 sm:$0xff]  }
 0x9af   :  { %5273 = vmatpush1.bf16.msra.mxu0 %v11993_v54  ;;  %5310 = vmatpush1.bf16.msra.mxu1 %v12035_v9  ;;  %v12115_v9 = vld [vmem:[%s16042_s16 + $0x66c] ss:$16 sps:$4 sm:$0xff]  }
 0x9b0   :  { %5274 = vmatprep.subr.bf16.mxu0 %v11998_v56  ;;  %5311 = vmatprep.subr.bf16.mxu1 %v12040_v4  ;;  %v12106_v56 = vld [vmem:[%s16042_s16 + $0x60c] ss:$16 sps:$4 sm:$0xff]   ;;  %v12071_v4 = vld [vmem:[%s16042_s16 + $0x6a0] ss:$16 sps:$4 sm:$0xff]  }
 0x9b3   :  { %5275 = vmatpush1.bf16.msra.mxu0 %v11996_v59  ;;  %5312 = vmatpush1.bf16.msra.mxu1 %v12038_v11  ;;  %v12064_v59 = vld [vmem:[%s16042_s16 + $0x644] ss:$16 sps:$4 sm:$0xff]   ;;  %v12113_v11 = vld [vmem:[%s16042_s16 + $0x668] ss:$16 sps:$4 sm:$0xff]  }
 0x9b4   :  { %5276 = vmatprep.subr.bf16.mxu0 %v12001_v62  ;;  %5313 = vmatprep.subr.bf16.mxu1 %v12043_v12  ;;  %v9812_v62 = vld [vmem:[%s16041_s15 + $0x3] sm:$0x1]  ;;  %v12076_v12 = vld [vmem:[%s16042_s16 + $0x6c4] ss:$16 sps:$4 sm:$0xff]  }
 0x9b7   :  { %5277 = vmatpush1.bf16.msra.mxu0 %v11999_v1  ;;  %5314 = vmatpush1.bf16.msra.mxu1 %v12041_v13  ;;  %v12067_v1 = vld [vmem:[%s16042_s16 + $0x664] ss:$16 sps:$4 sm:$0xff]   ;;  %v12118_v13 = vld [vmem:[%s16042_s16 + $0x68c] ss:$16 sps:$4 sm:$0xff]  }
 0x9b8   :  { %5278 = vmatprep.subr.bf16.mxu0 %v12004_v3  ;;  %5315 = vmatprep.subr.bf16.mxu1 %v12046_v15  ;;  %v12065_v3 = vld [vmem:[%s16042_s16 + $0x660] ss:$16 sps:$4 sm:$0xff]  }
 0x9b9   :  { %v12074_v15 = vld [vmem:[%s16042_s16 + $0x6c0] ss:$16 sps:$4 sm:$0xff]  }
 0x9bb   :  { %5279 = vmatpush1.bf16.msra.mxu0 %v12002_v5  ;;  %5316 = vmatpush1.bf16.msra.mxu1 %v12044_v19  ;;  %v12070_v5 = vld [vmem:[%s16042_s16 + $0x684] ss:$16 sps:$4 sm:$0xff]   ;;  %v12116_v19 = vld [vmem:[%s16042_s16 + $0x688] ss:$16 sps:$4 sm:$0xff]  }
 0x9bc   :  { %5280 = vmatprep.subr.bf16.mxu0 %v12007_v7  ;;  %5317 = vmatprep.subr.bf16.mxu1 %v12049_v20  ;;  %v12068_v7 = vld [vmem:[%s16042_s16 + $0x680] ss:$16 sps:$4 sm:$0xff]   ;;  %v12079_v20 = vld [vmem:[%s16042_s16 + $0x6e4] ss:$16 sps:$4 sm:$0xff]  }
 0x9bf   :  { %5281 = vmatpush1.bf16.msra.mxu0 %v12005_v42  ;;  %5318 = vmatpush1.bf16.msra.mxu1 %v12047_v21  ;;  %v12073_v42 = vld [vmem:[%s16042_s16 + $0x6a4] ss:$16 sps:$4 sm:$0xff]   ;;  %v12121_v21 = vld [vmem:[%s16042_s16 + $0x6ac] ss:$16 sps:$4 sm:$0xff]  }
 0x9c0   :  { %9813 = vmatprep.subr.msk.bf16.mxu0 %vm3786_vm3, %v13989_v10  ;;  %5319 = vmatprep.subr.bf16.mxu1 %v12052_v60  ;;  %v12077_v60 = vld [vmem:[%s16042_s16 + $0x6e0] ss:$16 sps:$4 sm:$0xff]  }
 0x9c3   :  { %5320 = vmatpush1.bf16.msra.mxu1 %v12050_v22  ;;  %v12119_v22 = vld [vmem:[%s16042_s16 + $0x6a8] ss:$16 sps:$4 sm:$0xff]  }
 0x9c4   :  { %5321 = vmatprep.subr.bf16.mxu1 %v12055_v23  ;;  %v12082_v23 = vld [vmem:[%s16042_s16 + $0x704] ss:$16 sps:$4 sm:$0xff]  }
 0x9c7   :  { %5322 = vmatpush1.bf16.msra.mxu1 %v12053_v25  ;;  %v12124_v25 = vld [vmem:[%s16042_s16 + $0x6cc] ss:$16 sps:$4 sm:$0xff]  }
 0x9c8   :  { %5769 = vmatprep.subr.bf16.mxu1 %v12058_v26  ;;  %v12080_v26 = vld [vmem:[%s16042_s16 + $0x700] ss:$16 sps:$4 sm:$0xff]  }
 0xa15   :  { %v4367_v27 = vpop.f32.mrb[40].mxu1  ;;  %v4408_v28 = vpop.f32.mrb[96].mxu0 }
 0xa16   :  { %v4369_v29 = vpop.f32.mrb[41].mxu1  ;;  %v4410_v30 = vpop.f32.mrb[97].mxu0 }
 0xa17   :  { %v4371_v31 = vpop.f32.mrb[42].mxu1  ;;  %v4412_v32 = vpop.f32.mrb[98].mxu0 }
 0xa18   :  { %v4372_v33 = vpop.f32.mrb[43].mxu1  ;;  %v4413_v36 = vpop.f32.mrb[99].mxu0  ;;  %v12125_v31 = vld [vmem:[%s16042_s16 + $0x6e8] ss:$16 sps:$4 sm:$0xff]   ;;  %v12088_v32 = vld [vmem:[%s16042_s16 + $0x744] ss:$16 sps:$4 sm:$0xff]  }
 0xa19   :  { %v12130_v33 = vld [vmem:[%s16042_s16 + $0x70c] ss:$16 sps:$4 sm:$0xff]   ;;  %v12086_v36 = vld [vmem:[%s16042_s16 + $0x740] ss:$16 sps:$4 sm:$0xff]  }
 0xa55   :  { %v4769_v34 = vpop.f32.mrb[44].mxu1  ;;  %v4810_v35 = vpop.f32.mrb[100].mxu0 }
 0xa56   :  { %v14524_v37 = vadd.f32 %v4769_v34, %v4367_v27  ;;  %v14526_v18 = vadd.f32 %v4810_v35, %v4408_v28  ;;  %v4771_v17 = vpop.f32.mrb[45].mxu1  ;;  %v4812_v14 = vpop.f32.mrb[101].mxu0  ;;  %v12122_v27 = vld [vmem:[%s16042_s16 + $0x6c8] ss:$16 sps:$4 sm:$0xff]   ;;  %v12085_v28 = vld [vmem:[%s16042_s16 + $0x724] ss:$16 sps:$4 sm:$0xff]  }
 0xa57   :  { %v14528_v38 = vadd.f32 %v4771_v17, %v4369_v29  ;;  %v14530_v39 = vadd.f32 %v4812_v14, %v4410_v30  ;;  %v4773_v40 = vpop.f32.mrb[46].mxu1  ;;  %v4814_v41 = vpop.f32.mrb[102].mxu0  ;;  %v12127_v29 = vld [vmem:[%s16042_s16 + $0x6ec] ss:$16 sps:$4 sm:$0xff]   ;;  %v12083_v30 = vld [vmem:[%s16042_s16 + $0x720] ss:$16 sps:$4 sm:$0xff]  }
 0xa58   :  { %v4774_v43 = vpop.f32.mrb[47].mxu1  ;;  %v4815_v16 = vpop.f32.mrb[103].mxu0  ;;  %v12128_v34 = vld [vmem:[%s16042_s16 + $0x708] ss:$16 sps:$4 sm:$0xff]   ;;  %v12091_v35 = vld [vmem:[%s16042_s16 + $0x764] ss:$16 sps:$4 sm:$0xff]  }
 0xa59   :  { %v12133_v17 = vld [vmem:[%s16042_s16 + $0x72c] ss:$16 sps:$4 sm:$0xff]   ;;  %v12089_v14 = vld [vmem:[%s16042_s16 + $0x760] ss:$16 sps:$4 sm:$0xff]   ;;  %v12131_v40 = vld [vmem:[%s16042_s16 + $0x728] ss:$16 sps:$4 sm:$0xff]  }
 0xa5a   :  { %v12094_v41 = vld [vmem:[%s16042_s16 + $0x784] ss:$16 sps:$4 sm:$0xff]   ;;  %v12136_v43 = vld [vmem:[%s16042_s16 + $0x74c] ss:$16 sps:$4 sm:$0xff]   ;;  %v12092_v16 = vld [vmem:[%s16042_s16 + $0x780] ss:$16 sps:$4 sm:$0xff]  }
 0xa5d   :  { %v4856_v45 = vpop.f32.mrb[48].mxu1 }
 0xa5e   :  { %v4858_v48 = vpop.f32.mrb[49].mxu1  ;;  %v4863_v53 = vpack.c.bf16 %v4856_v45, %v4856_v45  ;;  %v12134_v45 = vld [vmem:[%s16042_s16 + $0x748] ss:$16 sps:$4 sm:$0xff]  }
 0xa5f   :  { %v4864_v49 = vpack.c.bf16 %v4858_v48, %v4858_v48  ;;  %v4860_v50 = vpop.f32.mrb[50].mxu1  ;;  %v12097_v48 = vld [vmem:[%s16042_s16 + $0x7a4] ss:$16 sps:$4 sm:$0xff]  }
 0xa60   :  { %v4861_v54 = vpop.f32.mrb[51].mxu1  ;;  %v12095_v50 = vld [vmem:[%s16042_s16 + $0x7a0] ss:$16 sps:$4 sm:$0xff]  }
 0xa61   :  { %5282 = vmatprep.mubr.bf16.mxu0 %v4864_v49  ;;  %5323 = vmatprep.mubr.bf16.mxu1 %v4864_v49  ;;  %v12139_v49 = vld [vmem:[%s16042_s16 + $0x76c] ss:$16 sps:$4 sm:$0xff]  }
 0xa62   :  { %5283 = vmatmul.mubr.bf16.vlgmr.msra.gmra.mrb[104].mxu0 %v4863_v53  ;;  %5324 = vmatmul.mubr.bf16.vlgmr.msra.gmra.mrb[52].mxu1 %v4863_v53  ;;  %v12100_v53 = vld [vmem:[%s16042_s16 + $0x7c4] ss:$16 sps:$4 sm:$0xff]   ;;  %v12142_v54 = vld [vmem:[%s16042_s16 + $0x78c] ss:$16 sps:$4 sm:$0xff]  }
 0xa63   :  { %5342 = vmatpush1.bf16.msra.mxu0 %v13992_v0  ;;  %5770 = vmatpush1.bf16.msra.mxu1 %v12056_v51  ;;  %v12137_v51 = vld [vmem:[%s16042_s16 + $0x768] ss:$16 sps:$4 sm:$0xff]  }
 0xa64   :  { %5771 = vmatprep.subr.bf16.mxu1 %v12061_v55  ;;  %5373 = vmatprep.mubr.bf16.mxu0 %v12658_v52  ;;  %v12098_v55 = vld [vmem:[%s16042_s16 + $0x7c0] ss:$16 sps:$4 sm:$0xff]  }
 0xa65   :  { %5810 = vmatprep.subr.bf16.mxu0 %v12106_v56  ;;  %v12140_v56 = vld [vmem:[%s16042_s16 + $0x788] ss:$16 sps:$4 sm:$0xff]  }
 0xa67   :  { %5772 = vmatpush1.bf16.msra.mxu1 %v12059_v58  ;;  %v12103_v58 = vld [vmem:[%s16042_s16 + $0x7e4] ss:$16 sps:$4 sm:$0xff]  }
 0xa68   :  { %5773 = vmatprep.subr.bf16.mxu1 %v12064_v59  ;;  %v12101_v59 = vld [vmem:[%s16042_s16 + $0x7e0] ss:$16 sps:$4 sm:$0xff]  }
 0xa6a   :  { %9814 = vmatmul.mubr.msk.bf16.vlgmr.msra.gmra.mrb[108].mxu0 %vm3782_vm4, %v9812_v62  ;;  %v12143_v62 = vld [vmem:[%s16042_s16 + $0x7a8] ss:$16 sps:$4 sm:$0xff]  }
 0xa6b   :  { %5774 = vmatpush1.bf16.msra.mxu1 %v12062_v61  ;;  %5811 = vmatpush1.bf16.msra.mxu0 %v12104_v63  ;;  %v12145_v61 = vld [vmem:[%s16042_s16 + $0x7ac] ss:$16 sps:$4 sm:$0xff]   ;;  %v12146_v63 = vld [vmem:[%s16042_s16 + $0x7c8] ss:$16 sps:$4 sm:$0xff]  }
 0xa6c   :  { %5775 = vmatprep.subr.bf16.mxu1 %v12067_v1  ;;  %5812 = vmatprep.subr.bf16.mxu0 %v12109_v2  ;;  %v12148_v1 = vld [vmem:[%s16042_s16 + $0x7cc] ss:$16 sps:$4 sm:$0xff]  }
 0xa6d   :  { %v12151_v2 = vld [vmem:[%s16042_s16 + $0x7ec] ss:$16 sps:$4 sm:$0xff]  }
 0xa6f   :  { %5776 = vmatpush1.bf16.msra.mxu1 %v12065_v3  ;;  %5813 = vmatpush1.bf16.msra.mxu0 %v12107_v46  ;;  %v12149_v3 = vld [vmem:[%s16042_s16 + $0x7e8] ss:$16 sps:$4 sm:$0xff]   ;;  %v12154_v46 = vld [vmem:[%s16042_s16 + $0x804] ss:$16 sps:$4 sm:$0xff]  }
 0xa70   :  { %5777 = vmatprep.subr.bf16.mxu1 %v12070_v5  ;;  %5814 = vmatprep.subr.bf16.mxu0 %v12112_v6 }
 0xa73   :  { %5778 = vmatpush1.bf16.msra.mxu1 %v12068_v7  ;;  %5815 = vmatpush1.bf16.msra.mxu0 %v12110_v8 }
 0xa74   :  { %5779 = vmatprep.subr.bf16.mxu1 %v12073_v42  ;;  %5816 = vmatprep.subr.bf16.mxu0 %v12115_v9 }
 0xa77   :  { %5780 = vmatpush1.bf16.msra.mxu1 %v12071_v4  ;;  %5817 = vmatpush1.bf16.msra.mxu0 %v12113_v11 }
 0xa78   :  { %5781 = vmatprep.subr.bf16.mxu1 %v12076_v12  ;;  %5818 = vmatprep.subr.bf16.mxu0 %v12118_v13 }
 0xa7b   :  { %5782 = vmatpush1.bf16.msra.mxu1 %v12074_v15  ;;  %5819 = vmatpush1.bf16.msra.mxu0 %v12116_v19 }
 0xa7c   :  { %5783 = vmatprep.subr.bf16.mxu1 %v12079_v20  ;;  %5820 = vmatprep.subr.bf16.mxu0 %v12121_v21 }
 0xa7f   :  { %5784 = vmatpush1.bf16.msra.mxu1 %v12077_v60  ;;  %5821 = vmatpush1.bf16.msra.mxu0 %v12119_v22 }
 0xa80   :  { %5785 = vmatprep.subr.bf16.mxu1 %v12082_v23  ;;  %5822 = vmatprep.subr.bf16.mxu0 %v12124_v25  ;;  %v12155_v25 = vld [vmem:[%s16042_s16 + $0x820] ss:$16 sps:$4 sm:$0xff]  }
 0xa83   :  { %5786 = vmatpush1.bf16.msra.mxu1 %v12080_v26  ;;  %5823 = vmatpush1.bf16.msra.mxu0 %v12122_v27  ;;  %v12160_v26 = vld [vmem:[%s16042_s16 + $0x844] ss:$16 sps:$4 sm:$0xff]   ;;  %v12158_v27 = vld [vmem:[%s16042_s16 + $0x840] ss:$16 sps:$4 sm:$0xff]  }
 0xa84   :  { %5787 = vmatprep.subr.bf16.mxu1 %v12085_v28  ;;  %5824 = vmatprep.subr.bf16.mxu0 %v12127_v29  ;;  %v9943_v28 = vld [vmem:[%s16041_s15 + $0x4] sm:$0x1]  ;;  %v12200_v29 = vld [vmem:[%s16042_s16 + $0x808] ss:$16 sps:$4 sm:$0xff]  }
 0xa87   :  { %5788 = vmatpush1.bf16.msra.mxu1 %v12083_v30  ;;  %5825 = vmatpush1.bf16.msra.mxu0 %v12125_v31  ;;  %v12163_v30 = vld [vmem:[%s16042_s16 + $0x864] ss:$16 sps:$4 sm:$0xff]   ;;  %v12205_v31 = vld [vmem:[%s16042_s16 + $0x82c] ss:$16 sps:$4 sm:$0xff]  }
 0xa88   :  { %5789 = vmatprep.subr.bf16.mxu1 %v12088_v32  ;;  %5826 = vmatprep.subr.bf16.mxu0 %v12130_v33  ;;  %v12161_v32 = vld [vmem:[%s16042_s16 + $0x860] ss:$16 sps:$4 sm:$0xff]   ;;  %v12203_v33 = vld [vmem:[%s16042_s16 + $0x828] ss:$16 sps:$4 sm:$0xff]  }
 0xa8b   :  { %5790 = vmatpush1.bf16.msra.mxu1 %v12086_v36  ;;  %5827 = vmatpush1.bf16.msra.mxu0 %v12128_v34  ;;  %v12166_v36 = vld [vmem:[%s16042_s16 + $0x884] ss:$16 sps:$4 sm:$0xff]   ;;  %v12208_v34 = vld [vmem:[%s16042_s16 + $0x84c] ss:$16 sps:$4 sm:$0xff]  }
 0xa8c   :  { %5791 = vmatprep.subr.bf16.mxu1 %v12091_v35  ;;  %5828 = vmatprep.subr.bf16.mxu0 %v12133_v17  ;;  %v12164_v35 = vld [vmem:[%s16042_s16 + $0x880] ss:$16 sps:$4 sm:$0xff]   ;;  %v12206_v17 = vld [vmem:[%s16042_s16 + $0x848] ss:$16 sps:$4 sm:$0xff]  }
 0xa8f   :  { %5792 = vmatpush1.bf16.msra.mxu1 %v12089_v14  ;;  %5829 = vmatpush1.bf16.msra.mxu0 %v12131_v40  ;;  %v12169_v14 = vld [vmem:[%s16042_s16 + $0x8a4] ss:$16 sps:$4 sm:$0xff]   ;;  %v12211_v40 = vld [vmem:[%s16042_s16 + $0x86c] ss:$16 sps:$4 sm:$0xff]  }
 0xa90   :  { %5793 = vmatprep.subr.bf16.mxu1 %v12094_v41  ;;  %5830 = vmatprep.subr.bf16.mxu0 %v12136_v43  ;;  %v12167_v41 = vld [vmem:[%s16042_s16 + $0x8a0] ss:$16 sps:$4 sm:$0xff]   ;;  %v12209_v43 = vld [vmem:[%s16042_s16 + $0x868] ss:$16 sps:$4 sm:$0xff]  }
 0xa93   :  { %5794 = vmatpush1.bf16.msra.mxu1 %v12092_v16  ;;  %5831 = vmatpush1.bf16.msra.mxu0 %v12134_v45  ;;  %v12172_v16 = vld [vmem:[%s16042_s16 + $0x8c4] ss:$16 sps:$4 sm:$0xff]   ;;  %v12214_v45 = vld [vmem:[%s16042_s16 + $0x88c] ss:$16 sps:$4 sm:$0xff]  }
 0xa94   :  { %5795 = vmatprep.subr.bf16.mxu1 %v12097_v48  ;;  %5832 = vmatprep.subr.bf16.mxu0 %v12139_v49  ;;  %v12170_v48 = vld [vmem:[%s16042_s16 + $0x8c0] ss:$16 sps:$4 sm:$0xff]   ;;  %v12212_v49 = vld [vmem:[%s16042_s16 + $0x888] ss:$16 sps:$4 sm:$0xff]  }
 0xa97   :  { %5796 = vmatpush1.bf16.msra.mxu1 %v12095_v50  ;;  %5833 = vmatpush1.bf16.msra.mxu0 %v12137_v51  ;;  %v12175_v50 = vld [vmem:[%s16042_s16 + $0x8e4] ss:$16 sps:$4 sm:$0xff]   ;;  %v12217_v51 = vld [vmem:[%s16042_s16 + $0x8ac] ss:$16 sps:$4 sm:$0xff]  }
 0xa98   :  { %5797 = vmatprep.subr.bf16.mxu1 %v12100_v53  ;;  %5834 = vmatprep.subr.bf16.mxu0 %v12142_v54  ;;  %v12173_v53 = vld [vmem:[%s16042_s16 + $0x8e0] ss:$16 sps:$4 sm:$0xff]   ;;  %v12215_v54 = vld [vmem:[%s16042_s16 + $0x8a8] ss:$16 sps:$4 sm:$0xff]  }
 0xa9b   :  { %5798 = vmatpush1.bf16.msra.mxu1 %v12098_v55  ;;  %5835 = vmatpush1.bf16.msra.mxu0 %v12140_v56  ;;  %v12178_v55 = vld [vmem:[%s16042_s16 + $0x904] ss:$16 sps:$4 sm:$0xff]   ;;  %v12220_v56 = vld [vmem:[%s16042_s16 + $0x8cc] ss:$16 sps:$4 sm:$0xff]  }
 0xa9c   :  { %5799 = vmatprep.subr.bf16.mxu1 %v12103_v58  ;;  %5836 = vmatprep.subr.bf16.mxu0 %v12145_v61  ;;  %v12176_v58 = vld [vmem:[%s16042_s16 + $0x900] ss:$16 sps:$4 sm:$0xff]   ;;  %v12181_v61 = vld [vmem:[%s16042_s16 + $0x924] ss:$16 sps:$4 sm:$0xff]  }
 0xa9f   :  { %5800 = vmatpush1.bf16.msra.mxu1 %v12101_v59  ;;  %5837 = vmatpush1.bf16.msra.mxu0 %v12143_v62  ;;  %v12218_v59 = vld [vmem:[%s16042_s16 + $0x8c8] ss:$16 sps:$4 sm:$0xff]   ;;  %v12223_v62 = vld [vmem:[%s16042_s16 + $0x8ec] ss:$16 sps:$4 sm:$0xff]  }
 0xaa0   :  { %9944 = vmatprep.subr.msk.bf16.mxu1 %vm3786_vm3, %v13989_v10  ;;  %5838 = vmatprep.subr.bf16.mxu0 %v12148_v1  ;;  %v12221_v1 = vld [vmem:[%s16042_s16 + $0x8e8] ss:$16 sps:$4 sm:$0xff]  }
 0xaa3   :  { %5839 = vmatpush1.bf16.msra.mxu0 %v12146_v63  ;;  %v12179_v63 = vld [vmem:[%s16042_s16 + $0x920] ss:$16 sps:$4 sm:$0xff]  }
 0xaa4   :  { %5840 = vmatprep.subr.bf16.mxu0 %v12151_v2  ;;  %v12184_v2 = vld [vmem:[%s16042_s16 + $0x944] ss:$16 sps:$4 sm:$0xff]  }
 0xaa7   :  { %5841 = vmatpush1.bf16.msra.mxu0 %v12149_v3  ;;  %v12226_v3 = vld [vmem:[%s16042_s16 + $0x90c] ss:$16 sps:$4 sm:$0xff]  }
 0xaa8   :  { %6288 = vmatprep.subr.bf16.mxu0 %v12154_v46  ;;  %v12182_v46 = vld [vmem:[%s16042_s16 + $0x940] ss:$16 sps:$4 sm:$0xff]  }
 0xb35   :  { %v5284_v5 = vpop.f32.mrb[104].mxu0  ;;  %v5325_v6 = vpop.f32.mrb[52].mxu1 }
 0xb36   :  { %v14733_v7 = vadd.f32 %v5284_v5, %v14524_v37  ;;  %v14736_v8 = vadd.f32 %v5325_v6, %v14526_v18  ;;  %v5286_v42 = vpop.f32.mrb[105].mxu0  ;;  %v5327_v9 = vpop.f32.mrb[53].mxu1  ;;  %v12152_v18 = vld [vmem:[%s16042_s16 + $0x800] ss:$16 sps:$4 sm:$0xff]   ;;  %v12224_v5 = vld [vmem:[%s16042_s16 + $0x908] ss:$16 sps:$4 sm:$0xff]  }
 0xb37   :  { %v14739_v4 = vadd.f32 %v5286_v42, %v14528_v38  ;;  %v14742_v11 = vadd.f32 %v5327_v9, %v14530_v39  ;;  %v5288_v12 = vpop.f32.mrb[106].mxu0  ;;  %v5329_v13 = vpop.f32.mrb[54].mxu1  ;;  %v12157_v38 = vld [vmem:[%s16042_s16 + $0x824] ss:$16 sps:$4 sm:$0xff]   ;;  %v12202_v39 = vld [vmem:[%s16042_s16 + $0x80c] ss:$16 sps:$4 sm:$0xff]  }
 0xb38   :  { %v5289_v15 = vpop.f32.mrb[107].mxu0  ;;  %v5330_v19 = vpop.f32.mrb[55].mxu1  ;;  %v12187_v6 = vld [vmem:[%s16042_s16 + $0x964] ss:$16 sps:$4 sm:$0xff]   ;;  %v12229_v42 = vld [vmem:[%s16042_s16 + $0x92c] ss:$16 sps:$4 sm:$0xff]  }
 0xb39   :  { %v12185_v9 = vld [vmem:[%s16042_s16 + $0x960] ss:$16 sps:$4 sm:$0xff]   ;;  %v12227_v12 = vld [vmem:[%s16042_s16 + $0x928] ss:$16 sps:$4 sm:$0xff]   ;;  %v12190_v13 = vld [vmem:[%s16042_s16 + $0x984] ss:$16 sps:$4 sm:$0xff]  }
 0xb3a   :  { %v12232_v15 = vld [vmem:[%s16042_s16 + $0x94c] ss:$16 sps:$4 sm:$0xff]   ;;  %v12188_v19 = vld [vmem:[%s16042_s16 + $0x980] ss:$16 sps:$4 sm:$0xff]  }
 0xb3d   :  { %v5375_v20 = vpop.f32.mrb[108].mxu0 }
 0xb3e   :  { %v5377_v21 = vpop.f32.mrb[109].mxu0  ;;  %v5382_v22 = vpack.c.bf16 %v5375_v20, %v5375_v20  ;;  %v12230_v20 = vld [vmem:[%s16042_s16 + $0x948] ss:$16 sps:$4 sm:$0xff]  }
 0xb3f   :  { %v5383_v60 = vpack.c.bf16 %v5377_v21, %v5377_v21  ;;  %v5379_v37 = vpop.f32.mrb[110].mxu0  ;;  %v12193_v21 = vld [vmem:[%s16042_s16 + $0x9a4] ss:$16 sps:$4 sm:$0xff]  }
 0xb40   :  { %v5380_v23 = vpop.f32.mrb[111].mxu0  ;;  %v12191_v37 = vld [vmem:[%s16042_s16 + $0x9a0] ss:$16 sps:$4 sm:$0xff]  }
 0xb41   :  { %5801 = vmatprep.mubr.bf16.mxu1 %v5383_v60  ;;  %5842 = vmatprep.mubr.bf16.mxu0 %v5383_v60  ;;  %v12235_v60 = vld [vmem:[%s16042_s16 + $0x96c] ss:$16 sps:$4 sm:$0xff]  }
 0xb42   :  { %5802 = vmatmul.mubr.bf16.vlgmr.msra.gmra.mrb[56].mxu1 %v5382_v22  ;;  %5843 = vmatmul.mubr.bf16.vlgmr.msra.gmra.mrb[112].mxu0 %v5382_v22  ;;  %v12196_v22 = vld [vmem:[%s16042_s16 + $0x9c4] ss:$16 sps:$4 sm:$0xff]   ;;  %v12238_v23 = vld [vmem:[%s16042_s16 + $0x98c] ss:$16 sps:$4 sm:$0xff]  }
 0xb43   :  { %5861 = vmatpush1.bf16.msra.mxu1 %v13992_v0  ;;  %6289 = vmatpush1.bf16.msra.mxu0 %v12152_v18  ;;  %v12233_v18 = vld [vmem:[%s16042_s16 + $0x968] ss:$16 sps:$4 sm:$0xff]  }
 0xb44   :  { %6290 = vmatprep.subr.bf16.mxu0 %v12157_v38  ;;  %5892 = vmatprep.mubr.bf16.mxu1 %v12658_v52  ;;  %v12194_v38 = vld [vmem:[%s16042_s16 + $0x9c0] ss:$16 sps:$4 sm:$0xff]  }
 0xb45   :  { %6329 = vmatprep.subr.bf16.mxu1 %v12202_v39  ;;  %v12236_v39 = vld [vmem:[%s16042_s16 + $0x988] ss:$16 sps:$4 sm:$0xff]  }
 0xb47   :  { %6291 = vmatpush1.bf16.msra.mxu0 %v12155_v25  ;;  %v12199_v25 = vld [vmem:[%s16042_s16 + $0x9e4] ss:$16 sps:$4 sm:$0xff]  }
 0xb48   :  { %6292 = vmatprep.subr.bf16.mxu0 %v12160_v26  ;;  %v12197_v26 = vld [vmem:[%s16042_s16 + $0x9e0] ss:$16 sps:$4 sm:$0xff]  }
 0xb4a   :  { %9945 = vmatmul.mubr.msk.bf16.vlgmr.msra.gmra.mrb[60].mxu1 %vm3782_vm4, %v9943_v28  ;;  %v12239_v28 = vld [vmem:[%s16042_s16 + $0x9a8] ss:$16 sps:$4 sm:$0xff]  }
 0xb4b   :  { %6293 = vmatpush1.bf16.msra.mxu0 %v12158_v27  ;;  %6330 = vmatpush1.bf16.msra.mxu1 %v12200_v29  ;;  %v12241_v27 = vld [vmem:[%s16042_s16 + $0x9ac] ss:$16 sps:$4 sm:$0xff]   ;;  %v12242_v29 = vld [vmem:[%s16042_s16 + $0x9c8] ss:$16 sps:$4 sm:$0xff]  }
 0xb4c   :  { %6294 = vmatprep.subr.bf16.mxu0 %v12163_v30  ;;  %6331 = vmatprep.subr.bf16.mxu1 %v12205_v31  ;;  %v12244_v30 = vld [vmem:[%s16042_s16 + $0x9cc] ss:$16 sps:$4 sm:$0xff]  }
 0xb4d   :  { %v12247_v31 = vld [vmem:[%s16042_s16 + $0x9ec] ss:$16 sps:$4 sm:$0xff]  }
 0xb4f   :  { %6295 = vmatpush1.bf16.msra.mxu0 %v12161_v32  ;;  %6332 = vmatpush1.bf16.msra.mxu1 %v12203_v33  ;;  %v12245_v32 = vld [vmem:[%s16042_s16 + $0x9e8] ss:$16 sps:$4 sm:$0xff]   ;;  %v12250_v33 = vld [vmem:[%s16042_s16 + $0xa04] ss:$16 sps:$4 sm:$0xff]  }
 0xb50   :  { %6296 = vmatprep.subr.bf16.mxu0 %v12166_v36  ;;  %6333 = vmatprep.subr.bf16.mxu1 %v12208_v34 }
 0xb53   :  { %6297 = vmatpush1.bf16.msra.mxu0 %v12164_v35  ;;  %6334 = vmatpush1.bf16.msra.mxu1 %v12206_v17 }
 0xb54   :  { %6298 = vmatprep.subr.bf16.mxu0 %v12169_v14  ;;  %6335 = vmatprep.subr.bf16.mxu1 %v12211_v40 }
 0xb57   :  { %6299 = vmatpush1.bf16.msra.mxu0 %v12167_v41  ;;  %6336 = vmatpush1.bf16.msra.mxu1 %v12209_v43 }
 0xb58   :  { %6300 = vmatprep.subr.bf16.mxu0 %v12172_v16  ;;  %6337 = vmatprep.subr.bf16.mxu1 %v12214_v45 }
 0xb5b   :  { %6301 = vmatpush1.bf16.msra.mxu0 %v12170_v48  ;;  %6338 = vmatpush1.bf16.msra.mxu1 %v12212_v49 }
 0xb5c   :  { %6302 = vmatprep.subr.bf16.mxu0 %v12175_v50  ;;  %6339 = vmatprep.subr.bf16.mxu1 %v12217_v51 }
 0xb5f   :  { %6303 = vmatpush1.bf16.msra.mxu0 %v12173_v53  ;;  %6340 = vmatpush1.bf16.msra.mxu1 %v12215_v54 }
 0xb60   :  { %6304 = vmatprep.subr.bf16.mxu0 %v12178_v55  ;;  %6341 = vmatprep.subr.bf16.mxu1 %v12220_v56  ;;  %v12251_v56 = vld [vmem:[%s16042_s16 + $0xa20] ss:$16 sps:$4 sm:$0xff]  }
 0xb63   :  { %6305 = vmatpush1.bf16.msra.mxu0 %v12176_v58  ;;  %6342 = vmatpush1.bf16.msra.mxu1 %v12218_v59  ;;  %v12256_v58 = vld [vmem:[%s16042_s16 + $0xa44] ss:$16 sps:$4 sm:$0xff]   ;;  %v12254_v59 = vld [vmem:[%s16042_s16 + $0xa40] ss:$16 sps:$4 sm:$0xff]  }
 0xb64   :  { %6306 = vmatprep.subr.bf16.mxu0 %v12181_v61  ;;  %6343 = vmatprep.subr.bf16.mxu1 %v12223_v62  ;;  %v10074_v61 = vld [vmem:[%s16041_s15 + $0x5] sm:$0x1]  ;;  %v12296_v62 = vld [vmem:[%s16042_s16 + $0xa08] ss:$16 sps:$4 sm:$0xff]  }
 0xb67   :  { %6307 = vmatpush1.bf16.msra.mxu0 %v12179_v63  ;;  %6344 = vmatpush1.bf16.msra.mxu1 %v12221_v1  ;;  %v12259_v63 = vld [vmem:[%s16042_s16 + $0xa64] ss:$16 sps:$4 sm:$0xff]   ;;  %v12301_v1 = vld [vmem:[%s16042_s16 + $0xa2c] ss:$16 sps:$4 sm:$0xff]  }
 0xb68   :  { %6308 = vmatprep.subr.bf16.mxu0 %v12184_v2  ;;  %6345 = vmatprep.subr.bf16.mxu1 %v12226_v3  ;;  %v12257_v2 = vld [vmem:[%s16042_s16 + $0xa60] ss:$16 sps:$4 sm:$0xff]   ;;  %v12299_v3 = vld [vmem:[%s16042_s16 + $0xa28] ss:$16 sps:$4 sm:$0xff]  }
 0xb6b   :  { %6309 = vmatpush1.bf16.msra.mxu0 %v12182_v46  ;;  %6346 = vmatpush1.bf16.msra.mxu1 %v12224_v5  ;;  %v12262_v46 = vld [vmem:[%s16042_s16 + $0xa84] ss:$16 sps:$4 sm:$0xff]   ;;  %v12304_v5 = vld [vmem:[%s16042_s16 + $0xa4c] ss:$16 sps:$4 sm:$0xff]  }
 0xb6c   :  { %6310 = vmatprep.subr.bf16.mxu0 %v12187_v6  ;;  %6347 = vmatprep.subr.bf16.mxu1 %v12229_v42  ;;  %v12260_v6 = vld [vmem:[%s16042_s16 + $0xa80] ss:$16 sps:$4 sm:$0xff]   ;;  %v12302_v42 = vld [vmem:[%s16042_s16 + $0xa48] ss:$16 sps:$4 sm:$0xff]  }
 0xb6f   :  { %6311 = vmatpush1.bf16.msra.mxu0 %v12185_v9  ;;  %6348 = vmatpush1.bf16.msra.mxu1 %v12227_v12  ;;  %v12265_v9 = vld [vmem:[%s16042_s16 + $0xaa4] ss:$16 sps:$4 sm:$0xff]   ;;  %v12307_v12 = vld [vmem:[%s16042_s16 + $0xa6c] ss:$16 sps:$4 sm:$0xff]  }
 0xb70   :  { %6312 = vmatprep.subr.bf16.mxu0 %v12190_v13  ;;  %6349 = vmatprep.subr.bf16.mxu1 %v12232_v15  ;;  %v12263_v13 = vld [vmem:[%s16042_s16 + $0xaa0] ss:$16 sps:$4 sm:$0xff]   ;;  %v12305_v15 = vld [vmem:[%s16042_s16 + $0xa68] ss:$16 sps:$4 sm:$0xff]  }
 0xb73   :  { %6313 = vmatpush1.bf16.msra.mxu0 %v12188_v19  ;;  %6350 = vmatpush1.bf16.msra.mxu1 %v12230_v20  ;;  %v12268_v19 = vld [vmem:[%s16042_s16 + $0xac4] ss:$16 sps:$4 sm:$0xff]   ;;  %v12310_v20 = vld [vmem:[%s16042_s16 + $0xa8c] ss:$16 sps:$4 sm:$0xff]  }
 0xb74   :  { %6314 = vmatprep.subr.bf16.mxu0 %v12193_v21  ;;  %6351 = vmatprep.subr.bf16.mxu1 %v12235_v60  ;;  %v12266_v21 = vld [vmem:[%s16042_s16 + $0xac0] ss:$16 sps:$4 sm:$0xff]   ;;  %v12308_v60 = vld [vmem:[%s16042_s16 + $0xa88] ss:$16 sps:$4 sm:$0xff]  }
 0xb77   :  { %6315 = vmatpush1.bf16.msra.mxu0 %v12191_v37  ;;  %6352 = vmatpush1.bf16.msra.mxu1 %v12233_v18  ;;  %v12271_v37 = vld [vmem:[%s16042_s16 + $0xae4] ss:$16 sps:$4 sm:$0xff]   ;;  %v12313_v18 = vld [vmem:[%s16042_s16 + $0xaac] ss:$16 sps:$4 sm:$0xff]  }
 0xb78   :  { %6316 = vmatprep.subr.bf16.mxu0 %v12196_v22  ;;  %6353 = vmatprep.subr.bf16.mxu1 %v12238_v23  ;;  %v12269_v22 = vld [vmem:[%s16042_s16 + $0xae0] ss:$16 sps:$4 sm:$0xff]   ;;  %v12311_v23 = vld [vmem:[%s16042_s16 + $0xaa8] ss:$16 sps:$4 sm:$0xff]  }
 0xb7b   :  { %6317 = vmatpush1.bf16.msra.mxu0 %v12194_v38  ;;  %6354 = vmatpush1.bf16.msra.mxu1 %v12236_v39  ;;  %v12274_v38 = vld [vmem:[%s16042_s16 + $0xb04] ss:$16 sps:$4 sm:$0xff]   ;;  %v12316_v39 = vld [vmem:[%s16042_s16 + $0xacc] ss:$16 sps:$4 sm:$0xff]  }
 0xb7c   :  { %6318 = vmatprep.subr.bf16.mxu0 %v12199_v25  ;;  %6355 = vmatprep.subr.bf16.mxu1 %v12241_v27  ;;  %v12272_v25 = vld [vmem:[%s16042_s16 + $0xb00] ss:$16 sps:$4 sm:$0xff]   ;;  %v12277_v27 = vld [vmem:[%s16042_s16 + $0xb24] ss:$16 sps:$4 sm:$0xff]  }
 0xb7f   :  { %6319 = vmatpush1.bf16.msra.mxu0 %v12197_v26  ;;  %6356 = vmatpush1.bf16.msra.mxu1 %v12239_v28  ;;  %v12314_v26 = vld [vmem:[%s16042_s16 + $0xac8] ss:$16 sps:$4 sm:$0xff]   ;;  %v12319_v28 = vld [vmem:[%s16042_s16 + $0xaec] ss:$16 sps:$4 sm:$0xff]  }
 0xb80   :  { %10075 = vmatprep.subr.msk.bf16.mxu0 %vm3786_vm3, %v13989_v10  ;;  %6357 = vmatprep.subr.bf16.mxu1 %v12244_v30  ;;  %v12317_v30 = vld [vmem:[%s16042_s16 + $0xae8] ss:$16 sps:$4 sm:$0xff]  }
 0xb83   :  { %6358 = vmatpush1.bf16.msra.mxu1 %v12242_v29  ;;  %v12275_v29 = vld [vmem:[%s16042_s16 + $0xb20] ss:$16 sps:$4 sm:$0xff]  }
 0xb84   :  { %6359 = vmatprep.subr.bf16.mxu1 %v12247_v31  ;;  %v12280_v31 = vld [vmem:[%s16042_s16 + $0xb44] ss:$16 sps:$4 sm:$0xff]  }
 0xb87   :  { %6360 = vmatpush1.bf16.msra.mxu1 %v12245_v32  ;;  %v12322_v32 = vld [vmem:[%s16042_s16 + $0xb0c] ss:$16 sps:$4 sm:$0xff]  }
 0xb88   :  { %6807 = vmatprep.subr.bf16.mxu1 %v12250_v33  ;;  %v12278_v33 = vld [vmem:[%s16042_s16 + $0xb40] ss:$16 sps:$4 sm:$0xff]  }
 0xc15   :  { %v5803_v36 = vpop.f32.mrb[56].mxu1  ;;  %v5844_v34 = vpop.f32.mrb[112].mxu0 }
 0xc16   :  { %v14945_v35 = vadd.f32 %v5803_v36, %v14733_v7  ;;  %v14948_v17 = vadd.f32 %v5844_v34, %v14736_v8  ;;  %v5805_v14 = vpop.f32.mrb[57].mxu1  ;;  %v5846_v40 = vpop.f32.mrb[113].mxu0  ;;  %v12248_v8 = vld [vmem:[%s16042_s16 + $0xa00] ss:$16 sps:$4 sm:$0xff]   ;;  %v12320_v36 = vld [vmem:[%s16042_s16 + $0xb08] ss:$16 sps:$4 sm:$0xff]  }
 0xc17   :  { %v14951_v41 = vadd.f32 %v5805_v14, %v14739_v4  ;;  %v14954_v43 = vadd.f32 %v5846_v40, %v14742_v11  ;;  %v5807_v16 = vpop.f32.mrb[58].mxu1  ;;  %v5848_v45 = vpop.f32.mrb[114].mxu0  ;;  %v12253_v4 = vld [vmem:[%s16042_s16 + $0xa24] ss:$16 sps:$4 sm:$0xff]   ;;  %v12298_v11 = vld [vmem:[%s16042_s16 + $0xa0c] ss:$16 sps:$4 sm:$0xff]  }
 0xc18   :  { %v5808_v48 = vpop.f32.mrb[59].mxu1  ;;  %v5849_v49 = vpop.f32.mrb[115].mxu0  ;;  %v12283_v34 = vld [vmem:[%s16042_s16 + $0xb64] ss:$16 sps:$4 sm:$0xff]   ;;  %v12325_v14 = vld [vmem:[%s16042_s16 + $0xb2c] ss:$16 sps:$4 sm:$0xff]  }
 0xc19   :  { %v12281_v40 = vld [vmem:[%s16042_s16 + $0xb60] ss:$16 sps:$4 sm:$0xff]   ;;  %v12323_v16 = vld [vmem:[%s16042_s16 + $0xb28] ss:$16 sps:$4 sm:$0xff]   ;;  %v12286_v45 = vld [vmem:[%s16042_s16 + $0xb84] ss:$16 sps:$4 sm:$0xff]  }
 0xc1a   :  { %v12328_v48 = vld [vmem:[%s16042_s16 + $0xb4c] ss:$16 sps:$4 sm:$0xff]   ;;  %v12284_v49 = vld [vmem:[%s16042_s16 + $0xb80] ss:$16 sps:$4 sm:$0xff]  }
 0xc1d   :  { %v5894_v50 = vpop.f32.mrb[60].mxu1 }
 0xc1e   :  { %v5896_v51 = vpop.f32.mrb[61].mxu1  ;;  %v5901_v54 = vpack.c.bf16 %v5894_v50, %v5894_v50  ;;  %v12326_v50 = vld [vmem:[%s16042_s16 + $0xb48] ss:$16 sps:$4 sm:$0xff]  }
 0xc1f   :  { %v5902_v53 = vpack.c.bf16 %v5896_v51, %v5896_v51  ;;  %v5898_v7 = vpop.f32.mrb[62].mxu1  ;;  %v12289_v51 = vld [vmem:[%s16042_s16 + $0xba4] ss:$16 sps:$4 sm:$0xff]  }
 0xc20   :  { %v5899_v55 = vpop.f32.mrb[63].mxu1  ;;  %v12287_v7 = vld [vmem:[%s16042_s16 + $0xba0] ss:$16 sps:$4 sm:$0xff]  }
 0xc21   :  { %6320 = vmatprep.mubr.bf16.mxu0 %v5902_v53  ;;  %6361 = vmatprep.mubr.bf16.mxu1 %v5902_v53  ;;  %v12331_v53 = vld [vmem:[%s16042_s16 + $0xb6c] ss:$16 sps:$4 sm:$0xff]  }
 0xc22   :  { %6321 = vmatmul.mubr.bf16.vlgmr.msra.gmra.mrb[116].mxu0 %v5901_v54  ;;  %6362 = vmatmul.mubr.bf16.vlgmr.msra.gmra.mrb[64].mxu1 %v5901_v54  ;;  %v12292_v54 = vld [vmem:[%s16042_s16 + $0xbc4] ss:$16 sps:$4 sm:$0xff]   ;;  %v12334_v55 = vld [vmem:[%s16042_s16 + $0xb8c] ss:$16 sps:$4 sm:$0xff]  }
 0xc23   :  { %6380 = vmatpush1.bf16.msra.mxu0 %v13992_v0  ;;  %6808 = vmatpush1.bf16.msra.mxu1 %v12248_v8  ;;  %v12329_v8 = vld [vmem:[%s16042_s16 + $0xb68] ss:$16 sps:$4 sm:$0xff]  }
 0xc24   :  { %6809 = vmatprep.subr.bf16.mxu1 %v12253_v4  ;;  %6411 = vmatprep.mubr.bf16.mxu0 %v12658_v52  ;;  %v12290_v4 = vld [vmem:[%s16042_s16 + $0xbc0] ss:$16 sps:$4 sm:$0xff]  }
 0xc25   :  { %6848 = vmatprep.subr.bf16.mxu0 %v12298_v11  ;;  %v12332_v11 = vld [vmem:[%s16042_s16 + $0xb88] ss:$16 sps:$4 sm:$0xff]  }
 0xc27   :  { %6810 = vmatpush1.bf16.msra.mxu1 %v12251_v56  ;;  %v12295_v56 = vld [vmem:[%s16042_s16 + $0xbe4] ss:$16 sps:$4 sm:$0xff]  }
 0xc28   :  { %6811 = vmatprep.subr.bf16.mxu1 %v12256_v58  ;;  %v12293_v58 = vld [vmem:[%s16042_s16 + $0xbe0] ss:$16 sps:$4 sm:$0xff]  }
 0xc2a   :  { %10076 = vmatmul.mubr.msk.bf16.vlgmr.msra.gmra.mrb[120].mxu0 %vm3782_vm4, %v10074_v61  ;;  %v12335_v61 = vld [vmem:[%s16042_s16 + $0xba8] ss:$16 sps:$4 sm:$0xff]  }
 0xc2b   :  { %6812 = vmatpush1.bf16.msra.mxu1 %v12254_v59  ;;  %6849 = vmatpush1.bf16.msra.mxu0 %v12296_v62  ;;  %v12337_v59 = vld [vmem:[%s16042_s16 + $0xbac] ss:$16 sps:$4 sm:$0xff]   ;;  %v12338_v62 = vld [vmem:[%s16042_s16 + $0xbc8] ss:$16 sps:$4 sm:$0xff]  }
 0xc2c   :  { %6813 = vmatprep.subr.bf16.mxu1 %v12259_v63  ;;  %6850 = vmatprep.subr.bf16.mxu0 %v12301_v1  ;;  %v12340_v63 = vld [vmem:[%s16042_s16 + $0xbcc] ss:$16 sps:$4 sm:$0xff]  }
 0xc2d   :  { %v12343_v1 = vld [vmem:[%s16042_s16 + $0xbec] ss:$16 sps:$4 sm:$0xff]  }
 0xc2f   :  { %6814 = vmatpush1.bf16.msra.mxu1 %v12257_v2  ;;  %6851 = vmatpush1.bf16.msra.mxu0 %v12299_v3  ;;  %v12341_v2 = vld [vmem:[%s16042_s16 + $0xbe8] ss:$16 sps:$4 sm:$0xff]   ;;  %v12346_v3 = vld [vmem:[%s16042_s16 + $0xc04] ss:$16 sps:$4 sm:$0xff]  }
 0xc30   :  { %6815 = vmatprep.subr.bf16.mxu1 %v12262_v46  ;;  %6852 = vmatprep.subr.bf16.mxu0 %v12304_v5 }
 0xc33   :  { %6816 = vmatpush1.bf16.msra.mxu1 %v12260_v6  ;;  %6853 = vmatpush1.bf16.msra.mxu0 %v12302_v42 }
 0xc34   :  { %6817 = vmatprep.subr.bf16.mxu1 %v12265_v9  ;;  %6854 = vmatprep.subr.bf16.mxu0 %v12307_v12 }
 0xc37   :  { %6818 = vmatpush1.bf16.msra.mxu1 %v12263_v13  ;;  %6855 = vmatpush1.bf16.msra.mxu0 %v12305_v15 }
 0xc38   :  { %6819 = vmatprep.subr.bf16.mxu1 %v12268_v19  ;;  %6856 = vmatprep.subr.bf16.mxu0 %v12310_v20 }
 0xc3b   :  { %6820 = vmatpush1.bf16.msra.mxu1 %v12266_v21  ;;  %6857 = vmatpush1.bf16.msra.mxu0 %v12308_v60 }
 0xc3c   :  { %6821 = vmatprep.subr.bf16.mxu1 %v12271_v37  ;;  %6858 = vmatprep.subr.bf16.mxu0 %v12313_v18 }
 0xc3f   :  { %6822 = vmatpush1.bf16.msra.mxu1 %v12269_v22  ;;  %6859 = vmatpush1.bf16.msra.mxu0 %v12311_v23 }
 0xc40   :  { %6823 = vmatprep.subr.bf16.mxu1 %v12274_v38  ;;  %6860 = vmatprep.subr.bf16.mxu0 %v12316_v39  ;;  %v12347_v39 = vld [vmem:[%s16042_s16 + $0xc20] ss:$16 sps:$4 sm:$0xff]  }
 0xc43   :  { %6824 = vmatpush1.bf16.msra.mxu1 %v12272_v25  ;;  %6861 = vmatpush1.bf16.msra.mxu0 %v12314_v26  ;;  %v12352_v25 = vld [vmem:[%s16042_s16 + $0xc44] ss:$16 sps:$4 sm:$0xff]   ;;  %v12350_v26 = vld [vmem:[%s16042_s16 + $0xc40] ss:$16 sps:$4 sm:$0xff]  }
 0xc44   :  { %6825 = vmatprep.subr.bf16.mxu1 %v12277_v27  ;;  %6862 = vmatprep.subr.bf16.mxu0 %v12319_v28  ;;  %v10205_v27 = vld [vmem:[%s16041_s15 + $0x6] sm:$0x1]  ;;  %v12392_v28 = vld [vmem:[%s16042_s16 + $0xc08] ss:$16 sps:$4 sm:$0xff]  }
 0xc47   :  { %6826 = vmatpush1.bf16.msra.mxu1 %v12275_v29  ;;  %6863 = vmatpush1.bf16.msra.mxu0 %v12317_v30  ;;  %v12355_v29 = vld [vmem:[%s16042_s16 + $0xc64] ss:$16 sps:$4 sm:$0xff]   ;;  %v12397_v30 = vld [vmem:[%s16042_s16 + $0xc2c] ss:$16 sps:$4 sm:$0xff]  }
 0xc48   :  { %6827 = vmatprep.subr.bf16.mxu1 %v12280_v31  ;;  %6864 = vmatprep.subr.bf16.mxu0 %v12322_v32  ;;  %v12353_v31 = vld [vmem:[%s16042_s16 + $0xc60] ss:$16 sps:$4 sm:$0xff]   ;;  %v12395_v32 = vld [vmem:[%s16042_s16 + $0xc28] ss:$16 sps:$4 sm:$0xff]  }
 0xc4b   :  { %6828 = vmatpush1.bf16.msra.mxu1 %v12278_v33  ;;  %6865 = vmatpush1.bf16.msra.mxu0 %v12320_v36  ;;  %v12358_v33 = vld [vmem:[%s16042_s16 + $0xc84] ss:$16 sps:$4 sm:$0xff]   ;;  %v12400_v36 = vld [vmem:[%s16042_s16 + $0xc4c] ss:$16 sps:$4 sm:$0xff]  }
 0xc4c   :  { %6829 = vmatprep.subr.bf16.mxu1 %v12283_v34  ;;  %6866 = vmatprep.subr.bf16.mxu0 %v12325_v14  ;;  %v12356_v34 = vld [vmem:[%s16042_s16 + $0xc80] ss:$16 sps:$4 sm:$0xff]   ;;  %v12398_v14 = vld [vmem:[%s16042_s16 + $0xc48] ss:$16 sps:$4 sm:$0xff]  }
 0xc4f   :  { %6830 = vmatpush1.bf16.msra.mxu1 %v12281_v40  ;;  %6867 = vmatpush1.bf16.msra.mxu0 %v12323_v16  ;;  %v12361_v40 = vld [vmem:[%s16042_s16 + $0xca4] ss:$16 sps:$4 sm:$0xff]   ;;  %v12403_v16 = vld [vmem:[%s16042_s16 + $0xc6c] ss:$16 sps:$4 sm:$0xff]  }
 0xc50   :  { %6831 = vmatprep.subr.bf16.mxu1 %v12286_v45  ;;  %6868 = vmatprep.subr.bf16.mxu0 %v12328_v48  ;;  %v12359_v45 = vld [vmem:[%s16042_s16 + $0xca0] ss:$16 sps:$4 sm:$0xff]   ;;  %v12401_v48 = vld [vmem:[%s16042_s16 + $0xc68] ss:$16 sps:$4 sm:$0xff]  }
 0xc53   :  { %6832 = vmatpush1.bf16.msra.mxu1 %v12284_v49  ;;  %6869 = vmatpush1.bf16.msra.mxu0 %v12326_v50  ;;  %v12364_v49 = vld [vmem:[%s16042_s16 + $0xcc4] ss:$16 sps:$4 sm:$0xff]   ;;  %v12406_v50 = vld [vmem:[%s16042_s16 + $0xc8c] ss:$16 sps:$4 sm:$0xff]  }
 0xc54   :  { %6833 = vmatprep.subr.bf16.mxu1 %v12289_v51  ;;  %6870 = vmatprep.subr.bf16.mxu0 %v12331_v53  ;;  %v12362_v51 = vld [vmem:[%s16042_s16 + $0xcc0] ss:$16 sps:$4 sm:$0xff]   ;;  %v12404_v53 = vld [vmem:[%s16042_s16 + $0xc88] ss:$16 sps:$4 sm:$0xff]  }
 0xc57   :  { %6834 = vmatpush1.bf16.msra.mxu1 %v12287_v7  ;;  %6871 = vmatpush1.bf16.msra.mxu0 %v12329_v8  ;;  %v12367_v7 = vld [vmem:[%s16042_s16 + $0xce4] ss:$16 sps:$4 sm:$0xff]   ;;  %v12409_v8 = vld [vmem:[%s16042_s16 + $0xcac] ss:$16 sps:$4 sm:$0xff]  }
 0xc58   :  { %6835 = vmatprep.subr.bf16.mxu1 %v12292_v54  ;;  %6872 = vmatprep.subr.bf16.mxu0 %v12334_v55  ;;  %v12365_v54 = vld [vmem:[%s16042_s16 + $0xce0] ss:$16 sps:$4 sm:$0xff]   ;;  %v12407_v55 = vld [vmem:[%s16042_s16 + $0xca8] ss:$16 sps:$4 sm:$0xff]  }
 0xc5b   :  { %6836 = vmatpush1.bf16.msra.mxu1 %v12290_v4  ;;  %6873 = vmatpush1.bf16.msra.mxu0 %v12332_v11  ;;  %v12370_v4 = vld [vmem:[%s16042_s16 + $0xd04] ss:$16 sps:$4 sm:$0xff]   ;;  %v12412_v11 = vld [vmem:[%s16042_s16 + $0xccc] ss:$16 sps:$4 sm:$0xff]  }
 0xc5c   :  { %6837 = vmatprep.subr.bf16.mxu1 %v12295_v56  ;;  %6874 = vmatprep.subr.bf16.mxu0 %v12337_v59  ;;  %v12368_v56 = vld [vmem:[%s16042_s16 + $0xd00] ss:$16 sps:$4 sm:$0xff]   ;;  %v12373_v59 = vld [vmem:[%s16042_s16 + $0xd24] ss:$16 sps:$4 sm:$0xff]  }
 0xc5f   :  { %6838 = vmatpush1.bf16.msra.mxu1 %v12293_v58  ;;  %6875 = vmatpush1.bf16.msra.mxu0 %v12335_v61  ;;  %v12410_v58 = vld [vmem:[%s16042_s16 + $0xcc8] ss:$16 sps:$4 sm:$0xff]   ;;  %v12415_v61 = vld [vmem:[%s16042_s16 + $0xcec] ss:$16 sps:$4 sm:$0xff]  }
 0xc60   :  { %10206 = vmatprep.subr.msk.bf16.mxu1 %vm3786_vm3, %v13989_v10  ;;  %6876 = vmatprep.subr.bf16.mxu0 %v12340_v63  ;;  %v12413_v63 = vld [vmem:[%s16042_s16 + $0xce8] ss:$16 sps:$4 sm:$0xff]  }
 0xc63   :  { %6877 = vmatpush1.bf16.msra.mxu0 %v12338_v62  ;;  %v12371_v62 = vld [vmem:[%s16042_s16 + $0xd20] ss:$16 sps:$4 sm:$0xff]  }
 0xc64   :  { %6878 = vmatprep.subr.bf16.mxu0 %v12343_v1  ;;  %v12376_v1 = vld [vmem:[%s16042_s16 + $0xd44] ss:$16 sps:$4 sm:$0xff]  }
 0xc67   :  { %6879 = vmatpush1.bf16.msra.mxu0 %v12341_v2  ;;  %v12418_v2 = vld [vmem:[%s16042_s16 + $0xd0c] ss:$16 sps:$4 sm:$0xff]  }
 0xc68   :  { %7326 = vmatprep.subr.bf16.mxu0 %v12346_v3  ;;  %v12374_v3 = vld [vmem:[%s16042_s16 + $0xd40] ss:$16 sps:$4 sm:$0xff]  }
 0xcf5   :  { %v6322_v46 = vpop.f32.mrb[116].mxu0  ;;  %v6363_v5 = vpop.f32.mrb[64].mxu1 }
 0xcf6   :  { %v15157_v6 = vadd.f32 %v6322_v46, %v14945_v35  ;;  %v15160_v42 = vadd.f32 %v6363_v5, %v14948_v17  ;;  %v6324_v9 = vpop.f32.mrb[117].mxu0  ;;  %v6365_v12 = vpop.f32.mrb[65].mxu1  ;;  %v12344_v17 = vld [vmem:[%s16042_s16 + $0xc00] ss:$16 sps:$4 sm:$0xff]   ;;  %v12416_v46 = vld [vmem:[%s16042_s16 + $0xd08] ss:$16 sps:$4 sm:$0xff]  }
 0xcf7   :  { %v15163_v13 = vadd.f32 %v6324_v9, %v14951_v41  ;;  %v15166_v15 = vadd.f32 %v6365_v12, %v14954_v43  ;;  %v6326_v19 = vpop.f32.mrb[118].mxu0  ;;  %v6367_v20 = vpop.f32.mrb[66].mxu1  ;;  %v12349_v41 = vld [vmem:[%s16042_s16 + $0xc24] ss:$16 sps:$4 sm:$0xff]   ;;  %v12394_v43 = vld [vmem:[%s16042_s16 + $0xc0c] ss:$16 sps:$4 sm:$0xff]  }
 0xcf8   :  { %v6327_v21 = vpop.f32.mrb[119].mxu0  ;;  %v6368_v60 = vpop.f32.mrb[67].mxu1  ;;  %v12379_v5 = vld [vmem:[%s16042_s16 + $0xd64] ss:$16 sps:$4 sm:$0xff]   ;;  %v12421_v9 = vld [vmem:[%s16042_s16 + $0xd2c] ss:$16 sps:$4 sm:$0xff]  }
 0xcf9   :  { %v12377_v12 = vld [vmem:[%s16042_s16 + $0xd60] ss:$16 sps:$4 sm:$0xff]   ;;  %v12419_v19 = vld [vmem:[%s16042_s16 + $0xd28] ss:$16 sps:$4 sm:$0xff]   ;;  %v12382_v20 = vld [vmem:[%s16042_s16 + $0xd84] ss:$16 sps:$4 sm:$0xff]  }
 0xcfa   :  { %v12424_v21 = vld [vmem:[%s16042_s16 + $0xd4c] ss:$16 sps:$4 sm:$0xff]   ;;  %v12380_v60 = vld [vmem:[%s16042_s16 + $0xd80] ss:$16 sps:$4 sm:$0xff]  }
 0xcfd   :  { %v6413_v37 = vpop.f32.mrb[120].mxu0 }
 0xcfe   :  { %v6415_v18 = vpop.f32.mrb[121].mxu0  ;;  %v6420_v23 = vpack.c.bf16 %v6413_v37, %v6413_v37  ;;  %v12422_v37 = vld [vmem:[%s16042_s16 + $0xd48] ss:$16 sps:$4 sm:$0xff]  }
 0xcff   :  { %v6421_v22 = vpack.c.bf16 %v6415_v18, %v6415_v18  ;;  %v6417_v35 = vpop.f32.mrb[122].mxu0  ;;  %v12385_v18 = vld [vmem:[%s16042_s16 + $0xda4] ss:$16 sps:$4 sm:$0xff]  }
 0xd00   :  { %v6418_v38 = vpop.f32.mrb[123].mxu0  ;;  %v12383_v35 = vld [vmem:[%s16042_s16 + $0xda0] ss:$16 sps:$4 sm:$0xff]  }
 0xd01   :  { %6839 = vmatprep.mubr.bf16.mxu1 %v6421_v22  ;;  %6880 = vmatprep.mubr.bf16.mxu0 %v6421_v22  ;;  %v12427_v22 = vld [vmem:[%s16042_s16 + $0xd6c] ss:$16 sps:$4 sm:$0xff]  }
 0xd02   :  { %6840 = vmatmul.mubr.bf16.vlgmr.msra.gmra.mrb[68].mxu1 %v6420_v23  ;;  %6881 = vmatmul.mubr.bf16.vlgmr.msra.gmra.mrb[124].mxu0 %v6420_v23  ;;  %v12388_v23 = vld [vmem:[%s16042_s16 + $0xdc4] ss:$16 sps:$4 sm:$0xff]   ;;  %v12430_v38 = vld [vmem:[%s16042_s16 + $0xd8c] ss:$16 sps:$4 sm:$0xff]  }
 0xd03   :  { %6899 = vmatpush1.bf16.msra.mxu1 %v13992_v0  ;;  %7327 = vmatpush1.bf16.msra.mxu0 %v12344_v17  ;;  %v12425_v17 = vld [vmem:[%s16042_s16 + $0xd68] ss:$16 sps:$4 sm:$0xff]  }
 0xd04   :  { %7328 = vmatprep.subr.bf16.mxu0 %v12349_v41  ;;  %6930 = vmatprep.mubr.bf16.mxu1 %v12658_v52  ;;  %v12386_v41 = vld [vmem:[%s16042_s16 + $0xdc0] ss:$16 sps:$4 sm:$0xff]  }
 0xd05   :  { %7367 = vmatprep.subr.bf16.mxu1 %v12394_v43  ;;  %v12428_v43 = vld [vmem:[%s16042_s16 + $0xd88] ss:$16 sps:$4 sm:$0xff]  }
 0xd07   :  { %7329 = vmatpush1.bf16.msra.mxu0 %v12347_v39  ;;  %v12391_v39 = vld [vmem:[%s16042_s16 + $0xde4] ss:$16 sps:$4 sm:$0xff]  }
 0xd08   :  { %7330 = vmatprep.subr.bf16.mxu0 %v12352_v25  ;;  %v12389_v25 = vld [vmem:[%s16042_s16 + $0xde0] ss:$16 sps:$4 sm:$0xff]  }
 0xd0a   :  { %10207 = vmatmul.mubr.msk.bf16.vlgmr.msra.gmra.mrb[72].mxu1 %vm3782_vm4, %v10205_v27  ;;  %v12431_v27 = vld [vmem:[%s16042_s16 + $0xda8] ss:$16 sps:$4 sm:$0xff]  }
 0xd0b   :  { %7331 = vmatpush1.bf16.msra.mxu0 %v12350_v26  ;;  %7368 = vmatpush1.bf16.msra.mxu1 %v12392_v28  ;;  %v12433_v26 = vld [vmem:[%s16042_s16 + $0xdac] ss:$16 sps:$4 sm:$0xff]   ;;  %v12434_v28 = vld [vmem:[%s16042_s16 + $0xdc8] ss:$16 sps:$4 sm:$0xff]  }
 0xd0c   :  { %7332 = vmatprep.subr.bf16.mxu0 %v12355_v29  ;;  %7369 = vmatprep.subr.bf16.mxu1 %v12397_v30  ;;  %v12436_v29 = vld [vmem:[%s16042_s16 + $0xdcc] ss:$16 sps:$4 sm:$0xff]  }
 0xd0d   :  { %v12439_v30 = vld [vmem:[%s16042_s16 + $0xdec] ss:$16 sps:$4 sm:$0xff]  }
 0xd0f   :  { %7333 = vmatpush1.bf16.msra.mxu0 %v12353_v31  ;;  %7370 = vmatpush1.bf16.msra.mxu1 %v12395_v32  ;;  %v12437_v31 = vld [vmem:[%s16042_s16 + $0xde8] ss:$16 sps:$4 sm:$0xff]   ;;  %v12442_v32 = vld [vmem:[%s16042_s16 + $0xe04] ss:$16 sps:$4 sm:$0xff]  }
 0xd10   :  { %7334 = vmatprep.subr.bf16.mxu0 %v12358_v33  ;;  %7371 = vmatprep.subr.bf16.mxu1 %v12400_v36 }
 0xd13   :  { %7335 = vmatpush1.bf16.msra.mxu0 %v12356_v34  ;;  %7372 = vmatpush1.bf16.msra.mxu1 %v12398_v14 }
 0xd14   :  { %7336 = vmatprep.subr.bf16.mxu0 %v12361_v40  ;;  %7373 = vmatprep.subr.bf16.mxu1 %v12403_v16 }
 0xd17   :  { %7337 = vmatpush1.bf16.msra.mxu0 %v12359_v45  ;;  %7374 = vmatpush1.bf16.msra.mxu1 %v12401_v48 }
 0xd18   :  { %7338 = vmatprep.subr.bf16.mxu0 %v12364_v49  ;;  %7375 = vmatprep.subr.bf16.mxu1 %v12406_v50 }
 0xd1b   :  { %7339 = vmatpush1.bf16.msra.mxu0 %v12362_v51  ;;  %7376 = vmatpush1.bf16.msra.mxu1 %v12404_v53 }
 0xd1c   :  { %7340 = vmatprep.subr.bf16.mxu0 %v12367_v7  ;;  %7377 = vmatprep.subr.bf16.mxu1 %v12409_v8 }
 0xd1f   :  { %7341 = vmatpush1.bf16.msra.mxu0 %v12365_v54  ;;  %7378 = vmatpush1.bf16.msra.mxu1 %v12407_v55 }
 0xd20   :  { %7342 = vmatprep.subr.bf16.mxu0 %v12370_v4  ;;  %7379 = vmatprep.subr.bf16.mxu1 %v12412_v11  ;;  %v12443_v11 = vld [vmem:[%s16042_s16 + $0xe20] ss:$16 sps:$4 sm:$0xff]  }
 0xd23   :  { %7343 = vmatpush1.bf16.msra.mxu0 %v12368_v56  ;;  %7380 = vmatpush1.bf16.msra.mxu1 %v12410_v58  ;;  %v12448_v56 = vld [vmem:[%s16042_s16 + $0xe44] ss:$16 sps:$4 sm:$0xff]   ;;  %v12446_v58 = vld [vmem:[%s16042_s16 + $0xe40] ss:$16 sps:$4 sm:$0xff]  }
 0xd24   :  { %7344 = vmatprep.subr.bf16.mxu0 %v12373_v59  ;;  %7381 = vmatprep.subr.bf16.mxu1 %v12415_v61  ;;  %v10336_v59 = vld [vmem:[%s16041_s15 + $0x7] sm:$0x1]  ;;  %v12488_v61 = vld [vmem:[%s16042_s16 + $0xe08] ss:$16 sps:$4 sm:$0xff]  }
 0xd27   :  { %7345 = vmatpush1.bf16.msra.mxu0 %v12371_v62  ;;  %7382 = vmatpush1.bf16.msra.mxu1 %v12413_v63  ;;  %v12451_v62 = vld [vmem:[%s16042_s16 + $0xe64] ss:$16 sps:$4 sm:$0xff]   ;;  %v12493_v63 = vld [vmem:[%s16042_s16 + $0xe2c] ss:$16 sps:$4 sm:$0xff]  }
 0xd28   :  { %7346 = vmatprep.subr.bf16.mxu0 %v12376_v1  ;;  %7383 = vmatprep.subr.bf16.mxu1 %v12418_v2  ;;  %v12449_v1 = vld [vmem:[%s16042_s16 + $0xe60] ss:$16 sps:$4 sm:$0xff]   ;;  %v12491_v2 = vld [vmem:[%s16042_s16 + $0xe28] ss:$16 sps:$4 sm:$0xff]  }
 0xd2b   :  { %7347 = vmatpush1.bf16.msra.mxu0 %v12374_v3  ;;  %7384 = vmatpush1.bf16.msra.mxu1 %v12416_v46  ;;  %v12454_v3 = vld [vmem:[%s16042_s16 + $0xe84] ss:$16 sps:$4 sm:$0xff]   ;;  %v12496_v46 = vld [vmem:[%s16042_s16 + $0xe4c] ss:$16 sps:$4 sm:$0xff]  }
 0xd2c   :  { %7348 = vmatprep.subr.bf16.mxu0 %v12379_v5  ;;  %7385 = vmatprep.subr.bf16.mxu1 %v12421_v9  ;;  %v12452_v5 = vld [vmem:[%s16042_s16 + $0xe80] ss:$16 sps:$4 sm:$0xff]   ;;  %v12494_v9 = vld [vmem:[%s16042_s16 + $0xe48] ss:$16 sps:$4 sm:$0xff]  }
 0xd2f   :  { %7349 = vmatpush1.bf16.msra.mxu0 %v12377_v12  ;;  %7386 = vmatpush1.bf16.msra.mxu1 %v12419_v19  ;;  %v12457_v12 = vld [vmem:[%s16042_s16 + $0xea4] ss:$16 sps:$4 sm:$0xff]   ;;  %v12499_v19 = vld [vmem:[%s16042_s16 + $0xe6c] ss:$16 sps:$4 sm:$0xff]  }
 0xd30   :  { %7350 = vmatprep.subr.bf16.mxu0 %v12382_v20  ;;  %7387 = vmatprep.subr.bf16.mxu1 %v12424_v21  ;;  %v12455_v20 = vld [vmem:[%s16042_s16 + $0xea0] ss:$16 sps:$4 sm:$0xff]   ;;  %v12497_v21 = vld [vmem:[%s16042_s16 + $0xe68] ss:$16 sps:$4 sm:$0xff]  }
 0xd33   :  { %7351 = vmatpush1.bf16.msra.mxu0 %v12380_v60  ;;  %7388 = vmatpush1.bf16.msra.mxu1 %v12422_v37  ;;  %v12460_v60 = vld [vmem:[%s16042_s16 + $0xec4] ss:$16 sps:$4 sm:$0xff]   ;;  %v12502_v37 = vld [vmem:[%s16042_s16 + $0xe8c] ss:$16 sps:$4 sm:$0xff]  }
 0xd34   :  { %7352 = vmatprep.subr.bf16.mxu0 %v12385_v18  ;;  %7389 = vmatprep.subr.bf16.mxu1 %v12427_v22  ;;  %v12458_v18 = vld [vmem:[%s16042_s16 + $0xec0] ss:$16 sps:$4 sm:$0xff]   ;;  %v12500_v22 = vld [vmem:[%s16042_s16 + $0xe88] ss:$16 sps:$4 sm:$0xff]  }
 0xd37   :  { %7353 = vmatpush1.bf16.msra.mxu0 %v12383_v35  ;;  %7390 = vmatpush1.bf16.msra.mxu1 %v12425_v17  ;;  %v12463_v35 = vld [vmem:[%s16042_s16 + $0xee4] ss:$16 sps:$4 sm:$0xff]   ;;  %v12505_v17 = vld [vmem:[%s16042_s16 + $0xeac] ss:$16 sps:$4 sm:$0xff]  }
 0xd38   :  { %7354 = vmatprep.subr.bf16.mxu0 %v12388_v23  ;;  %7391 = vmatprep.subr.bf16.mxu1 %v12430_v38  ;;  %v12461_v23 = vld [vmem:[%s16042_s16 + $0xee0] ss:$16 sps:$4 sm:$0xff]   ;;  %v12503_v38 = vld [vmem:[%s16042_s16 + $0xea8] ss:$16 sps:$4 sm:$0xff]  }
 0xd3b   :  { %7355 = vmatpush1.bf16.msra.mxu0 %v12386_v41  ;;  %7392 = vmatpush1.bf16.msra.mxu1 %v12428_v43  ;;  %v12466_v41 = vld [vmem:[%s16042_s16 + $0xf04] ss:$16 sps:$4 sm:$0xff]   ;;  %v12508_v43 = vld [vmem:[%s16042_s16 + $0xecc] ss:$16 sps:$4 sm:$0xff]  }
 0xd3c   :  { %7356 = vmatprep.subr.bf16.mxu0 %v12391_v39  ;;  %7393 = vmatprep.subr.bf16.mxu1 %v12433_v26  ;;  %v12464_v39 = vld [vmem:[%s16042_s16 + $0xf00] ss:$16 sps:$4 sm:$0xff]   ;;  %v12469_v26 = vld [vmem:[%s16042_s16 + $0xf24] ss:$16 sps:$4 sm:$0xff]  }
 0xd3f   :  { %7357 = vmatpush1.bf16.msra.mxu0 %v12389_v25  ;;  %7394 = vmatpush1.bf16.msra.mxu1 %v12431_v27  ;;  %v12506_v25 = vld [vmem:[%s16042_s16 + $0xec8] ss:$16 sps:$4 sm:$0xff]   ;;  %v12511_v27 = vld [vmem:[%s16042_s16 + $0xeec] ss:$16 sps:$4 sm:$0xff]  }
 0xd40   :  { %10337 = vmatprep.subr.msk.bf16.mxu0 %vm3786_vm3, %v13989_v10  ;;  %7395 = vmatprep.subr.bf16.mxu1 %v12436_v29  ;;  %v12509_v29 = vld [vmem:[%s16042_s16 + $0xee8] ss:$16 sps:$4 sm:$0xff]  }
 0xd43   :  { %7396 = vmatpush1.bf16.msra.mxu1 %v12434_v28  ;;  %v12467_v28 = vld [vmem:[%s16042_s16 + $0xf20] ss:$16 sps:$4 sm:$0xff]  }
 0xd44   :  { %7397 = vmatprep.subr.bf16.mxu1 %v12439_v30  ;;  %v12472_v30 = vld [vmem:[%s16042_s16 + $0xf44] ss:$16 sps:$4 sm:$0xff]  }
 0xd47   :  { %7398 = vmatpush1.bf16.msra.mxu1 %v12437_v31  ;;  %v12514_v31 = vld [vmem:[%s16042_s16 + $0xf0c] ss:$16 sps:$4 sm:$0xff]  }
 0xd48   :  { %7845 = vmatprep.subr.bf16.mxu1 %v12442_v32  ;;  %v12470_v32 = vld [vmem:[%s16042_s16 + $0xf40] ss:$16 sps:$4 sm:$0xff]  }
 0xdd5   :  { %v6841_v33 = vpop.f32.mrb[68].mxu1  ;;  %v6882_v36 = vpop.f32.mrb[124].mxu0 }
 0xdd6   :  { %v15369_v34 = vadd.f32 %v6841_v33, %v15157_v6  ;;  %v15372_v14 = vadd.f32 %v6882_v36, %v15160_v42  ;;  %v6843_v40 = vpop.f32.mrb[69].mxu1  ;;  %v6884_v16 = vpop.f32.mrb[125].mxu0  ;;  %v12440_v42 = vld [vmem:[%s16042_s16 + $0xe00] ss:$16 sps:$4 sm:$0xff]   ;;  %v12512_v33 = vld [vmem:[%s16042_s16 + $0xf08] ss:$16 sps:$4 sm:$0xff]  }
 0xdd7   :  { %v15375_v45 = vadd.f32 %v6843_v40, %v15163_v13  ;;  %v15378_v48 = vadd.f32 %v6884_v16, %v15166_v15  ;;  %v6845_v49 = vpop.f32.mrb[70].mxu1  ;;  %v6886_v50 = vpop.f32.mrb[126].mxu0  ;;  %v12445_v13 = vld [vmem:[%s16042_s16 + $0xe24] ss:$16 sps:$4 sm:$0xff]   ;;  %v12490_v15 = vld [vmem:[%s16042_s16 + $0xe0c] ss:$16 sps:$4 sm:$0xff]  }
 0xdd8   :  { %v6846_v51 = vpop.f32.mrb[71].mxu1  ;;  %v6887_v53 = vpop.f32.mrb[127].mxu0  ;;  %v12475_v36 = vld [vmem:[%s16042_s16 + $0xf64] ss:$16 sps:$4 sm:$0xff]   ;;  %v12517_v40 = vld [vmem:[%s16042_s16 + $0xf2c] ss:$16 sps:$4 sm:$0xff]  }
 0xdd9   :  { %v12473_v16 = vld [vmem:[%s16042_s16 + $0xf60] ss:$16 sps:$4 sm:$0xff]   ;;  %v12515_v49 = vld [vmem:[%s16042_s16 + $0xf28] ss:$16 sps:$4 sm:$0xff]   ;;  %v12478_v50 = vld [vmem:[%s16042_s16 + $0xf84] ss:$16 sps:$4 sm:$0xff]  }
 0xdda   :  { %v12520_v51 = vld [vmem:[%s16042_s16 + $0xf4c] ss:$16 sps:$4 sm:$0xff]   ;;  %v12476_v53 = vld [vmem:[%s16042_s16 + $0xf80] ss:$16 sps:$4 sm:$0xff]  }
 0xddd   :  { %v6932_v7 = vpop.f32.mrb[72].mxu1 }
 0xdde   :  { %v6934_v8 = vpop.f32.mrb[73].mxu1  ;;  %v6939_v55 = vpack.c.bf16 %v6932_v7, %v6932_v7  ;;  %v12518_v7 = vld [vmem:[%s16042_s16 + $0xf48] ss:$16 sps:$4 sm:$0xff]  }
 0xddf   :  { %v6940_v54 = vpack.c.bf16 %v6934_v8, %v6934_v8  ;;  %v6936_v6 = vpop.f32.mrb[74].mxu1  ;;  %v12481_v8 = vld [vmem:[%s16042_s16 + $0xfa4] ss:$16 sps:$4 sm:$0xff]  }
 0xde0   :  { %v6937_v4 = vpop.f32.mrb[75].mxu1  ;;  %v12479_v6 = vld [vmem:[%s16042_s16 + $0xfa0] ss:$16 sps:$4 sm:$0xff]  }
 0xde1   :  { %7358 = vmatprep.mubr.bf16.mxu0 %v6940_v54  ;;  %7399 = vmatprep.mubr.bf16.mxu1 %v6940_v54  ;;  %v12523_v54 = vld [vmem:[%s16042_s16 + $0xf6c] ss:$16 sps:$4 sm:$0xff]  }
 0xde2   :  { %7359 = vmatmul.mubr.bf16.vlgmr.msra.gmra.mrb[128].mxu0 %v6939_v55  ;;  %7400 = vmatmul.mubr.bf16.vlgmr.msra.gmra.mrb[76].mxu1 %v6939_v55  ;;  %v12484_v55 = vld [vmem:[%s16042_s16 + $0xfc4] ss:$16 sps:$4 sm:$0xff]   ;;  %v12526_v4 = vld [vmem:[%s16042_s16 + $0xf8c] ss:$16 sps:$4 sm:$0xff]  }
 0xde3   :  { %7418 = vmatpush1.bf16.msra.mxu0 %v13992_v0  ;;  %7846 = vmatpush1.bf16.msra.mxu1 %v12440_v42  ;;  %v12521_v42 = vld [vmem:[%s16042_s16 + $0xf68] ss:$16 sps:$4 sm:$0xff]  }
 0xde4   :  { %7847 = vmatprep.subr.bf16.mxu1 %v12445_v13  ;;  %7449 = vmatprep.mubr.bf16.mxu0 %v12658_v52  ;;  %v12482_v13 = vld [vmem:[%s16042_s16 + $0xfc0] ss:$16 sps:$4 sm:$0xff]  }
 0xde5   :  { %7886 = vmatprep.subr.bf16.mxu0 %v12490_v15  ;;  %v12524_v15 = vld [vmem:[%s16042_s16 + $0xf88] ss:$16 sps:$4 sm:$0xff]  }
 0xde7   :  { %7848 = vmatpush1.bf16.msra.mxu1 %v12443_v11  ;;  %v12487_v11 = vld [vmem:[%s16042_s16 + $0xfe4] ss:$16 sps:$4 sm:$0xff]  }
 0xde8   :  { %7849 = vmatprep.subr.bf16.mxu1 %v12448_v56  ;;  %v12485_v56 = vld [vmem:[%s16042_s16 + $0xfe0] ss:$16 sps:$4 sm:$0xff]  }
 0xdea   :  { %10338 = vmatmul.mubr.msk.bf16.vlgmr.msra.gmra.mrb[132].mxu0 %vm3782_vm4, %v10336_v59  ;;  %v12527_v59 = vld [vmem:[%s16042_s16 + $0xfa8] ss:$16 sps:$4 sm:$0xff]  }
 0xdeb   :  { %7850 = vmatpush1.bf16.msra.mxu1 %v12446_v58  ;;  %7887 = vmatpush1.bf16.msra.mxu0 %v12488_v61  ;;  %v12529_v58 = vld [vmem:[%s16042_s16 + $0xfac] ss:$16 sps:$4 sm:$0xff]   ;;  %v12530_v61 = vld [vmem:[%s16042_s16 + $0xfc8] ss:$16 sps:$4 sm:$0xff]  }
 0xdec   :  { %7851 = vmatprep.subr.bf16.mxu1 %v12451_v62  ;;  %7888 = vmatprep.subr.bf16.mxu0 %v12493_v63  ;;  %v12532_v62 = vld [vmem:[%s16042_s16 + $0xfcc] ss:$16 sps:$4 sm:$0xff]   ;;  %v12533_v63 = vld [vmem:[%s16042_s16 + $0xfe8] ss:$16 sps:$4 sm:$0xff]  }
 0xdef   :  { %7852 = vmatpush1.bf16.msra.mxu1 %v12449_v1  ;;  %7889 = vmatpush1.bf16.msra.mxu0 %v12491_v2  ;;  %v12538_v1 = vld [vmem:[%s16042_s16 + $0x1004] ss:$16 sps:$4 sm:$0xff]  }
 0xdf0   :  { %7853 = vmatprep.subr.bf16.mxu1 %v12454_v3  ;;  %7890 = vmatprep.subr.bf16.mxu0 %v12496_v46 }
 0xdf3   :  { %7854 = vmatpush1.bf16.msra.mxu1 %v12452_v5  ;;  %7891 = vmatpush1.bf16.msra.mxu0 %v12494_v9 }
 0xdf4   :  { %7855 = vmatprep.subr.bf16.mxu1 %v12457_v12  ;;  %7892 = vmatprep.subr.bf16.mxu0 %v12499_v19 }
 0xdf7   :  { %7856 = vmatpush1.bf16.msra.mxu1 %v12455_v20  ;;  %7893 = vmatpush1.bf16.msra.mxu0 %v12497_v21 }
 0xdf8   :  { %7857 = vmatprep.subr.bf16.mxu1 %v12460_v60  ;;  %7894 = vmatprep.subr.bf16.mxu0 %v12502_v37 }
 0xdfb   :  { %7858 = vmatpush1.bf16.msra.mxu1 %v12458_v18  ;;  %7895 = vmatpush1.bf16.msra.mxu0 %v12500_v22 }
 0xdfc   :  { %7859 = vmatprep.subr.bf16.mxu1 %v12463_v35  ;;  %7896 = vmatprep.subr.bf16.mxu0 %v12505_v17 }
 0xdff   :  { %7860 = vmatpush1.bf16.msra.mxu1 %v12461_v23  ;;  %7897 = vmatpush1.bf16.msra.mxu0 %v12503_v38 }
 0xe00   :  { %7861 = vmatprep.subr.bf16.mxu1 %v12466_v41  ;;  %7898 = vmatprep.subr.bf16.mxu0 %v12508_v43  ;;  %v12542_v41 = vld [vmem:[%s16042_s16 + $0x1020] ss:$16 sps:$4 sm:$0xff]   ;;  %v12550_v43 = vld [vmem:[%s16042_s16 + $0x1044] ss:$16 sps:$4 sm:$0xff]  }
 0xe03   :  { %7862 = vmatpush1.bf16.msra.mxu1 %v12464_v39  ;;  %7899 = vmatpush1.bf16.msra.mxu0 %v12506_v25  ;;  %v10467_v39 = vld [vmem:[%s16041_s15 + $0x8] sm:$0x1]  ;;  %v12548_v25 = vld [vmem:[%s16042_s16 + $0x1040] ss:$16 sps:$4 sm:$0xff]  }
 0xe04   :  { %7863 = vmatprep.subr.bf16.mxu1 %v12469_v26  ;;  %7900 = vmatprep.subr.bf16.mxu0 %v12511_v27  ;;  %v12556_v26 = vld [vmem:[%s16042_s16 + $0x1064] ss:$16 sps:$4 sm:$0xff]   ;;  %v12545_v27 = vld [vmem:[%s16042_s16 + $0x1028] ss:$16 sps:$4 sm:$0xff]  }
 0xe07   :  { %7864 = vmatpush1.bf16.msra.mxu1 %v12467_v28  ;;  %7901 = vmatpush1.bf16.msra.mxu0 %v12509_v29  ;;  %v12553_v28 = vld [vmem:[%s16042_s16 + $0x104c] ss:$16 sps:$4 sm:$0xff]   ;;  %v12554_v29 = vld [vmem:[%s16042_s16 + $0x1060] ss:$16 sps:$4 sm:$0xff]  }
 0xe08   :  { %7865 = vmatprep.subr.bf16.mxu1 %v12472_v30  ;;  %7902 = vmatprep.subr.bf16.mxu0 %v12514_v31  ;;  %v12562_v30 = vld [vmem:[%s16042_s16 + $0x1084] ss:$16 sps:$4 sm:$0xff]   ;;  %v12551_v31 = vld [vmem:[%s16042_s16 + $0x1048] ss:$16 sps:$4 sm:$0xff]  }
 0xe0b   :  { %7866 = vmatpush1.bf16.msra.mxu1 %v12470_v32  ;;  %7903 = vmatpush1.bf16.msra.mxu0 %v12512_v33  ;;  %v12559_v32 = vld [vmem:[%s16042_s16 + $0x106c] ss:$16 sps:$4 sm:$0xff]   ;;  %v12560_v33 = vld [vmem:[%s16042_s16 + $0x1080] ss:$16 sps:$4 sm:$0xff]  }
 0xe0c   :  { %7867 = vmatprep.subr.bf16.mxu1 %v12475_v36  ;;  %7904 = vmatprep.subr.bf16.mxu0 %v12517_v40  ;;  %v12568_v36 = vld [vmem:[%s16042_s16 + $0x10a4] ss:$16 sps:$4 sm:$0xff]   ;;  %v12557_v40 = vld [vmem:[%s16042_s16 + $0x1068] ss:$16 sps:$4 sm:$0xff]  }
 0xe0f   :  { %7868 = vmatpush1.bf16.msra.mxu1 %v12473_v16  ;;  %7905 = vmatpush1.bf16.msra.mxu0 %v12515_v49  ;;  %v12565_v16 = vld [vmem:[%s16042_s16 + $0x108c] ss:$16 sps:$4 sm:$0xff]   ;;  %v12566_v49 = vld [vmem:[%s16042_s16 + $0x10a0] ss:$16 sps:$4 sm:$0xff]  }
 0xe10   :  { %7869 = vmatprep.subr.bf16.mxu1 %v12478_v50  ;;  %7906 = vmatprep.subr.bf16.mxu0 %v12520_v51  ;;  %v12574_v50 = vld [vmem:[%s16042_s16 + $0x10c4] ss:$16 sps:$4 sm:$0xff]   ;;  %v12563_v51 = vld [vmem:[%s16042_s16 + $0x1088] ss:$16 sps:$4 sm:$0xff]  }
 0xe13   :  { %7870 = vmatpush1.bf16.msra.mxu1 %v12476_v53  ;;  %7907 = vmatpush1.bf16.msra.mxu0 %v12518_v7  ;;  %v12571_v53 = vld [vmem:[%s16042_s16 + $0x10ac] ss:$16 sps:$4 sm:$0xff]   ;;  %v12572_v7 = vld [vmem:[%s16042_s16 + $0x10c0] ss:$16 sps:$4 sm:$0xff]  }
 0xe14   :  { %7871 = vmatprep.subr.bf16.mxu1 %v12481_v8  ;;  %7908 = vmatprep.subr.bf16.mxu0 %v12523_v54  ;;  %v12580_v8 = vld [vmem:[%s16042_s16 + $0x10e4] ss:$16 sps:$4 sm:$0xff]   ;;  %v12569_v54 = vld [vmem:[%s16042_s16 + $0x10a8] ss:$16 sps:$4 sm:$0xff]  }
 0xe17   :  { %7872 = vmatpush1.bf16.msra.mxu1 %v12479_v6  ;;  %7909 = vmatpush1.bf16.msra.mxu0 %v12521_v42  ;;  %v12577_v6 = vld [vmem:[%s16042_s16 + $0x10cc] ss:$16 sps:$4 sm:$0xff]   ;;  %v12578_v42 = vld [vmem:[%s16042_s16 + $0x10e0] ss:$16 sps:$4 sm:$0xff]  }
 0xe18   :  { %7873 = vmatprep.subr.bf16.mxu1 %v12484_v55  ;;  %7910 = vmatprep.subr.bf16.mxu0 %v12526_v4  ;;  %v12586_v55 = vld [vmem:[%s16042_s16 + $0x1104] ss:$16 sps:$4 sm:$0xff]   ;;  %v12575_v4 = vld [vmem:[%s16042_s16 + $0x10c8] ss:$16 sps:$4 sm:$0xff]  }
 0xe1b   :  { %7874 = vmatpush1.bf16.msra.mxu1 %v12482_v13  ;;  %7911 = vmatpush1.bf16.msra.mxu0 %v12524_v15  ;;  %v12583_v13 = vld [vmem:[%s16042_s16 + $0x10ec] ss:$16 sps:$4 sm:$0xff]   ;;  %v12584_v15 = vld [vmem:[%s16042_s16 + $0x1100] ss:$16 sps:$4 sm:$0xff]  }
 0xe1c   :  { %7875 = vmatprep.subr.bf16.mxu1 %v12487_v11  ;;  %7912 = vmatprep.subr.bf16.mxu0 %v12529_v58  ;;  %v12592_v11 = vld [vmem:[%s16042_s16 + $0x1124] ss:$16 sps:$4 sm:$0xff]   ;;  %v12589_v58 = vld [vmem:[%s16042_s16 + $0x110c] ss:$16 sps:$4 sm:$0xff]  }
 0xe1f   :  { %7876 = vmatpush1.bf16.msra.mxu1 %v12485_v56  ;;  %7913 = vmatpush1.bf16.msra.mxu0 %v12527_v59  ;;  %v12581_v56 = vld [vmem:[%s16042_s16 + $0x10e8] ss:$16 sps:$4 sm:$0xff]   ;;  %v12590_v59 = vld [vmem:[%s16042_s16 + $0x1120] ss:$16 sps:$4 sm:$0xff]  }
 0xe20   :  { %10468 = vmatprep.subr.msk.bf16.mxu1 %vm3786_vm3, %v13989_v10  ;;  %7914 = vmatprep.subr.bf16.mxu0 %v12532_v62  ;;  %v12535_v10 = vld [vmem:[%s16042_s16 + $0xfec] ss:$16 sps:$4 sm:$0xff]   ;;  %v12587_v62 = vld [vmem:[%s16042_s16 + $0x1108] ss:$16 sps:$4 sm:$0xff]  }
 0xe23   :  { %7915 = vmatpush1.bf16.msra.mxu0 %v12530_v61  ;;  %v12598_v61 = vld [vmem:[%s16042_s16 + $0x1144] ss:$16 sps:$4 sm:$0xff]  }
 0xe24   :  { %7916 = vmatprep.subr.bf16.mxu0 %v12535_v10  ;;  %v12595_v10 = vld [vmem:[%s16042_s16 + $0x112c] ss:$16 sps:$4 sm:$0xff]  }
 0xe27   :  { %7917 = vmatpush1.bf16.msra.mxu0 %v12533_v63  ;;  %v12596_v63 = vld [vmem:[%s16042_s16 + $0x1140] ss:$16 sps:$4 sm:$0xff]  }
 0xe28   :  { %8364 = vmatprep.subr.bf16.mxu0 %v12538_v1  ;;  %v12604_v1 = vld [vmem:[%s16042_s16 + $0x1164] ss:$16 sps:$4 sm:$0xff]  }
 0xeb5   :  { %v7360_v2 = vpop.f32.mrb[128].mxu0  ;;  %v7401_v3 = vpop.f32.mrb[76].mxu1 }
 0xeb6   :  { %v15581_v46 = vadd.f32 %v7360_v2, %v15369_v34  ;;  %v15584_v5 = vadd.f32 %v7401_v3, %v15372_v14  ;;  %v7362_v9 = vpop.f32.mrb[129].mxu0  ;;  %v7403_v12 = vpop.f32.mrb[77].mxu1  ;;  %v12536_v14 = vld [vmem:[%s16042_s16 + $0x1000] ss:$16 sps:$4 sm:$0xff]   ;;  %v12593_v2 = vld [vmem:[%s16042_s16 + $0x1128] ss:$16 sps:$4 sm:$0xff]  }
 0xeb7   :  { %v15587_v19 = vadd.f32 %v7362_v9, %v15375_v45  ;;  %v15590_v20 = vadd.f32 %v7403_v12, %v15378_v48  ;;  %v7364_v21 = vpop.f32.mrb[130].mxu0  ;;  %v7405_v60 = vpop.f32.mrb[78].mxu1  ;;  %v12541_v45 = vld [vmem:[%s16042_s16 + $0x100c] ss:$16 sps:$4 sm:$0xff]   ;;  %v12544_v48 = vld [vmem:[%s16042_s16 + $0x1024] ss:$16 sps:$4 sm:$0xff]  }
 0xeb8   :  { %v7365_v37 = vpop.f32.mrb[131].mxu0  ;;  %v7406_v18 = vpop.f32.mrb[79].mxu1  ;;  %v12601_v3 = vld [vmem:[%s16042_s16 + $0x114c] ss:$16 sps:$4 sm:$0xff]   ;;  %v12602_v9 = vld [vmem:[%s16042_s16 + $0x1160] ss:$16 sps:$4 sm:$0xff]  }
 0xeb9   :  { %v12610_v12 = vld [vmem:[%s16042_s16 + $0x1184] ss:$16 sps:$4 sm:$0xff]   ;;  %v12599_v21 = vld [vmem:[%s16042_s16 + $0x1148] ss:$16 sps:$4 sm:$0xff]   ;;  %v12607_v60 = vld [vmem:[%s16042_s16 + $0x116c] ss:$16 sps:$4 sm:$0xff]  }
 0xeba   :  { %v12608_v37 = vld [vmem:[%s16042_s16 + $0x1180] ss:$16 sps:$4 sm:$0xff]   ;;  %v12605_v18 = vld [vmem:[%s16042_s16 + $0x1168] ss:$16 sps:$4 sm:$0xff]  }
 0xebd   :  { %v7451_v22 = vpop.f32.mrb[132].mxu0 }
 0xebe   :  { %v7453_v35 = vpop.f32.mrb[133].mxu0  ;;  %v7458_v23 = vpack.c.bf16 %v7451_v22, %v7451_v22  ;;  %v12613_v22 = vld [vmem:[%s16042_s16 + $0x118c] ss:$16 sps:$4 sm:$0xff]  }
 0xebf   :  { %v7459_v17 = vpack.c.bf16 %v7453_v35, %v7453_v35  ;;  %v7455_v34 = vpop.f32.mrb[134].mxu0  ;;  %v12611_v35 = vld [vmem:[%s16042_s16 + $0x1188] ss:$16 sps:$4 sm:$0xff]  }
 0xec0   :  { %v7456_v38 = vpop.f32.mrb[135].mxu0  ;;  %v12619_v34 = vld [vmem:[%s16042_s16 + $0x11ac] ss:$16 sps:$4 sm:$0xff]  }
 0xec1   :  { %7877 = vmatprep.mubr.bf16.mxu1 %v7459_v17  ;;  %7918 = vmatprep.mubr.bf16.mxu0 %v7459_v17  ;;  %v12616_v17 = vld [vmem:[%s16042_s16 + $0x11a4] ss:$16 sps:$4 sm:$0xff]   ;;  %v12617_v38 = vld [vmem:[%s16042_s16 + $0x11a8] ss:$16 sps:$4 sm:$0xff]  }
 0xec2   :  { %7878 = vmatmul.mubr.bf16.vlgmr.msra.gmra.mrb[80].mxu1 %v7458_v23  ;;  %7919 = vmatmul.mubr.bf16.vlgmr.msra.gmra.mrb[136].mxu0 %v7458_v23  ;;  %v12614_v23 = vld [vmem:[%s16042_s16 + $0x11a0] ss:$16 sps:$4 sm:$0xff]  }
 0xec3   :  { %7937 = vmatpush1.bf16.msra.mxu1 %v13992_v0  ;;  %7968 = vmatprep.mubr.bf16.mxu1 %v12658_v52  ;;  %v12539_v0 = vld [vmem:[%s16042_s16 + $0x1008] ss:$16 sps:$4 sm:$0xff]   ;;  %v12547_v52 = vld [vmem:[%s16042_s16 + $0x102c] ss:$16 sps:$4 sm:$0xff]  }
 0xec4   :  { %8405 = vmatprep.subr.bf16.mxu1 %v12541_v45  ;;  %8365 = vmatpush1.bf16.msra.mxu0 %v12536_v14  ;;  %v12620_v14 = vld [vmem:[%s16042_s16 + $0x11c0] ss:$16 sps:$4 sm:$0xff]   ;;  %v12622_v45 = vld [vmem:[%s16042_s16 + $0x11c4] ss:$16 sps:$4 sm:$0xff]  }
 0xec5   :  { %8366 = vmatprep.subr.bf16.mxu0 %v12544_v48  ;;  %v12623_v48 = vld [vmem:[%s16042_s16 + $0x11c8] ss:$16 sps:$4 sm:$0xff]  }
 0xec8   :  { %8367 = vmatpush1.bf16.msra.mxu0 %v12542_v41  ;;  %v12625_v41 = vld [vmem:[%s16042_s16 + $0x11cc] ss:$16 sps:$4 sm:$0xff]  }
 0xec9   :  { %8368 = vmatprep.subr.bf16.mxu0 %v12550_v43  ;;  %v12628_v43 = vld [vmem:[%s16042_s16 + $0x11e4] ss:$16 sps:$4 sm:$0xff]  }
 0xeca   :  { %10469 = vmatmul.mubr.msk.bf16.vlgmr.msra.gmra.mrb[84].mxu1 %vm3782_vm4, %v10467_v39  ;;  %v12631_v39 = vld [vmem:[%s16042_s16 + $0x11ec] ss:$16 sps:$4 sm:$0xff]  }
 0xecb   :  { %8406 = vmatpush1.bf16.msra.mxu1 %v12539_v0  ;;  %v12626_v0 = vld [vmem:[%s16042_s16 + $0x11e0] ss:$16 sps:$4 sm:$0xff]  }
 0xecc   :  { %8407 = vmatprep.subr.bf16.mxu1 %v12547_v52  ;;  %8369 = vmatpush1.bf16.msra.mxu0 %v12548_v25  ;;  %v12629_v52 = vld [vmem:[%s16042_s16 + $0x11e8] ss:$16 sps:$4 sm:$0xff]  }
 0xecd   :  { %8370 = vmatprep.subr.bf16.mxu0 %v12556_v26 }
 0xecf   :  { %8408 = vmatpush1.bf16.msra.mxu1 %v12545_v27 }
 0xed0   :  { %8409 = vmatprep.subr.bf16.mxu1 %v12553_v28  ;;  %8371 = vmatpush1.bf16.msra.mxu0 %v12554_v29 }
 0xed1   :  { %8372 = vmatprep.subr.bf16.mxu0 %v12562_v30 }
 0xed3   :  { %8410 = vmatpush1.bf16.msra.mxu1 %v12551_v31 }
 0xed4   :  { %8411 = vmatprep.subr.bf16.mxu1 %v12559_v32  ;;  %8373 = vmatpush1.bf16.msra.mxu0 %v12560_v33 }
 0xed5   :  { %8374 = vmatprep.subr.bf16.mxu0 %v12568_v36 }
 0xed7   :  { %8412 = vmatpush1.bf16.msra.mxu1 %v12557_v40 }
 0xed8   :  { %8413 = vmatprep.subr.bf16.mxu1 %v12565_v16  ;;  %8375 = vmatpush1.bf16.msra.mxu0 %v12566_v49 }
 0xed9   :  { %8376 = vmatprep.subr.bf16.mxu0 %v12574_v50 }
 0xedb   :  { %8414 = vmatpush1.bf16.msra.mxu1 %v12563_v51 }
 0xedc   :  { %8415 = vmatprep.subr.bf16.mxu1 %v12571_v53  ;;  %8377 = vmatpush1.bf16.msra.mxu0 %v12572_v7 }
 0xedd   :  { %8378 = vmatprep.subr.bf16.mxu0 %v12580_v8 }
 0xedf   :  { %8416 = vmatpush1.bf16.msra.mxu1 %v12569_v54 }
 0xee0   :  { %8417 = vmatprep.subr.bf16.mxu1 %v12577_v6  ;;  %8379 = vmatpush1.bf16.msra.mxu0 %v12578_v42  ;;  %v8480_v42 = vld [vmem:[%s16044_s18] sm:$0xf] }
 0xee1   :  { %8380 = vmatprep.subr.bf16.mxu0 %v12586_v55 }
 0xee3   :  { %8418 = vmatpush1.bf16.msra.mxu1 %v12575_v4 }
 0xee4   :  { %8419 = vmatprep.subr.bf16.mxu1 %v12583_v13  ;;  %8381 = vmatpush1.bf16.msra.mxu0 %v12584_v15 }
 0xee5   :  { %8382 = vmatprep.subr.bf16.mxu0 %v12592_v11 }
 0xee7   :  { %8420 = vmatpush1.bf16.msra.mxu1 %v12581_v56 }
 0xee8   :  { %8421 = vmatprep.subr.bf16.mxu1 %v12589_v58  ;;  %8383 = vmatpush1.bf16.msra.mxu0 %v12590_v59 }
 0xee9   :  { %8384 = vmatprep.subr.bf16.mxu0 %v12598_v61 }
 0xeeb   :  { %8422 = vmatpush1.bf16.msra.mxu1 %v12587_v62 }
 0xeec   :  { %8423 = vmatprep.subr.bf16.mxu1 %v12595_v10  ;;  %8385 = vmatpush1.bf16.msra.mxu0 %v12596_v63  ;;  %v8485_v10 = vrot.slane %v8480_v42, %v13967_v44  ;;  %v8506_v63 = vld [vmem:[%s16045_s19] sm:$0xf] }
 0xeed   :  { %8386 = vmatprep.subr.bf16.mxu0 %v12604_v1 }
 0xeef   :  { %8424 = vmatpush1.bf16.msra.mxu1 %v12593_v2 }
 0xef0   :  { %8425 = vmatprep.subr.bf16.mxu1 %v12601_v3  ;;  %8387 = vmatpush1.bf16.msra.mxu0 %v12602_v9 }
 0xef1   :  { %8388 = vmatprep.subr.bf16.mxu0 %v12610_v12 }
 0xef3   :  { %8426 = vmatpush1.bf16.msra.mxu1 %v12599_v21  ;;  %v8489_v21 = vrot.slane %v8480_v42, %v13973_v47 }
 0xef4   :  { %8427 = vmatprep.subr.bf16.mxu1 %v12607_v60  ;;  %8389 = vmatpush1.bf16.msra.mxu0 %v12608_v37 }
 0xef5   :  { %8390 = vmatprep.subr.bf16.mxu0 %v12616_v17  ;;  %v8515_v17 = vrot.slane %v8506_v63, %v13973_v47 }
 0xef7   :  { %8428 = vmatpush1.bf16.msra.mxu1 %v12605_v18 }
 0xef8   :  { %8429 = vmatprep.subr.bf16.mxu1 %v12613_v22  ;;  %8391 = vmatpush1.bf16.msra.mxu0 %v12614_v23 }
 0xef9   :  { %8392 = vmatprep.subr.bf16.mxu0 %v12622_v45 }
 0xefb   :  { %8430 = vmatpush1.bf16.msra.mxu1 %v12611_v35 }
 0xefc   :  { %8431 = vmatprep.subr.bf16.mxu1 %v12619_v34  ;;  %8393 = vmatpush1.bf16.msra.mxu0 %v12620_v14  ;;  %v8511_v14 = vrot.slane %v8506_v63, %v13967_v44 }
 0xefd   :  { %8394 = vmatprep.subr.bf16.mxu0 %v12628_v43  ;;  %v8709_v43 = vld [vmem:[%s16047_s21 + $0x88] sm:$0xff] }
 0xeff   :  { %8432 = vmatpush1.bf16.msra.mxu1 %v12617_v38 }
 0xf00   :  { %8433 = vmatprep.subr.bf16.mxu1 %v12625_v41  ;;  %8395 = vmatpush1.bf16.msra.mxu0 %v12626_v0  ;;  %v8708_v41 = vld [vmem:[%s16047_s21 + $0x80] sm:$0xff] }
 0xf03   :  { %8434 = vmatpush1.bf16.msra.mxu1 %v12623_v48 }
 0xf04   :  { %8435 = vmatprep.subr.bf16.mxu1 %v12631_v39  ;;  %v8692_v39 = vld [vmem:[%s16047_s21] sm:$0xff] }
 0xf07   :  { %8436 = vmatpush1.bf16.msra.mxu1 %v12629_v52  ;;  %v8740_v52 = vld [vmem:[%s16047_s21 + $0x180] sm:$0xff] }
 0xf95   :  { %v7879_v25 = vpop.f32.mrb[80].mxu1  ;;  %v7920_v26 = vpop.f32.mrb[136].mxu0 }
 0xf96   :  { %v7927_v27 = vadd.f32 %v7879_v25, %v15581_v46  ;;  %v7929_v28 = vadd.f32 %v7920_v26, %v15584_v5  ;;  %v7881_v29 = vpop.f32.mrb[81].mxu1  ;;  %v7922_v30 = vpop.f32.mrb[137].mxu0  ;;  %v8462_v46 = vsub.s32 2, %v13964_v24  ;;  %v8450_v5 = vld [vmem:[%s16043_s17] sm:$0xf]  ;;  %v8741_v25 = vld [vmem:[%s16047_s21 + $0x188] sm:$0xff] }
 0xf97   :  { %v7928_v31 = vadd.f32 %v7881_v29, %v15587_v19  ;;  %v7930_v32 = vadd.f32 %v7922_v30, %v15590_v20  ;;  %v7883_v33 = vpop.f32.mrb[82].mxu1  ;;  %v7924_v36 = vpop.f32.mrb[138].mxu0  ;;  %v8466_v19 = vsub.s32 3, %v13964_v24  ;;  %v8455_v20 = vrot.slane %v8450_v5, %v13967_v44  ;;  %v8693_v44 = vld [vmem:[%s16047_s21 + $0x8] sm:$0xff]  ;;  %v8724_v26 = vld [vmem:[%s16047_s21 + $0x100] sm:$0xff] }
 0xf98   :  { %v7884_v40 = vpop.f32.mrb[83].mxu1  ;;  %v7925_v16 = vpop.f32.mrb[139].mxu0  ;;  %v8463_v54 = vrot.slane %v8450_v5, %v8462_v46  ;;  %v8459_v4 = vrot.slane %v8450_v5, %v13973_v47  ;;  %v8493_v2 = vrot.slane %v8480_v42, %v8462_v46  ;;  %v8519_v48 = vrot.slane %v8506_v63, %v8462_v46  ;;  %v8743_v33 = vld [vmem:[%s16047_s21 + $0x198] sm:$0xff] }
 0xf99   :  { %v8497_v37 = vrot.slane %v8480_v42, %v8466_v19  ;;  %v8523_v23 = vrot.slane %v8506_v63, %v8466_v19  ;;  %v8532_v16 = vld [vmem:[%s16046_s20] sm:$0x3] }
 0xf9a   :  { %v8744_v42 = vld [vmem:[%s16047_s21 + $0x1a0] sm:$0xff] }
 0xf9d   :  { %v7970_v49 = vpop.f32.mrb[84].mxu1 }
 0xf9e   :  { %v7972_v50 = vpop.f32.mrb[85].mxu1  ;;  %v7977_v7 = vpack.c.bf16 %v7970_v49, %v7970_v49  ;;  %v11350_v49 = vpack.c.bf16 %v8709_v43, %v8708_v41  ;;  %v8733_v41 = vld [vmem:[%s16047_s21 + $0x148] sm:$0xff]  ;;  %v8718_v43 = vld [vmem:[%s16047_s21 + $0xd0] sm:$0xff] }
 0xf9f   :  { %v7978_v51 = vpack.c.bf16 %v7972_v50, %v7972_v50  ;;  %v7974_v53 = vpop.f32.mrb[86].mxu1  ;;  %v11382_v50 = vpack.c.bf16 %v8741_v25, %v8740_v52  ;;  %v8702_v25 = vld [vmem:[%s16047_s21 + $0x50] sm:$0xff] }
 0xfa0   :  { %v7975_v8 = vpop.f32.mrb[87].mxu1 }
 0xfa1   :  { %8396 = vmatprep.mubr.bf16.mxu0 %v7978_v51  ;;  %8437 = vmatprep.mubr.bf16.mxu1 %v7978_v51  ;;  %v11352_v51 = vpack.c.bf16 %v8693_v44, %v8692_v39  ;;  %v8695_v8 = vld [vmem:[%s16047_s21 + $0x18] sm:$0xff] }
 0xfa2   :  { %8397 = vmatmul.mubr.bf16.vlgmr.msra.gmra.mrb[140].mxu0 %v7977_v7  ;;  %8438 = vmatmul.mubr.bf16.vlgmr.msra.gmra.mrb[88].mxu1 %v7977_v7  ;;  %v8694_v7 = vld [vmem:[%s16047_s21 + $0x10] sm:$0xff]  ;;  %v8719_v39 = vld [vmem:[%s16047_s21 + $0xd8] sm:$0xff] }
 0xfa3   :  { %8614 = vmatprep.mubr.f32.mxu0 %v12656_v57  ;;  %8685 = vmatprep.mubr.f32.mxu1 %v12656_v57  ;;  %v8467_v57 = vrot.slane %v8450_v5, %v8466_v19  ;;  %v8726_v19 = vld [vmem:[%s16047_s21 + $0x110] sm:$0xff] }
0x1075   :  { %v8398_v6 = vpop.f32.mrb[140].mxu0  ;;  %v8439_v55 = vpop.f32.mrb[88].mxu1 }
0x1076   :  { %v8446_v13 = vadd.f32 %v8398_v6, %v7927_v27  ;;  %v8448_v15 = vadd.f32 %v8439_v55, %v7929_v28  ;;  %v8400_v11 = vpop.f32.mrb[141].mxu0  ;;  %v8441_v56 = vpop.f32.mrb[89].mxu1  ;;  %v8725_v27 = vld [vmem:[%s16047_s21 + $0x108] sm:$0xff]  ;;  %v8710_v28 = vld [vmem:[%s16047_s21 + $0x90] sm:$0xff] }
0x1077   :  { %v8447_v58 = vadd.f32 %v8400_v11, %v7928_v31  ;;  %v8449_v59 = vadd.f32 %v8441_v56, %v7930_v32  ;;  %v8402_v61 = vpop.f32.mrb[142].mxu0  ;;  %v8443_v24 = vpop.f32.mrb[90].mxu1  ;;  %v8711_v31 = vld [vmem:[%s16047_s21 + $0x98] sm:$0xff]  ;;  %v8742_v32 = vld [vmem:[%s16047_s21 + $0x190] sm:$0xff]  ;;  %v11384_v53 = vpack.c.bf16 %v8725_v27, %v8724_v26  ;;  %v8713_v6 = vld [vmem:[%s16047_s21 + $0xa8] sm:$0xff]  ;;  %v11370_v27 = vpack.c.bf16 %v8719_v39, %v8718_v43 }
0x1078   :  { %v8472_v62 = vadd.f32 %v8455_v20, %v8446_v13  ;;  %v8474_v1 = vadd.f32 %v8463_v54, %v8448_v15  ;;  %v8403_v3 = vpop.f32.mrb[143].mxu0  ;;  %v8444_v9 = vpop.f32.mrb[91].mxu1  ;;  %v11354_v46 = vpack.c.bf16 %v8711_v31, %v8710_v28  ;;  %v11386_v5 = vpack.c.bf16 %v8743_v33, %v8742_v32  ;;  %v8727_v20 = vld [vmem:[%s16047_s21 + $0x118] sm:$0xff]  ;;  %v8712_v54 = vld [vmem:[%s16047_s21 + $0xa0] sm:$0xff]  ;;  %v8745_v55 = vld [vmem:[%s16047_s21 + $0x1a8] sm:$0xff] }
0x1079   :  { %v8473_v12 = vadd.f32 %v8459_v4, %v8447_v58  ;;  %v8475_v60 = vadd.f32 %v8467_v57, %v8449_v59  ;;  %v11356_v4 = vpack.c.bf16 %v8695_v8, %v8694_v7  ;;  %v11388_v57 = vpack.c.bf16 %v8727_v20, %v8726_v19  ;;  %v8696_v13 = vld [vmem:[%s16047_s21 + $0x20] sm:$0xff]  ;;  %v8697_v15 = vld [vmem:[%s16047_s21 + $0x28] sm:$0xff]  ;;  %v8714_v61 = vld [vmem:[%s16047_s21 + $0xb0] sm:$0xff] }
0x107a   :  { %v8476_v18 = vmax.f32 %v8472_v62, 0.0  ;;  %v8478_v22 = vmax.f32 %v8474_v1, 0.0  ;;  %v11358_v11 = vpack.c.bf16 %v8713_v6, %v8712_v54  ;;  %v11390_v56 = vpack.c.bf16 %v8745_v55, %v8744_v42  ;;  %v8728_v58 = vld [vmem:[%s16047_s21 + $0x120] sm:$0xff]  ;;  %v8729_v59 = vld [vmem:[%s16047_s21 + $0x128] sm:$0xff]  ;;  %v8715_v24 = vld [vmem:[%s16047_s21 + $0xb8] sm:$0xff] }
0x107b   :  { %v8477_v35 = vmax.f32 %v8473_v12, 0.0  ;;  %v8479_v34 = vmax.f32 %v8475_v60, 0.0  ;;  %v8746_v62 = vld [vmem:[%s16047_s21 + $0x1b0] sm:$0xff]  ;;  %v11360_v63 = vpack.c.bf16 %v8697_v15, %v8696_v13  ;;  %v11392_v1 = vpack.c.bf16 %v8729_v59, %v8728_v58  ;;  %v8699_v3 = vld [vmem:[%s16047_s21 + $0x38] sm:$0xff]  ;;  %v8720_v31 = vld [vmem:[%s16047_s21 + $0xe0] sm:$0xff] }
0x107c   :  { %v8502_v38 = vmul.f32 %v8485_v10, %v8476_v18  ;;  %v8504_v45 = vmul.f32 %v8493_v2, %v8478_v22  ;;  %v8747_v10 = vld [vmem:[%s16047_s21 + $0x1b8] sm:$0xff]  ;;  %v8698_v2 = vld [vmem:[%s16047_s21 + $0x30] sm:$0xff]  ;;  %v11362_v9 = vpack.c.bf16 %v8715_v24, %v8714_v61  ;;  %v8717_v18 = vld [vmem:[%s16047_s21 + $0xc8] sm:$0xff] }
0x107d   :  { %v8503_v47 = vmul.f32 %v8489_v21, %v8477_v35  ;;  %v8505_v0 = vmul.f32 %v8497_v37, %v8479_v34  ;;  %v11394_v12 = vpack.c.bf16 %v8747_v10, %v8746_v62  ;;  %v8730_v21 = vld [vmem:[%s16047_s21 + $0x130] sm:$0xff]  ;;  %v8731_v60 = vld [vmem:[%s16047_s21 + $0x138] sm:$0xff]  ;;  %v8716_v37 = vld [vmem:[%s16047_s21 + $0xc0] sm:$0xff] }
0x107e   :  { %v8528_v36 = vadd.f32 %v8511_v14, %v8502_v38  ;;  %v8530_v40 = vadd.f32 %v8519_v48, %v8504_v45  ;;  %v8748_v22 = vld [vmem:[%s16047_s21 + $0x1c0] sm:$0xff]  ;;  %v8749_v35 = vld [vmem:[%s16047_s21 + $0x1c8] sm:$0xff]  ;;  %v11396_v34 = vpack.c.bf16 %v8731_v60, %v8730_v21  ;;  %v11366_v14 = vpack.c.bf16 %v8717_v18, %v8716_v37  ;;  %v8703_v26 = vld [vmem:[%s16047_s21 + $0x58] sm:$0xff] }
0x107f   :  { %v8529_v29 = vadd.f32 %v8515_v17, %v8503_v47  ;;  %v8531_v30 = vadd.f32 %v8523_v23, %v8505_v0  ;;  %v11364_v17 = vpack.c.bf16 %v8699_v3, %v8698_v2  ;;  %v8700_v23 = vld [vmem:[%s16047_s21 + $0x40] sm:$0xff]  ;;  %v8701_v38 = vld [vmem:[%s16047_s21 + $0x48] sm:$0xff]  ;;  %v11398_v45 = vpack.c.bf16 %v8749_v35, %v8748_v22  ;;  %v8750_v47 = vld [vmem:[%s16047_s21 + $0x1d0] sm:$0xff] }
0x1080   :  { %v8732_v48 = vld [vmem:[%s16047_s21 + $0x140] sm:$0xff]  ;;  %v8751_v0 = vld [vmem:[%s16047_s21 + $0x1d8] sm:$0xff]  ;;  %v11368_v44 = vpack.c.bf16 %v8701_v38, %v8700_v23  ;;  %v8721_v32 = vld [vmem:[%s16047_s21 + $0xe8] sm:$0xff] }
0x1081   :  { %10598 = vmatprep.subr.msk.mxu0 %vm8537_vm5, %v8529_v29  ;;  %10601 = vmatprep.subr.msk.mxu1 %vm8537_vm5, %v8531_v30  ;;  %v11400_v52 = vpack.c.bf16 %v8733_v41, %v8732_v48  ;;  %v11402_v28 = vpack.c.bf16 %v8751_v0, %v8750_v47  ;;  %v8734_v29 = vld [vmem:[%s16047_s21 + $0x150] sm:$0xff]  ;;  %v8735_v30 = vld [vmem:[%s16047_s21 + $0x158] sm:$0xff]  ;;  %v8752_v33 = vld [vmem:[%s16047_s21 + $0x1e0] sm:$0xff] }
0x1082   :  { %10599 = vmatpush1.msk.msra.mxu0 %vm8537_vm5, %v8528_v36  ;;  %10602 = vmatpush1.msk.msra.mxu1 %vm8537_vm5, %v8530_v40  ;;  %v8753_v36 = vld [vmem:[%s16047_s21 + $0x1e8] sm:$0xff]  ;;  %v11372_v40 = vpack.c.bf16 %v8703_v26, %v8702_v25  ;;  %v8736_v7 = vld [vmem:[%s16047_s21 + $0x160] sm:$0xff]  ;;  %v8754_v6 = vld [vmem:[%s16047_s21 + $0x1f0] sm:$0xff] }
0x1083   :  { %10600 = vmatmul.mubr.msk.f32.vlgmr.msra.gmra.mrb[144].mxu0 %vm8533_vm6, %v8532_v16  ;;  %10603 = vmatmul.mubr.msk.f32.vlgmr.msra.gmra.mrb[92].mxu1 %vm8533_vm6, %v8532_v16  ;;  %v11404_v16 = vpack.c.bf16 %v8735_v30, %v8734_v29  ;;  %v8737_v8 = vld [vmem:[%s16047_s21 + $0x168] sm:$0xff]  ;;  %v8755_v42 = vld [vmem:[%s16047_s21 + $0x1f8] sm:$0xff]  ;;  %v8706_v55 = vld [vmem:[%s16047_s21 + $0x70] sm:$0xff] }
0x1084   :  { %11351 = vmatprep.subr.bf16.mxu0 %v11350_v49  ;;  %11383 = vmatprep.subr.bf16.mxu1 %v11382_v50  ;;  %v8704_v49 = vld [vmem:[%s16047_s21 + $0x60] sm:$0xff]  ;;  %v11374_v50 = vpack.c.bf16 %v8721_v32, %v8720_v31  ;;  %v11408_v20 = vpack.c.bf16 %v8737_v8, %v8736_v7  ;;  %v8738_v13 = vld [vmem:[%s16047_s21 + $0x170] sm:$0xff] }
0x1085   :  { %11353 = vmatpush3.bf16.msra.mxu0 %v11352_v51  ;;  %11385 = vmatpush3.bf16.msra.mxu1 %v11384_v53  ;;  %v8705_v51 = vld [vmem:[%s16047_s21 + $0x68] sm:$0xff]  ;;  %v11406_v53 = vpack.c.bf16 %v8753_v36, %v8752_v33 }
0x1086   :  { %11355 = vmatprep.subr.bf16.mxu0 %v11354_v46  ;;  %11387 = vmatprep.subr.bf16.mxu1 %v11386_v5  ;;  %v8722_v46 = vld [vmem:[%s16047_s21 + $0xf0] sm:$0xff]  ;;  %v8723_v5 = vld [vmem:[%s16047_s21 + $0xf8] sm:$0xff]  ;;  %v11376_v19 = vpack.c.bf16 %v8705_v51, %v8704_v49 }
0x1087   :  { %v11378_v54 = vpack.c.bf16 %v8723_v5, %v8722_v46 }
0x1089   :  { %11357 = vmatpush3.bf16.msra.mxu0 %v11356_v4  ;;  %11389 = vmatpush3.bf16.msra.mxu1 %v11388_v57  ;;  %v8707_v4 = vld [vmem:[%s16047_s21 + $0x78] sm:$0xff]  ;;  %v11410_v57 = vpack.c.bf16 %v8755_v42, %v8754_v6 }
0x108a   :  { %11359 = vmatprep.subr.bf16.mxu0 %v11358_v11  ;;  %11391 = vmatprep.subr.bf16.mxu1 %v11390_v56  ;;  %v11380_v15 = vpack.c.bf16 %v8707_v4, %v8706_v55  ;;  %v8739_v11 = vld [vmem:[%s16047_s21 + $0x178] sm:$0xff]  ;;  %s12659_s21 = smov [#allocation2]  }
0x108b   :  { %v11412_v56 = vpack.c.bf16 %v8739_v11, %v8738_v13  ;;  %s8911_s0 = sshll.u32 %s12659_s21, 4  ;;  %s8912_s0 = int_to_ptr.vmem [resolvable:$true] %s8911_s0 }
0x108c   :  { %s12632_s16 = scalar_lea.vmem %s8912_s0, 32  ;;  %p12637_p1 = scmp.lt.s32.totalorder %s8912_s0, %s8912_s0 }
0x108d   :  { %11361 = vmatpush3.bf16.msra.mxu0 %v11360_v63  ;;  %11393 = vmatpush3.bf16.msra.mxu1 %v11392_v1  ;;  %v10604_v63 = vld [vmem:[%s16048_s22] ss:$0 sm:$0xff]  ;;  %p12633_p0 = scmp.ne.s32.totalorder %s8912_s0, %s12632_s16  ;;  %p12638_p2 = scmp.lt.s32.totalorder %s12632_s16, %s12632_s16 }
0x108e   :  { %11363 = vmatprep.subr.bf16.mxu0 %v11362_v9  ;;  %11395 = vmatprep.subr.bf16.mxu1 %v11394_v12 }
0x108f   :  { %p12639_p3 = por %p12638_p2, %p12637_p1 }
0x1091   :  { %11365 = vmatpush3.bf16.msra.mxu0 %v11364_v17  ;;  %11397 = vmatpush3.bf16.msra.mxu1 %v11396_v34  ;;  %p12640_p4 = pnand %p12639_p3, %p12633_p0 }
0x1092   :  { %11367 = vmatprep.subr.bf16.mxu0 %v11366_v14  ;;  %11399 = vmatprep.subr.bf16.mxu1 %v11398_v45 }
0x1095   :  { %11369 = vmatpush3.bf16.msra.mxu0 %v11368_v44  ;;  %11401 = vmatpush3.bf16.msra.mxu1 %v11400_v52 }
0x1096   :  { %11371 = vmatprep.subr.bf16.mxu0 %v11370_v27  ;;  %11403 = vmatprep.subr.bf16.mxu1 %v11402_v28 }
0x1099   :  { %11373 = vmatpush3.bf16.msra.mxu0 %v11372_v40  ;;  %11405 = vmatpush3.bf16.msra.mxu1 %v11404_v16 }
0x109a   :  { %11375 = vmatprep.subr.bf16.mxu0 %v11374_v50  ;;  %11407 = vmatprep.subr.bf16.mxu1 %v11406_v53 }
0x109d   :  { %11377 = vmatpush3.bf16.msra.mxu0 %v11376_v19  ;;  %11409 = vmatpush3.bf16.msra.mxu1 %v11408_v20 }
0x109e   :  { %11379 = vmatprep.subr.bf16.mxu0 %v11378_v54  ;;  %11411 = vmatprep.subr.bf16.mxu1 %v11410_v57 }
0x10a1   :  { %11381 = vmatpush3.bf16.msra.mxu0 %v11380_v15  ;;  %11413 = vmatpush3.bf16.msra.mxu1 %v11412_v56 }
0x1156   :  { %v8616_v58 = vpop.f32.mrb[144].mxu0  ;;  %v8687_v59 = vpop.f32.mrb[92].mxu1 }
0x1157   :  { %v8618_v61 = vpop.f32.mrb[145].mxu0  ;;  %v8689_v24 = vpop.f32.mrb[93].mxu1 }
0x1158   :  { %8827 = vmatprep.mubr.f32.mxu0 %v8618_v61  ;;  %8897 = vmatprep.mubr.f32.mxu1 %v8689_v24 }
0x1159   :  { %8828 = vmatmul.mubr.f32.vlgmr.msra.gmra.mrb[146].mxu0 %v8616_v58  ;;  %8898 = vmatmul.mubr.f32.vlgmr.msra.gmra.mrb[94].mxu1 %v8687_v59 }
0x122c   :  { %v10856_v62 = vpop.f32.mrb[146].mxu0  ;;  %v10891_v10 = vpop.f32.mrb[94].mxu1 }
0x122d   :  { %v10857_v1 = vpop.f32.mrb[147].mxu0  ;;  %v10892_v2 = vpop.f32.mrb[95].mxu1 }
0x122e   :  { %v10858_v3 = vadd.f32 %v10857_v1, %v10856_v62  ;;  %v10893_v9 = vadd.f32 %v10892_v2, %v10891_v10 }
0x1230   :  { %v8830_v12 = vadd.f32 %v10858_v3, %v10604_v63 }
0x1232   :  { %v8900_v21 = vadd.f32 %v10893_v9, %v8830_v12 }
0x1234   :  { %8904 = vst.msk [vmem:[#allocation2] sm:$0x3] %vm8903_vm7, %v8900_v21 }
0x1235   :  { %12643 = shalt.err (!%p12640_p4)
}
0x1236   :  { %s12644_s27 = scalar_lea.hbm %s16049_s23, 32 }
0x1237   :  { %p12645_p5 = scmp.ne.s32.totalorder %s16049_s23, %s12644_s27  ;;  %p12648_p6 = scmp.lt.u32.totalorder %s12644_s27, %s16049_s23 }
0x1239   :  { %p12650_p7 = pnand %p12648_p6, %p12645_p5 }
0x123b   :  { %12653 = shalt.err (!%p12650_p7)
}
0x123c   :  { %8914 = dma.vmem_to_hbm [thread:$0]  %s8912_s0, 32, %s16049_s23, [#allocation3]  }
0x123d   :  { %12654 = dma.done.wait [#allocation3], 32  }
0x123e   :  { %12655 = vsyncadd [#allocation3], 4294967264 }
0x123f   :  { %8918 = vsyncpa [#allocation3], 1 }

</bundles_post_ra>
